<compile_context>
chip_gen: v7x
topology: tpu7x:2x2x1
jax: 0.10.0
libtpu: 0.0.40
codegen_flags: <defaults>
</compile_context>

<pallas_src>
import math
from functools import partial
from types import SimpleNamespace

import jax
import jax.numpy as jnp
from jax.experimental import pallas as pl
from jax.experimental.pallas import tpu as pltpu


# --------------------------------------------------------------------------
# Pallas kernels
# --------------------------------------------------------------------------

def _stream_kernel(xq_ref, xkv_ref, pe_ref,
                   ln0_g_ref, ln0_b_ref, ln1_g_ref, ln1_b_ref,
                   wq_ref, bq_ref, wkv_ref, bkv_ref, wo_ref, bo_ref,
                   fc1_w_ref, fc1_b_ref, fc2_w_ref, fc2_b_ref,
                   lnf_g_ref, lnf_b_ref, h_ref,
                   *, num_layers, num_heads, head_dim, d, batch, seq):
    """One modality stream: cross-modal encoder (L layers) + mem encoder (L layers).

    Per-stream weights arrive already sliced by the BlockSpec index maps:
      ln*:   (2L, 1, d) f32
      wq:    (2L, d, d)  bf16   bq: (2L, 1, d)   f32
      wkv:   (2L, d, 2d) bf16   bkv:(2L, 1, 2d)  f32
      wo:    (2L, d, d)  bf16   bo: (2L, 1, d)   f32
      fc1_w: (2L, d, 4d) bf16   fc1_b: (2L, 1, 4d) f32
      fc2_w: (2L, 4d, d) bf16   fc2_b: (2L, 1, d)  f32
      lnf:   (2, 1, d)   f32   [0]=cross-encoder final LN, [1]=mem-encoder final LN
    xq/xkv: (1, BS, d) f32 — already embed_scale * proj + pos_emb (folded on host).
    """
    f32 = jnp.float32
    bf16 = jnp.bfloat16
    q_scale = 1.0 / math.sqrt(head_dim)
    embed_scale = math.sqrt(d)

    def mm(a, b):
        # MXU matmul: bf16 operands, f32 accumulation.
        return jnp.dot(a.astype(bf16), b, preferred_element_type=f32)

    def ln_stats(x):
        # normalized-but-unscaled LayerNorm (x_hat); gamma/beta applied by caller (f32).
        mu = jnp.mean(x, axis=-1, keepdims=True)
        var = jnp.mean(jnp.square(x - mu), axis=-1, keepdims=True)
        return (x - mu) * jax.lax.rsqrt(var + 1e-5)

    def mha(l, xq_n, xkv_n):
        # Fused per-layer projections (single wide matmuls; no per-head weight tiles).
        q = (mm(xq_n, wq_ref[l]) + bq_ref[l]) * q_scale          # (BS, d)  f32
        kv = mm(xkv_n, wkv_ref[l]) + bkv_ref[l]                  # (BS, 2d) f32
        k = kv[:, :d].astype(bf16)
        v = kv[:, d:].astype(bf16)
        qb = q.astype(bf16)
        rows = []
        for b in range(batch):                                   # per-batch (S,S) scores
            r = slice(b * seq, (b + 1) * seq)                    # -> no (BS,BS) buffer,
            q_b, k_b, v_b = qb[r], k[r], v[r]                    #    no additive mask
            heads = []
            for h in range(num_heads):                           # only score/ctx matmuls
                c = slice(h * head_dim, (h + 1) * head_dim)      # stay per-head
                s = jax.lax.dot_general(q_b[:, c], k_b[:, c],
                                        (((1,), (1,)), ((), ())),
                                        preferred_element_type=f32)       # (S, S) f32
                s = s - jnp.max(s, axis=-1, keepdims=True)
                p = jnp.exp(s)
                p = p * pl.reciprocal(jnp.sum(p, axis=-1, keepdims=True), approx=True)
                heads.append(jnp.dot(p.astype(bf16), v_b[:, c],
                                     preferred_element_type=f32))         # (S, hd)
            rows.append(jnp.concatenate(heads, axis=-1))                  # (S, d)
        ctx = jnp.concatenate(rows, axis=0)                               # (BS, d)
        return mm(ctx, wo_ref[l]) + bo_ref[l]                    # single output proj

    def enc_layer(l, x, kvn_fn):
        # pre-norm MulT encoder layer (dropout == identity at inference)
        residual = x
        xn = ln_stats(x) * ln0_g_ref[l] + ln0_b_ref[l]
        kvn = xn if kvn_fn is None else kvn_fn(l)
        x = residual + mha(l, xn, kvn)
        residual = x
        xn = ln_stats(x) * ln1_g_ref[l] + ln1_b_ref[l]
        hmid = jnp.maximum(mm(xn, fc1_w_ref[l]) + fc1_b_ref[l], 0.0)
        return residual + mm(hmid, fc2_w_ref[l]) + fc2_b_ref[l]

    pe = pe_ref[...]

    # ---- cross-modal encoder (layers 0 .. L-1) ---------------------------
    x = xq_ref[0]             # own modality (embed_scale * proj + pe, host-folded)
    kv = xkv_ref[0]           # other modality: fixed k/v source across layers
    kv_hat = ln_stats(kv)     # hoisted: statistics of fixed kv computed once

    def cross_body(l, xc):
        return enc_layer(l, xc,
                         lambda ll: kv_hat * ln0_g_ref[ll] + ln0_b_ref[ll])

    x = jax.lax.fori_loop(0, num_layers, cross_body, x)
    x = ln_stats(x) * lnf_g_ref[0] + lnf_b_ref[0]

    # ---- self-attention ("mem") encoder (layers L .. 2L-1) ---------------
    x = embed_scale * x + pe

    def mem_body(l, xc):
        return enc_layer(l, xc, None)

    x = jax.lax.fori_loop(num_layers, 2 * num_layers, mem_body, x)
    x = ln_stats(x) * lnf_g_ref[1] + lnf_b_ref[1]

    h_ref[0, :, :] = x.astype(h_ref.dtype)


def _head_kernel(h_ref, w1_ref, b1_ref, w2_ref, b2_ref, wout_ref, bout_ref, o_ref):
    """Fused output head: LeakyReLU(proj1) -> proj2 (+ residual) -> out_layer."""
    f32 = jnp.float32
    bf16 = jnp.bfloat16

    def mm(a, b):
        return jnp.dot(a.astype(bf16), b, preferred_element_type=f32)

    hs = jnp.concatenate([h_ref[0], h_ref[1]], axis=-1)        # (BS, 2d) bf16
    p1 = mm(hs, w1_ref[...]) + b1_ref[...]                     # (BS, 2d) f32
    p1 = jnp.where(p1 >= 0.0, p1, 0.01 * p1)                   # nn.LeakyReLU default slope
    p2 = mm(p1, w2_ref[...]) + b2_ref[...] + hs.astype(f32)    # residual add in f32
    o_ref[...] = (mm(p2, wout_ref[...]) + bout_ref[...]).astype(o_ref.dtype)


# --------------------------------------------------------------------------
# BlockSpec helpers
# --------------------------------------------------------------------------

def _stream_split_spec(shape):
    # leading axis holds [stream0 | stream1]; each grid program gets its half
    block = (shape[0] // 2,) + tuple(shape[1:])
    n = len(block)
    return pl.BlockSpec(block, lambda i, _n=n: (i,) + (0,) * (_n - 1))


# --------------------------------------------------------------------------
# Host-side pieces
# --------------------------------------------------------------------------

def sinusoidal_pos_emb(seq_len, dim):
    """fairseq-style sinusoidal embedding; positions start at padding_idx+1=1."""
    half = dim // 2
    freq = jnp.exp(jnp.arange(half, dtype=jnp.float32)
                   * (-math.log(10000.0) / max(half - 1, 1)))
    pos = jnp.arange(1, seq_len + 1, dtype=jnp.float32)[:, None]
    ang = pos * freq[None, :]
    emb = jnp.concatenate([jnp.sin(ang), jnp.cos(ang)], axis=-1)
    if dim % 2 == 1:
        emb = jnp.concatenate([emb, jnp.zeros((seq_len, 1), jnp.float32)], axis=-1)
    return emb  # (seq_len, dim)


def _init(key, shape, scale=0.02):
    return scale * jax.random.normal(key, shape, dtype=jnp.float32)


def init_encoder(key, d, layers):
    ps = {"layers": []}
    for _ in range(layers):
        key, k1, k2, k3, k4 = jax.random.split(key, 5)
        ps["layers"].append({
            "ln0_g": jnp.ones((d,), jnp.float32), "ln0_b": jnp.zeros((d,), jnp.float32),
            "ln1_g": jnp.ones((d,), jnp.float32), "ln1_b": jnp.zeros((d,), jnp.float32),
            "in_proj_w": _init(k1, (3 * d, d)), "in_proj_b": jnp.zeros((3 * d,), jnp.float32),
            "out_w": _init(k2, (d, d)),        "out_b": jnp.zeros((d,), jnp.float32),
            "fc1_w": _init(k3, (4 * d, d)),    "fc1_b": jnp.zeros((4 * d,), jnp.float32),
            "fc2_w": _init(k4, (d, 4 * d)),    "fc2_b": jnp.zeros((d,), jnp.float32),
        })
    ps["ln_f_g"] = jnp.ones((d,), jnp.float32)
    ps["ln_f_b"] = jnp.zeros((d,), jnp.float32)
    return ps


def init_mult_params(key, conf):
    d = conf.hidden_dim
    combined = 2 * d
    L = conf.num_encoder_layers
    keys = jax.random.split(key, 10)
    return {
        "proj_l_w": _init(keys[0], (d, conf.feature_dim_1)),   # Conv1d(k=1, no bias)
        "proj_a_w": _init(keys[1], (d, conf.feature_dim_2)),
        "trans_l_with_a": init_encoder(keys[2], d, L),
        "trans_a_with_l": init_encoder(keys[3], d, L),
        "trans_l_mem": init_encoder(keys[4], d, L),
        "trans_a_mem": init_encoder(keys[5], d, L),
        "proj1_w": _init(keys[6], (combined, combined)),
        "proj1_b": jnp.zeros((combined,), jnp.float32),
        "proj2_w": _init(keys[7], (combined, combined)),
        "proj2_b": jnp.zeros((combined,), jnp.float32),
        "out_w": _init(keys[8], (d, combined)),
        "out_b": jnp.zeros((d,), jnp.float32),
    }


def prepare_kernel_params(params, conf):
    """One-time conversion: PyTorch layout -> kernel layout.

    Per-layer weights are transposed to (K, N), kept fused (no per-head split), cast to
    bf16 (matmul operands) / f32 (biases, LN params), and stacked so the leading axis is
    [stream0(cross L, mem L) | stream1(cross L, mem L)] for BlockSpec routing.
    """
    d = conf.hidden_dim
    f32, bf16 = jnp.float32, jnp.bfloat16

    enc_order = ["trans_l_with_a", "trans_l_mem", "trans_a_with_l", "trans_a_mem"]
    flat_layers, lnf_g, lnf_b = [], [], []
    for name in enc_order:
        enc = params[name]
        flat_layers.extend(enc["layers"])
        lnf_g.append(enc["ln_f_g"].reshape(1, d))
        lnf_b.append(enc["ln_f_b"].reshape(1, d))

    def stack(fn, dtype):
        return jnp.stack([fn(lay) for lay in flat_layers]).astype(dtype)

    return {
        "proj_l_w_t": params["proj_l_w"].T.astype(f32),          # (F1, d)
        "proj_a_w_t": params["proj_a_w"].T.astype(f32),          # (F2, d)
        "ln0_g": stack(lambda l: l["ln0_g"].reshape(1, d), f32),
        "ln0_b": stack(lambda l: l["ln0_b"].reshape(1, d), f32),
        "ln1_g": stack(lambda l: l["ln1_g"].reshape(1, d), f32),
        "ln1_b": stack(lambda l: l["ln1_b"].reshape(1, d), f32),
        # fused attention projections: rows of in_proj_w are [Wq; Wk; Wv]
        "wq":  stack(lambda l: l["in_proj_w"][:d, :].T, bf16),            # (d, d)
        "bq":  stack(lambda l: l["in_proj_b"][:d].reshape(1, d), f32),
        "wkv": stack(lambda l: l["in_proj_w"][d:, :].T, bf16),            # (d, 2d)
        "bkv": stack(lambda l: l["in_proj_b"][d:].reshape(1, 2 * d), f32),
        "wo":  stack(lambda l: l["out_w"].T, bf16),                       # (d, d)
        "bo":  stack(lambda l: l["out_b"].reshape(1, d), f32),
        "fc1_w": stack(lambda l: l["fc1_w"].T, bf16),
        "fc1_b": stack(lambda l: l["fc1_b"].reshape(1, 4 * d), f32),
        "fc2_w": stack(lambda l: l["fc2_w"].T, bf16),
        "fc2_b": stack(lambda l: l["fc2_b"].reshape(1, d), f32),
        "lnf_g": jnp.stack(lnf_g).astype(f32),
        "lnf_b": jnp.stack(lnf_b).astype(f32),
        # output head (deduplicated: one copy of each weight)
        "hw1": params["proj1_w"].T.astype(bf16),
        "hb1": params["proj1_b"].reshape(1, 2 * d).astype(f32),
        "hw2": params["proj2_w"].T.astype(bf16),
        "hb2": params["proj2_b"].reshape(1, 2 * d).astype(f32),
        "hwout": params["out_w"].T.astype(bf16),
        "hbout": params["out_b"].reshape(1, d).astype(f32),
    }


# --------------------------------------------------------------------------
# MULTModel forward (2 pallas_calls)
# --------------------------------------------------------------------------

def mult_forward(kp, conf, x_l, x_a):
    """x_l: (B, S, F1), x_a: (B, S, F2) -> (B, S, hidden_dim)."""
    B, S, F1 = x_l.shape
    F2 = x_a.shape[-1]
    d = conf.hidden_dim
    H = conf.num_heads
    L = conf.num_encoder_layers
    hd = d // H
    BS = B * S
    f32 = jnp.float32
    # TODO(synk): causal future-mask path (conf.attn_mask=True) not implemented.

    # Conv1d(k=1, no bias) projections + embed_scale + positional embedding folded on
    # the host once; rows are ordered b*S + s.
    xl2 = x_l.reshape(BS, F1).astype(f32)
    xa2 = x_a.reshape(BS, F2).astype(f32)
    pxl = xl2 if F1 == d else xl2 @ kp["proj_l_w_t"]
    pxa = xa2 if F2 == d else xa2 @ kp["proj_a_w_t"]

    pe = jnp.tile(sinusoidal_pos_emb(S, d), (B, 1)).astype(f32)      # (BS, d)
    scale = math.sqrt(d)
    x_stack = jnp.stack([scale * pxl + pe, scale * pxa + pe])        # (2, BS, d)

    stream_inputs = [
        x_stack, x_stack, pe,
        kp["ln0_g"], kp["ln0_b"], kp["ln1_g"], kp["ln1_b"],
        kp["wq"], kp["bq"], kp["wkv"], kp["bkv"], kp["wo"], kp["bo"],
        kp["fc1_w"], kp["fc1_b"], kp["fc2_w"], kp["fc2_b"],
        kp["lnf_g"], kp["lnf_b"],
    ]
    in_specs = (
        [pl.BlockSpec((1, BS, d), lambda i: (i, 0, 0)),        # own modality (q source)
         pl.BlockSpec((1, BS, d), lambda i: (1 - i, 0, 0)),    # other modality (k/v src)
         pl.BlockSpec((BS, d), lambda i: (0, 0))]              # positional embedding
        + [_stream_split_spec(a.shape) for a in stream_inputs[3:]]
    )

    h = pl.pallas_call(
        partial(_stream_kernel, num_layers=L, num_heads=H, head_dim=hd, d=d,
                batch=B, seq=S),
        out_shape=jax.ShapeDtypeStruct((2, BS, d), jnp.bfloat16),
        grid=(2,),
        in_specs=in_specs,
        out_specs=pl.BlockSpec((1, BS, d), lambda i: (i, 0, 0)),
        compiler_params=pltpu.CompilerParams(
            # TODO(synk): pltpu.CORE_PARALLEL on v7x to map one stream per TensorCore.
            dimension_semantics=("parallel",),
            vmem_limit_bytes=32 * 1024 * 1024),
    )(*stream_inputs)

    out = pl.pallas_call(
        _head_kernel,
        out_shape=jax.ShapeDtypeStruct((BS, d), jnp.float32),
    )(h, kp["hw1"], kp["hb1"], kp["hw2"], kp["hb2"], kp["hwout"], kp["hbout"])

    return out.reshape(B, S, d)


# --------------------------------------------------------------------------
# Pure-JAX reference (mirrors the PyTorch module) for a correctness self-check
# --------------------------------------------------------------------------

def _ref_ln(x, g, b):
    mu = jnp.mean(x, -1, keepdims=True)
    var = jnp.mean((x - mu) ** 2, -1, keepdims=True)
    return (x - mu) * jax.lax.rsqrt(var + 1e-5) * g + b


def _ref_mha(lp, xq, xk, xv, H):
    Sq, B, D = xq.shape
    Sk = xk.shape[0]
    hd = D // H
    wq, wk, wv = jnp.split(lp["in_proj_w"], 3, axis=0)
    bq, bk, bv = jnp.split(lp["in_proj_b"], 3, axis=0)
    q = ((xq @ wq.T + bq) * (hd ** -0.5)).reshape(Sq, B, H, hd)
    k = (xk @ wk.T + bk).reshape(Sk, B, H, hd)
    v = (xv @ wv.T + bv).reshape(Sk, B, H, hd)
    s = jnp.einsum("qbhd,kbhd->bhqk", q, k)
    p = jax.nn.softmax(s, axis=-1)
    o = jnp.einsum("bhqk,kbhd->qbhd", p, v).reshape(Sq, B, D)
    return o @ lp["out_w"].T + lp["out_b"]


def _ref_layer(lp, x, xk, xv, H):
    res = x
    xn = _ref_ln(x, lp["ln0_g"], lp["ln0_b"])
    if xk is None:
        kn = vn = xn
    else:
        kn = _ref_ln(xk, lp["ln0_g"], lp["ln0_b"])
        vn = _ref_ln(xv, lp["ln0_g"], lp["ln0_b"])
    x = res + _ref_mha(lp, xn, kn, vn, H)
    res = x
    xn = _ref_ln(x, lp["ln1_g"], lp["ln1_b"])
    hmid = jax.nn.relu(xn @ lp["fc1_w"].T + lp["fc1_b"])
    return res + hmid @ lp["fc2_w"].T + lp["fc2_b"]


def _ref_encoder(p, x, xk=None, xv=None, *, H):
    S, B, D = x.shape
    scale = math.sqrt(D)
    pe = sinusoidal_pos_emb(S, D)[:, None, :]
    h = scale * x + pe
    hk = hv = None
    if xk is not None:
        hk = scale * xk + sinusoidal_pos_emb(xk.shape[0], D)[:, None, :]
        hv = scale * xv + sinusoidal_pos_emb(xv.shape[0], D)[:, None, :]
    for lp in p["layers"]:
        h = _ref_layer(lp, h, hk, hv, H)
    return _ref_ln(h, p["ln_f_g"], p["ln_f_b"])


def mult_forward_reference(params, conf, x_l, x_a):
    d, H = conf.hidden_dim, conf.num_heads
    pxl = x_l if x_l.shape[-1] == d else x_l @ params["proj_l_w"].T
    pxa = x_a if x_a.shape[-1] == d else x_a @ params["proj_a_w"].T
    pxl = pxl.transpose(1, 0, 2)
    pxa = pxa.transpose(1, 0, 2)
    h_l = _ref_encoder(params["trans_l_with_a"], pxl, pxa, pxa, H=H)
    h_l = _ref_encoder(params["trans_l_mem"], h_l, H=H)
    h_a = _ref_encoder(params["trans_a_with_l"], pxa, pxl, pxl, H=H)
    h_a = _ref_encoder(params["trans_a_mem"], h_a, H=H)
    last_hs = jnp.concatenate([h_l, h_a], axis=2).transpose(1, 0, 2)   # (B, S, 2d)
    p1 = last_hs @ params["proj1_w"].T + params["proj1_b"]
    p1 = jnp.where(p1 >= 0.0, p1, 0.01 * p1)
    p2 = p1 @ params["proj2_w"].T + params["proj2_b"] + last_hs
    return p2 @ params["out_w"].T + params["out_b"]


# --------------------------------------------------------------------------
# Example run
# --------------------------------------------------------------------------

if __name__ == "__main__":
    conf = SimpleNamespace(
        feature_dim_1=20,
        feature_dim_2=12,
        hidden_dim=32,
        num_heads=4,
        num_encoder_layers=2,
        dropout=0.1,        # identity at inference
        attn_mask=False,
    )

    key = jax.random.PRNGKey(0)
    pkey, xk1, xk2 = jax.random.split(key, 3)
    params = init_mult_params(pkey, conf)
    kparams = prepare_kernel_params(params, conf)

    B, S = 2, 8
    x_l = jax.random.normal(xk1, (B, S, conf.feature_dim_1), dtype=jnp.float32)
    x_a = jax.random.normal(xk2, (B, S, conf.feature_dim_2), dtype=jnp.float32)

    fwd = jax.jit(lambda a, b: mult_forward(kparams, conf, a, b))
    out = jax.block_until_ready(fwd(x_l, x_a))

    assert out.shape == (B, S, conf.hidden_dim), out.shape
    assert bool(jnp.all(jnp.isfinite(out)))

    ref = mult_forward_reference(params, conf, x_l, x_a)
    max_err = float(jnp.max(jnp.abs(out - ref)))
    # bf16 matmul path -> slightly looser tolerance than a pure-f32 kernel
    assert jnp.allclose(out, ref, atol=3e-2, rtol=3e-2), max_err

    print("KERNEL_OK")
</pallas_src>

<mosaic_0001>
module attributes {stable_mosaic.version = 11 : i64} {
  func.func @_head_kernel(%arg0: memref<2x16x32xbf16, #tpu.memory_space<vmem>>, %arg1: memref<64x64xbf16, #tpu.memory_space<vmem>>, %arg2: memref<1x64xf32, #tpu.memory_space<vmem>>, %arg3: memref<64x64xbf16, #tpu.memory_space<vmem>>, %arg4: memref<1x64xf32, #tpu.memory_space<vmem>>, %arg5: memref<64x32xbf16, #tpu.memory_space<vmem>>, %arg6: memref<1x32xf32, #tpu.memory_space<vmem>>, %arg7: memref<16x32xf32, #tpu.memory_space<vmem>>) attributes {dimension_semantics = [], scalar_prefetch = 0 : i64, scratch_operands = 0 : i64, tpu.core_type = #tpu.core_type<tc>} {
    %c0 = arith.constant 0 : index
    %c0_0 = arith.constant 0 : index
    %c0_1 = arith.constant 0 : index
    %0 = vector.load %arg0[%c0, %c0_0, %c0_1] : memref<2x16x32xbf16, #tpu.memory_space<vmem>>, vector<1x16x32xbf16>
    %1 = vector.shape_cast %0 : vector<1x16x32xbf16> to vector<16x32xbf16>
    %c1 = arith.constant 1 : index
    %c0_2 = arith.constant 0 : index
    %c0_3 = arith.constant 0 : index
    %2 = vector.load %arg0[%c1, %c0_2, %c0_3] : memref<2x16x32xbf16, #tpu.memory_space<vmem>>, vector<1x16x32xbf16>
    %3 = vector.shape_cast %2 : vector<1x16x32xbf16> to vector<16x32xbf16>
    %4 = tpu.concatenate %1, %3 in 1 : vector<16x32xbf16>, vector<16x32xbf16> -> vector<16x64xbf16>
    %c0_4 = arith.constant 0 : index
    %c0_5 = arith.constant 0 : index
    %5 = vector.load %arg1[%c0_4, %c0_5] : memref<64x64xbf16, #tpu.memory_space<vmem>>, vector<64x64xbf16>
    %cst = arith.constant dense<0.000000e+00> : vector<16x64xf32>
    %6 = tpu.matmul %4, %5, %cst {dimension_numbers = #tpu.dot_dimension_numbers<[1], [0], [0], [1], [0, 0, 1, 1], [], []>} : vector<16x64xbf16>, vector<64x64xbf16>, vector<16x64xf32> -> vector<16x64xf32>
    %c0_6 = arith.constant 0 : index
    %c0_7 = arith.constant 0 : index
    %7 = vector.load %arg2[%c0_6, %c0_7] : memref<1x64xf32, #tpu.memory_space<vmem>>, vector<1x64xf32>
    %8 = vector.broadcast %7 : vector<1x64xf32> to vector<16x64xf32>
    %9 = arith.addf %6, %8 : vector<16x64xf32>
    %cst_8 = arith.constant 0.000000e+00 : f32
    %10 = vector.broadcast %cst_8 : f32 to vector<16x64xf32>
    %11 = arith.cmpf oge, %9, %10 : vector<16x64xf32>
    %cst_9 = arith.constant 0.00999999977 : f32
    %12 = vector.broadcast %cst_9 : f32 to vector<16x64xf32>
    %13 = arith.mulf %12, %9 : vector<16x64xf32>
    %14 = arith.select %11, %9, %13 : vector<16x64xi1>, vector<16x64xf32>
    %c0_10 = arith.constant 0 : index
    %c0_11 = arith.constant 0 : index
    %15 = vector.load %arg3[%c0_10, %c0_11] : memref<64x64xbf16, #tpu.memory_space<vmem>>, vector<64x64xbf16>
    %16 = arith.truncf %14 : vector<16x64xf32> to vector<16x64xbf16>
    %cst_12 = arith.constant dense<0.000000e+00> : vector<16x64xf32>
    %17 = tpu.matmul %16, %15, %cst_12 {dimension_numbers = #tpu.dot_dimension_numbers<[1], [0], [0], [1], [0, 0, 1, 1], [], []>} : vector<16x64xbf16>, vector<64x64xbf16>, vector<16x64xf32> -> vector<16x64xf32>
    %c0_13 = arith.constant 0 : index
    %c0_14 = arith.constant 0 : index
    %18 = vector.load %arg4[%c0_13, %c0_14] : memref<1x64xf32, #tpu.memory_space<vmem>>, vector<1x64xf32>
    %19 = vector.broadcast %18 : vector<1x64xf32> to vector<16x64xf32>
    %20 = arith.addf %17, %19 : vector<16x64xf32>
    %21 = arith.extf %4 : vector<16x64xbf16> to vector<16x64xf32>
    %22 = arith.addf %20, %21 : vector<16x64xf32>
    %c0_15 = arith.constant 0 : index
    %c0_16 = arith.constant 0 : index
    %23 = vector.load %arg5[%c0_15, %c0_16] : memref<64x32xbf16, #tpu.memory_space<vmem>>, vector<64x32xbf16>
    %24 = arith.truncf %22 : vector<16x64xf32> to vector<16x64xbf16>
    %cst_17 = arith.constant dense<0.000000e+00> : vector<16x32xf32>
    %25 = tpu.matmul %24, %23, %cst_17 {dimension_numbers = #tpu.dot_dimension_numbers<[1], [0], [0], [1], [0, 0, 1, 1], [], []>} : vector<16x64xbf16>, vector<64x32xbf16>, vector<16x32xf32> -> vector<16x32xf32>
    %c0_18 = arith.constant 0 : index
    %c0_19 = arith.constant 0 : index
    %26 = vector.load %arg6[%c0_18, %c0_19] : memref<1x32xf32, #tpu.memory_space<vmem>>, vector<1x32xf32>
    %27 = vector.broadcast %26 : vector<1x32xf32> to vector<16x32xf32>
    %28 = arith.addf %25, %27 : vector<16x32xf32>
    %c0_20 = arith.constant 0 : index
    %c0_21 = arith.constant 0 : index
    %29 = vector.load %arg7[%c0_20, %c0_21] : memref<16x32xf32, #tpu.memory_space<vmem>>, vector<16x32xf32>
    tpu.vector_store %arg7[%c0_20, %c0_21], %28 {strides = array<i32>} : memref<16x32xf32, #tpu.memory_space<vmem>>, vector<16x32xf32>,
    return
  }
}

module attributes {stable_mosaic.version = 11 : i64} {
  func.func @_stream_kernel(%arg0: i32, %arg1: memref<1x16x32xf32, #tpu.memory_space<vmem>>, %arg2: memref<1x16x32xf32, #tpu.memory_space<vmem>>, %arg3: memref<16x32xf32, #tpu.memory_space<vmem>>, %arg4: memref<4x1x32xf32, #tpu.memory_space<vmem>>, %arg5: memref<4x1x32xf32, #tpu.memory_space<vmem>>, %arg6: memref<4x1x32xf32, #tpu.memory_space<vmem>>, %arg7: memref<4x1x32xf32, #tpu.memory_space<vmem>>, %arg8: memref<4x32x32xbf16, #tpu.memory_space<vmem>>, %arg9: memref<4x1x32xf32, #tpu.memory_space<vmem>>, %arg10: memref<4x32x64xbf16, #tpu.memory_space<vmem>>, %arg11: memref<4x1x64xf32, #tpu.memory_space<vmem>>, %arg12: memref<4x32x32xbf16, #tpu.memory_space<vmem>>, %arg13: memref<4x1x32xf32, #tpu.memory_space<vmem>>, %arg14: memref<4x32x128xbf16, #tpu.memory_space<vmem>>, %arg15: memref<4x1x128xf32, #tpu.memory_space<vmem>>, %arg16: memref<4x128x32xbf16, #tpu.memory_space<vmem>>, %arg17: memref<4x1x32xf32, #tpu.memory_space<vmem>>, %arg18: memref<2x1x32xf32, #tpu.memory_space<vmem>>, %arg19: memref<2x1x32xf32, #tpu.memory_space<vmem>>, %arg20: memref<1x16x32xbf16, #tpu.memory_space<vmem>>) attributes {dimension_semantics = [#tpu.dimension_semantics<parallel>], iteration_bounds = array<i64: 2>, scalar_prefetch = 0 : i64, scratch_operands = 0 : i64, tpu.core_type = #tpu.core_type<tc>, window_params = [{transform_indices = @transform_0, window_bounds = array<i64: 1, 16, 32>}, {transform_indices = @transform_1, window_bounds = array<i64: 1, 16, 32>}, {pipeline_mode = #tpu.pipeline_mode<synchronous>, transform_indices = @transform_2, window_bounds = array<i64: 16, 32>}, {transform_indices = @transform_3, window_bounds = array<i64: 4, 1, 32>}, {transform_indices = @transform_4, window_bounds = array<i64: 4, 1, 32>}, {transform_indices = @transform_5, window_bounds = array<i64: 4, 1, 32>}, {transform_indices = @transform_6, window_bounds = array<i64: 4, 1, 32>}, {transform_indices = @transform_7, window_bounds = array<i64: 4, 32, 32>}, {transform_indices = @transform_8, window_bounds = array<i64: 4, 1, 32>}, {transform_indices = @transform_9, window_bounds = array<i64: 4, 32, 64>}, {transform_indices = @transform_10, window_bounds = array<i64: 4, 1, 64>}, {transform_indices = @transform_11, window_bounds = array<i64: 4, 32, 32>}, {transform_indices = @transform_12, window_bounds = array<i64: 4, 1, 32>}, {transform_indices = @transform_13, window_bounds = array<i64: 4, 32, 128>}, {transform_indices = @transform_14, window_bounds = array<i64: 4, 1, 128>}, {transform_indices = @transform_15, window_bounds = array<i64: 4, 128, 32>}, {transform_indices = @transform_16, window_bounds = array<i64: 4, 1, 32>}, {transform_indices = @transform_17, window_bounds = array<i64: 2, 1, 32>}, {transform_indices = @transform_18, window_bounds = array<i64: 2, 1, 32>}, {transform_indices = @transform_19, window_bounds = array<i64: 1, 16, 32>}]} {
    %c0 = arith.constant 0 : index
    %c0_0 = arith.constant 0 : index
    %0 = vector.load %arg3[%c0, %c0_0] : memref<16x32xf32, #tpu.memory_space<vmem>>, vector<16x32xf32>
    %c0_1 = arith.constant 0 : index
    %c0_2 = arith.constant 0 : index
    %c0_3 = arith.constant 0 : index
    %1 = vector.load %arg1[%c0_1, %c0_2, %c0_3] : memref<1x16x32xf32, #tpu.memory_space<vmem>>, vector<1x16x32xf32>
    %2 = vector.shape_cast %1 : vector<1x16x32xf32> to vector<16x32xf32>
    %c0_4 = arith.constant 0 : index
    %c0_5 = arith.constant 0 : index
    %c0_6 = arith.constant 0 : index
    %3 = vector.load %arg2[%c0_4, %c0_5, %c0_6] : memref<1x16x32xf32, #tpu.memory_space<vmem>>, vector<1x16x32xf32>
    %4 = vector.shape_cast %3 : vector<1x16x32xf32> to vector<16x32xf32>
    %cst = arith.constant dense<0.000000e+00> : vector<16xf32>
    %5 = vector.multi_reduction <add>, %4, %cst [1] : vector<16x32xf32> to vector<16xf32>
    %6 = vector.shape_cast %5 : vector<16xf32> to vector<16x1xf32>
    %cst_7 = arith.constant 3.200000e+01 : f32
    %7 = vector.broadcast %cst_7 : f32 to vector<16x1xf32>
    %8 = arith.divf %6, %7 : vector<16x1xf32>
    %9 = vector.broadcast %8 : vector<16x1xf32> to vector<16x32xf32>
    %10 = arith.subf %4, %9 : vector<16x32xf32>
    %11 = arith.mulf %10, %10 : vector<16x32xf32>
    %cst_8 = arith.constant dense<0.000000e+00> : vector<16xf32>
    %12 = vector.multi_reduction <add>, %11, %cst_8 [1] : vector<16x32xf32> to vector<16xf32>
    %13 = vector.shape_cast %12 : vector<16xf32> to vector<16x1xf32>
    %cst_9 = arith.constant 3.200000e+01 : f32
    %14 = vector.broadcast %cst_9 : f32 to vector<16x1xf32>
    %15 = arith.divf %13, %14 : vector<16x1xf32>
    %16 = vector.broadcast %8 : vector<16x1xf32> to vector<16x32xf32>
    %17 = arith.subf %4, %16 : vector<16x32xf32>
    %cst_10 = arith.constant 9.99999974E-6 : f32
    %18 = vector.broadcast %cst_10 : f32 to vector<16x1xf32>
    %19 = arith.addf %15, %18 : vector<16x1xf32>
    %20 = math.rsqrt %19 : vector<16x1xf32>
    %21 = vector.broadcast %20 : vector<16x1xf32> to vector<16x32xf32>
    %22 = arith.mulf %17, %21 : vector<16x32xf32>
    %c0_i32 = arith.constant 0 : i32
    %c2_i32 = arith.constant 2 : i32
    %23 = arith.addi %c0_i32, %c2_i32 : i32
    %c1_i32 = arith.constant 1 : i32
    %24 = scf.for %arg21 = %c0_i32 to %23 step %c1_i32 iter_args(%arg22 = %2) -> (vector<16x32xf32>)  : i32 {
      %cst_41 = arith.constant dense<0.000000e+00> : vector<16xf32>
      %86 = vector.multi_reduction <add>, %arg22, %cst_41 [1] : vector<16x32xf32> to vector<16xf32>
      %87 = vector.shape_cast %86 : vector<16xf32> to vector<16x1xf32>
      %cst_42 = arith.constant 3.200000e+01 : f32
      %88 = vector.broadcast %cst_42 : f32 to vector<16x1xf32>
      %89 = arith.divf %87, %88 : vector<16x1xf32>
      %90 = vector.broadcast %89 : vector<16x1xf32> to vector<16x32xf32>
      %91 = arith.subf %arg22, %90 : vector<16x32xf32>
      %92 = arith.mulf %91, %91 : vector<16x32xf32>
      %cst_43 = arith.constant dense<0.000000e+00> : vector<16xf32>
      %93 = vector.multi_reduction <add>, %92, %cst_43 [1] : vector<16x32xf32> to vector<16xf32>
      %94 = vector.shape_cast %93 : vector<16xf32> to vector<16x1xf32>
      %cst_44 = arith.constant 3.200000e+01 : f32
      %95 = vector.broadcast %cst_44 : f32 to vector<16x1xf32>
      %96 = arith.divf %94, %95 : vector<16x1xf32>
      %97 = vector.broadcast %89 : vector<16x1xf32> to vector<16x32xf32>
      %98 = arith.subf %arg22, %97 : vector<16x32xf32>
      %cst_45 = arith.constant 9.99999974E-6 : f32
      %99 = vector.broadcast %cst_45 : f32 to vector<16x1xf32>
      %100 = arith.addf %96, %99 : vector<16x1xf32>
      %101 = math.rsqrt %100 : vector<16x1xf32>
      %102 = vector.broadcast %101 : vector<16x1xf32> to vector<16x32xf32>
      %103 = arith.mulf %98, %102 : vector<16x32xf32>
      %104 = arith.index_cast %arg21 : i32 to index
      %c0_46 = arith.constant 0 : index
      %c0_47 = arith.constant 0 : index
      %105 = vector.load %arg4[%104, %c0_46, %c0_47] : memref<4x1x32xf32, #tpu.memory_space<vmem>>, vector<1x1x32xf32>
      %106 = vector.shape_cast %105 : vector<1x1x32xf32> to vector<1x32xf32>
      %107 = vector.broadcast %106 : vector<1x32xf32> to vector<16x32xf32>
      %108 = arith.mulf %103, %107 : vector<16x32xf32>
      %109 = arith.index_cast %arg21 : i32 to index
      %c0_48 = arith.constant 0 : index
      %c0_49 = arith.constant 0 : index
      %110 = vector.load %arg5[%109, %c0_48, %c0_49] : memref<4x1x32xf32, #tpu.memory_space<vmem>>, vector<1x1x32xf32>
      %111 = vector.shape_cast %110 : vector<1x1x32xf32> to vector<1x32xf32>
      %112 = vector.broadcast %111 : vector<1x32xf32> to vector<16x32xf32>
      %113 = arith.addf %108, %112 : vector<16x32xf32>
      %114 = arith.index_cast %arg21 : i32 to index
      %c0_50 = arith.constant 0 : index
      %c0_51 = arith.constant 0 : index
      %115 = vector.load %arg4[%114, %c0_50, %c0_51] : memref<4x1x32xf32, #tpu.memory_space<vmem>>, vector<1x1x32xf32>
      %116 = vector.shape_cast %115 : vector<1x1x32xf32> to vector<1x32xf32>
      %117 = vector.broadcast %116 : vector<1x32xf32> to vector<16x32xf32>
      %118 = arith.mulf %22, %117 : vector<16x32xf32>
      %119 = arith.index_cast %arg21 : i32 to index
      %c0_52 = arith.constant 0 : index
      %c0_53 = arith.constant 0 : index
      %120 = vector.load %arg5[%119, %c0_52, %c0_53] : memref<4x1x32xf32, #tpu.memory_space<vmem>>, vector<1x1x32xf32>
      %121 = vector.shape_cast %120 : vector<1x1x32xf32> to vector<1x32xf32>
      %122 = vector.broadcast %121 : vector<1x32xf32> to vector<16x32xf32>
      %123 = arith.addf %118, %122 : vector<16x32xf32>
      %124 = arith.index_cast %arg21 : i32 to index
      %c0_54 = arith.constant 0 : index
      %c0_55 = arith.constant 0 : index
      %125 = vector.load %arg8[%124, %c0_54, %c0_55] : memref<4x32x32xbf16, #tpu.memory_space<vmem>>, vector<1x32x32xbf16>
      %126 = vector.shape_cast %125 : vector<1x32x32xbf16> to vector<32x32xbf16>
      %127 = arith.truncf %113 : vector<16x32xf32> to vector<16x32xbf16>
      %cst_56 = arith.constant dense<0.000000e+00> : vector<16x32xf32>
      %128 = tpu.matmul %127, %126, %cst_56 {dimension_numbers = #tpu.dot_dimension_numbers<[1], [0], [0], [1], [0, 0, 1, 1], [], []>} : vector<16x32xbf16>, vector<32x32xbf16>, vector<16x32xf32> -> vector<16x32xf32>
      %129 = arith.index_cast %arg21 : i32 to index
      %c0_57 = arith.constant 0 : index
      %c0_58 = arith.constant 0 : index
      %130 = vector.load %arg9[%129, %c0_57, %c0_58] : memref<4x1x32xf32, #tpu.memory_space<vmem>>, vector<1x1x32xf32>
      %131 = vector.shape_cast %130 : vector<1x1x32xf32> to vector<1x32xf32>
      %132 = vector.broadcast %131 : vector<1x32xf32> to vector<16x32xf32>
      %133 = arith.addf %128, %132 : vector<16x32xf32>
      %cst_59 = arith.constant 0.353553385 : f32
      %134 = vector.broadcast %cst_59 : f32 to vector<16x32xf32>
      %135 = arith.mulf %133, %134 : vector<16x32xf32>
      %136 = arith.index_cast %arg21 : i32 to index
      %c0_60 = arith.constant 0 : index
      %c0_61 = arith.constant 0 : index
      %137 = vector.load %arg10[%136, %c0_60, %c0_61] : memref<4x32x64xbf16, #tpu.memory_space<vmem>>, vector<1x32x64xbf16>
      %138 = vector.shape_cast %137 : vector<1x32x64xbf16> to vector<32x64xbf16>
      %139 = arith.truncf %123 : vector<16x32xf32> to vector<16x32xbf16>
      %cst_62 = arith.constant dense<0.000000e+00> : vector<16x64xf32>
      %140 = tpu.matmul %139, %138, %cst_62 {dimension_numbers = #tpu.dot_dimension_numbers<[1], [0], [0], [1], [0, 0, 1, 1], [], []>} : vector<16x32xbf16>, vector<32x64xbf16>, vector<16x64xf32> -> vector<16x64xf32>
      %141 = arith.index_cast %arg21 : i32 to index
      %c0_63 = arith.constant 0 : index
      %c0_64 = arith.constant 0 : index
      %142 = vector.load %arg11[%141, %c0_63, %c0_64] : memref<4x1x64xf32, #tpu.memory_space<vmem>>, vector<1x1x64xf32>
      %143 = vector.shape_cast %142 : vector<1x1x64xf32> to vector<1x64xf32>
      %144 = vector.broadcast %143 : vector<1x64xf32> to vector<16x64xf32>
      %145 = arith.addf %140, %144 : vector<16x64xf32>
      %146 = vector.extract_strided_slice %145 {offsets = [0, 0], sizes = [16, 32], strides = [1, 1]} : vector<16x64xf32> to vector<16x32xf32>
      %147 = arith.truncf %146 : vector<16x32xf32> to vector<16x32xbf16>
      %148 = vector.extract_strided_slice %145 {offsets = [0, 32], sizes = [16, 32], strides = [1, 1]} : vector<16x64xf32> to vector<16x32xf32>
      %149 = arith.truncf %148 : vector<16x32xf32> to vector<16x32xbf16>
      %150 = arith.truncf %135 : vector<16x32xf32> to vector<16x32xbf16>
      %151 = vector.extract_strided_slice %150 {offsets = [0, 0], sizes = [8, 32], strides = [1, 1]} : vector<16x32xbf16> to vector<8x32xbf16>
      %152 = vector.extract_strided_slice %147 {offsets = [0, 0], sizes = [8, 32], strides = [1, 1]} : vector<16x32xbf16> to vector<8x32xbf16>
      %153 = vector.extract_strided_slice %149 {offsets = [0, 0], sizes = [8, 32], strides = [1, 1]} : vector<16x32xbf16> to vector<8x32xbf16>
      %154 = vector.extract_strided_slice %151 {offsets = [0, 0], sizes = [8, 8], strides = [1, 1]} : vector<8x32xbf16> to vector<8x8xbf16>
      %155 = vector.extract_strided_slice %152 {offsets = [0, 0], sizes = [8, 8], strides = [1, 1]} : vector<8x32xbf16> to vector<8x8xbf16>
      %cst_65 = arith.constant dense<0.000000e+00> : vector<8x8xf32>
      %156 = tpu.matmul %154, %155, %cst_65 {dimension_numbers = #tpu.dot_dimension_numbers<[1], [1], [0], [0], [0, 0, 1, 0], [], []>} : vector<8x8xbf16>, vector<8x8xbf16>, vector<8x8xf32> -> vector<8x8xf32>
      %cst_66 = arith.constant dense<0xFF800000> : vector<8xf32>
      %157 = vector.multi_reduction <maximumf>, %156, %cst_66 [1] : vector<8x8xf32> to vector<8xf32>
      %158 = vector.shape_cast %157 : vector<8xf32> to vector<8x1xf32>
      %159 = vector.broadcast %158 : vector<8x1xf32> to vector<8x8xf32>
      %160 = arith.subf %156, %159 : vector<8x8xf32>
      %161 = math.exp %160 : vector<8x8xf32>
      %cst_67 = arith.constant dense<0.000000e+00> : vector<8xf32>
      %162 = vector.multi_reduction <add>, %161, %cst_67 [1] : vector<8x8xf32> to vector<8xf32>
      %163 = vector.shape_cast %162 : vector<8xf32> to vector<8x1xf32>
      %164 = tpu.reciprocal %163 {approx = true} : vector<8x1xf32> -> vector<8x1xf32>
      %165 = vector.broadcast %164 : vector<8x1xf32> to vector<8x8xf32>
      %166 = arith.mulf %161, %165 : vector<8x8xf32>
      %167 = arith.truncf %166 : vector<8x8xf32> to vector<8x8xbf16>
      %168 = vector.extract_strided_slice %153 {offsets = [0, 0], sizes = [8, 8], strides = [1, 1]} : vector<8x32xbf16> to vector<8x8xbf16>
      %cst_68 = arith.constant dense<0.000000e+00> : vector<8x8xf32>
      %169 = tpu.matmul %167, %168, %cst_68 {dimension_numbers = #tpu.dot_dimension_numbers<[1], [0], [0], [1], [0, 0, 1, 1], [], []>} : vector<8x8xbf16>, vector<8x8xbf16>, vector<8x8xf32> -> vector<8x8xf32>
      %170 = vector.extract_strided_slice %151 {offsets = [0, 8], sizes = [8, 8], strides = [1, 1]} : vector<8x32xbf16> to vector<8x8xbf16>
      %171 = vector.extract_strided_slice %152 {offsets = [0, 8], sizes = [8, 8], strides = [1, 1]} : vector<8x32xbf16> to vector<8x8xbf16>
      %cst_69 = arith.constant dense<0.000000e+00> : vector<8x8xf32>
      %172 = tpu.matmul %170, %171, %cst_69 {dimension_numbers = #tpu.dot_dimension_numbers<[1], [1], [0], [0], [0, 0, 1, 0], [], []>} : vector<8x8xbf16>, vector<8x8xbf16>, vector<8x8xf32> -> vector<8x8xf32>
      %cst_70 = arith.constant dense<0xFF800000> : vector<8xf32>
      %173 = vector.multi_reduction <maximumf>, %172, %cst_70 [1] : vector<8x8xf32> to vector<8xf32>
      %174 = vector.shape_cast %173 : vector<8xf32> to vector<8x1xf32>
      %175 = vector.broadcast %174 : vector<8x1xf32> to vector<8x8xf32>
      %176 = arith.subf %172, %175 : vector<8x8xf32>
      %177 = math.exp %176 : vector<8x8xf32>
      %cst_71 = arith.constant dense<0.000000e+00> : vector<8xf32>
      %178 = vector.multi_reduction <add>, %177, %cst_71 [1] : vector<8x8xf32> to vector<8xf32>
      %179 = vector.shape_cast %178 : vector<8xf32> to vector<8x1xf32>
      %180 = tpu.reciprocal %179 {approx = true} : vector<8x1xf32> -> vector<8x1xf32>
      %181 = vector.broadcast %180 : vector<8x1xf32> to vector<8x8xf32>
      %182 = arith.mulf %177, %181 : vector<8x8xf32>
      %183 = arith.truncf %182 : vector<8x8xf32> to vector<8x8xbf16>
      %184 = vector.extract_strided_slice %153 {offsets = [0, 8], sizes = [8, 8], strides = [1, 1]} : vector<8x32xbf16> to vector<8x8xbf16>
      %cst_72 = arith.constant dense<0.000000e+00> : vector<8x8xf32>
      %185 = tpu.matmul %183, %184, %cst_72 {dimension_numbers = #tpu.dot_dimension_numbers<[1], [0], [0], [1], [0, 0, 1, 1], [], []>} : vector<8x8xbf16>, vector<8x8xbf16>, vector<8x8xf32> -> vector<8x8xf32>
      %186 = vector.extract_strided_slice %151 {offsets = [0, 16], sizes = [8, 8], strides = [1, 1]} : vector<8x32xbf16> to vector<8x8xbf16>
      %187 = vector.extract_strided_slice %152 {offsets = [0, 16], sizes = [8, 8], strides = [1, 1]} : vector<8x32xbf16> to vector<8x8xbf16>
      %cst_73 = arith.constant dense<0.000000e+00> : vector<8x8xf32>
      %188 = tpu.matmul %186, %187, %cst_73 {dimension_numbers = #tpu.dot_dimension_numbers<[1], [1], [0], [0], [0, 0, 1, 0], [], []>} : vector<8x8xbf16>, vector<8x8xbf16>, vector<8x8xf32> -> vector<8x8xf32>
      %cst_74 = arith.constant dense<0xFF800000> : vector<8xf32>
      %189 = vector.multi_reduction <maximumf>, %188, %cst_74 [1] : vector<8x8xf32> to vector<8xf32>
      %190 = vector.shape_cast %189 : vector<8xf32> to vector<8x1xf32>
      %191 = vector.broadcast %190 : vector<8x1xf32> to vector<8x8xf32>
      %192 = arith.subf %188, %191 : vector<8x8xf32>
      %193 = math.exp %192 : vector<8x8xf32>
      %cst_75 = arith.constant dense<0.000000e+00> : vector<8xf32>
      %194 = vector.multi_reduction <add>, %193, %cst_75 [1] : vector<8x8xf32> to vector<8xf32>
      %195 = vector.shape_cast %194 : vector<8xf32> to vector<8x1xf32>
      %196 = tpu.reciprocal %195 {approx = true} : vector<8x1xf32> -> vector<8x1xf32>
      %197 = vector.broadcast %196 : vector<8x1xf32> to vector<8x8xf32>
      %198 = arith.mulf %193, %197 : vector<8x8xf32>
      %199 = arith.truncf %198 : vector<8x8xf32> to vector<8x8xbf16>
      %200 = vector.extract_strided_slice %153 {offsets = [0, 16], sizes = [8, 8], strides = [1, 1]} : vector<8x32xbf16> to vector<8x8xbf16>
      %cst_76 = arith.constant dense<0.000000e+00> : vector<8x8xf32>
      %201 = tpu.matmul %199, %200, %cst_76 {dimension_numbers = #tpu.dot_dimension_numbers<[1], [0], [0], [1], [0, 0, 1, 1], [], []>} : vector<8x8xbf16>, vector<8x8xbf16>, vector<8x8xf32> -> vector<8x8xf32>
      %202 = vector.extract_strided_slice %151 {offsets = [0, 24], sizes = [8, 8], strides = [1, 1]} : vector<8x32xbf16> to vector<8x8xbf16>
      %203 = vector.extract_strided_slice %152 {offsets = [0, 24], sizes = [8, 8], strides = [1, 1]} : vector<8x32xbf16> to vector<8x8xbf16>
      %cst_77 = arith.constant dense<0.000000e+00> : vector<8x8xf32>
      %204 = tpu.matmul %202, %203, %cst_77 {dimension_numbers = #tpu.dot_dimension_numbers<[1], [1], [0], [0], [0, 0, 1, 0], [], []>} : vector<8x8xbf16>, vector<8x8xbf16>, vector<8x8xf32> -> vector<8x8xf32>
      %cst_78 = arith.constant dense<0xFF800000> : vector<8xf32>
      %205 = vector.multi_reduction <maximumf>, %204, %cst_78 [1] : vector<8x8xf32> to vector<8xf32>
      %206 = vector.shape_cast %205 : vector<8xf32> to vector<8x1xf32>
      %207 = vector.broadcast %206 : vector<8x1xf32> to vector<8x8xf32>
      %208 = arith.subf %204, %207 : vector<8x8xf32>
      %209 = math.exp %208 : vector<8x8xf32>
      %cst_79 = arith.constant dense<0.000000e+00> : vector<8xf32>
      %210 = vector.multi_reduction <add>, %209, %cst_79 [1] : vector<8x8xf32> to vector<8xf32>
      %211 = vector.shape_cast %210 : vector<8xf32> to vector<8x1xf32>
      %212 = tpu.reciprocal %211 {approx = true} : vector<8x1xf32> -> vector<8x1xf32>
      %213 = vector.broadcast %212 : vector<8x1xf32> to vector<8x8xf32>
      %214 = arith.mulf %209, %213 : vector<8x8xf32>
      %215 = arith.truncf %214 : vector<8x8xf32> to vector<8x8xbf16>
      %216 = vector.extract_strided_slice %153 {offsets = [0, 24], sizes = [8, 8], strides = [1, 1]} : vector<8x32xbf16> to vector<8x8xbf16>
      %cst_80 = arith.constant dense<0.000000e+00> : vector<8x8xf32>
      %217 = tpu.matmul %215, %216, %cst_80 {dimension_numbers = #tpu.dot_dimension_numbers<[1], [0], [0], [1], [0, 0, 1, 1], [], []>} : vector<8x8xbf16>, vector<8x8xbf16>, vector<8x8xf32> -> vector<8x8xf32>
      %218 = tpu.concatenate %169, %185, %201, %217 in 1 : vector<8x8xf32>, vector<8x8xf32>, vector<8x8xf32>, vector<8x8xf32> -> vector<8x32xf32>
      %219 = vector.extract_strided_slice %150 {offsets = [8, 0], sizes = [8, 32], strides = [1, 1]} : vector<16x32xbf16> to vector<8x32xbf16>
      %220 = vector.extract_strided_slice %147 {offsets = [8, 0], sizes = [8, 32], strides = [1, 1]} : vector<16x32xbf16> to vector<8x32xbf16>
      %221 = vector.extract_strided_slice %149 {offsets = [8, 0], sizes = [8, 32], strides = [1, 1]} : vector<16x32xbf16> to vector<8x32xbf16>
      %222 = vector.extract_strided_slice %219 {offsets = [0, 0], sizes = [8, 8], strides = [1, 1]} : vector<8x32xbf16> to vector<8x8xbf16>
      %223 = vector.extract_strided_slice %220 {offsets = [0, 0], sizes = [8, 8], strides = [1, 1]} : vector<8x32xbf16> to vector<8x8xbf16>
      %cst_81 = arith.constant dense<0.000000e+00> : vector<8x8xf32>
      %224 = tpu.matmul %222, %223, %cst_81 {dimension_numbers = #tpu.dot_dimension_numbers<[1], [1], [0], [0], [0, 0, 1, 0], [], []>} : vector<8x8xbf16>, vector<8x8xbf16>, vector<8x8xf32> -> vector<8x8xf32>
      %cst_82 = arith.constant dense<0xFF800000> : vector<8xf32>
      %225 = vector.multi_reduction <maximumf>, %224, %cst_82 [1] : vector<8x8xf32> to vector<8xf32>
      %226 = vector.shape_cast %225 : vector<8xf32> to vector<8x1xf32>
      %227 = vector.broadcast %226 : vector<8x1xf32> to vector<8x8xf32>
      %228 = arith.subf %224, %227 : vector<8x8xf32>
      %229 = math.exp %228 : vector<8x8xf32>
      %cst_83 = arith.constant dense<0.000000e+00> : vector<8xf32>
      %230 = vector.multi_reduction <add>, %229, %cst_83 [1] : vector<8x8xf32> to vector<8xf32>
      %231 = vector.shape_cast %230 : vector<8xf32> to vector<8x1xf32>
      %232 = tpu.reciprocal %231 {approx = true} : vector<8x1xf32> -> vector<8x1xf32>
      %233 = vector.broadcast %232 : vector<8x1xf32> to vector<8x8xf32>
      %234 = arith.mulf %229, %233 : vector<8x8xf32>
      %235 = arith.truncf %234 : vector<8x8xf32> to vector<8x8xbf16>
      %236 = vector.extract_strided_slice %221 {offsets = [0, 0], sizes = [8, 8], strides = [1, 1]} : vector<8x32xbf16> to vector<8x8xbf16>
      %cst_84 = arith.constant dense<0.000000e+00> : vector<8x8xf32>
      %237 = tpu.matmul %235, %236, %cst_84 {dimension_numbers = #tpu.dot_dimension_numbers<[1], [0], [0], [1], [0, 0, 1, 1], [], []>} : vector<8x8xbf16>, vector<8x8xbf16>, vector<8x8xf32> -> vector<8x8xf32>
      %238 = vector.extract_strided_slice %219 {offsets = [0, 8], sizes = [8, 8], strides = [1, 1]} : vector<8x32xbf16> to vector<8x8xbf16>
      %239 = vector.extract_strided_slice %220 {offsets = [0, 8], sizes = [8, 8], strides = [1, 1]} : vector<8x32xbf16> to vector<8x8xbf16>
      %cst_85 = arith.constant dense<0.000000e+00> : vector<8x8xf32>
      %240 = tpu.matmul %238, %239, %cst_85 {dimension_numbers = #tpu.dot_dimension_numbers<[1], [1], [0], [0], [0, 0, 1, 0], [], []>} : vector<8x8xbf16>, vector<8x8xbf16>, vector<8x8xf32> -> vector<8x8xf32>
      %cst_86 = arith.constant dense<0xFF800000> : vector<8xf32>
      %241 = vector.multi_reduction <maximumf>, %240, %cst_86 [1] : vector<8x8xf32> to vector<8xf32>
      %242 = vector.shape_cast %241 : vector<8xf32> to vector<8x1xf32>
      %243 = vector.broadcast %242 : vector<8x1xf32> to vector<8x8xf32>
      %244 = arith.subf %240, %243 : vector<8x8xf32>
      %245 = math.exp %244 : vector<8x8xf32>
      %cst_87 = arith.constant dense<0.000000e+00> : vector<8xf32>
      %246 = vector.multi_reduction <add>, %245, %cst_87 [1] : vector<8x8xf32> to vector<8xf32>
      %247 = vector.shape_cast %246 : vector<8xf32> to vector<8x1xf32>
      %248 = tpu.reciprocal %247 {approx = true} : vector<8x1xf32> -> vector<8x1xf32>
      %249 = vector.broadcast %248 : vector<8x1xf32> to vector<8x8xf32>
      %250 = arith.mulf %245, %249 : vector<8x8xf32>
      %251 = arith.truncf %250 : vector<8x8xf32> to vector<8x8xbf16>
      %252 = vector.extract_strided_slice %221 {offsets = [0, 8], sizes = [8, 8], strides = [1, 1]} : vector<8x32xbf16> to vector<8x8xbf16>
      %cst_88 = arith.constant dense<0.000000e+00> : vector<8x8xf32>
      %253 = tpu.matmul %251, %252, %cst_88 {dimension_numbers = #tpu.dot_dimension_numbers<[1], [0], [0], [1], [0, 0, 1, 1], [], []>} : vector<8x8xbf16>, vector<8x8xbf16>, vector<8x8xf32> -> vector<8x8xf32>
      %254 = vector.extract_strided_slice %219 {offsets = [0, 16], sizes = [8, 8], strides = [1, 1]} : vector<8x32xbf16> to vector<8x8xbf16>
      %255 = vector.extract_strided_slice %220 {offsets = [0, 16], sizes = [8, 8], strides = [1, 1]} : vector<8x32xbf16> to vector<8x8xbf16>
      %cst_89 = arith.constant dense<0.000000e+00> : vector<8x8xf32>
      %256 = tpu.matmul %254, %255, %cst_89 {dimension_numbers = #tpu.dot_dimension_numbers<[1], [1], [0], [0], [0, 0, 1, 0], [], []>} : vector<8x8xbf16>, vector<8x8xbf16>, vector<8x8xf32> -> vector<8x8xf32>
      %cst_90 = arith.constant dense<0xFF800000> : vector<8xf32>
      %257 = vector.multi_reduction <maximumf>, %256, %cst_90 [1] : vector<8x8xf32> to vector<8xf32>
      %258 = vector.shape_cast %257 : vector<8xf32> to vector<8x1xf32>
      %259 = vector.broadcast %258 : vector<8x1xf32> to vector<8x8xf32>
      %260 = arith.subf %256, %259 : vector<8x8xf32>
      %261 = math.exp %260 : vector<8x8xf32>
      %cst_91 = arith.constant dense<0.000000e+00> : vector<8xf32>
      %262 = vector.multi_reduction <add>, %261, %cst_91 [1] : vector<8x8xf32> to vector<8xf32>
      %263 = vector.shape_cast %262 : vector<8xf32> to vector<8x1xf32>
      %264 = tpu.reciprocal %263 {approx = true} : vector<8x1xf32> -> vector<8x1xf32>
      %265 = vector.broadcast %264 : vector<8x1xf32> to vector<8x8xf32>
      %266 = arith.mulf %261, %265 : vector<8x8xf32>
      %267 = arith.truncf %266 : vector<8x8xf32> to vector<8x8xbf16>
      %268 = vector.extract_strided_slice %221 {offsets = [0, 16], sizes = [8, 8], strides = [1, 1]} : vector<8x32xbf16> to vector<8x8xbf16>
      %cst_92 = arith.constant dense<0.000000e+00> : vector<8x8xf32>
      %269 = tpu.matmul %267, %268, %cst_92 {dimension_numbers = #tpu.dot_dimension_numbers<[1], [0], [0], [1], [0, 0, 1, 1], [], []>} : vector<8x8xbf16>, vector<8x8xbf16>, vector<8x8xf32> -> vector<8x8xf32>
      %270 = vector.extract_strided_slice %219 {offsets = [0, 24], sizes = [8, 8], strides = [1, 1]} : vector<8x32xbf16> to vector<8x8xbf16>
      %271 = vector.extract_strided_slice %220 {offsets = [0, 24], sizes = [8, 8], strides = [1, 1]} : vector<8x32xbf16> to vector<8x8xbf16>
      %cst_93 = arith.constant dense<0.000000e+00> : vector<8x8xf32>
      %272 = tpu.matmul %270, %271, %cst_93 {dimension_numbers = #tpu.dot_dimension_numbers<[1], [1], [0], [0], [0, 0, 1, 0], [], []>} : vector<8x8xbf16>, vector<8x8xbf16>, vector<8x8xf32> -> vector<8x8xf32>
      %cst_94 = arith.constant dense<0xFF800000> : vector<8xf32>
      %273 = vector.multi_reduction <maximumf>, %272, %cst_94 [1] : vector<8x8xf32> to vector<8xf32>
      %274 = vector.shape_cast %273 : vector<8xf32> to vector<8x1xf32>
      %275 = vector.broadcast %274 : vector<8x1xf32> to vector<8x8xf32>
      %276 = arith.subf %272, %275 : vector<8x8xf32>
      %277 = math.exp %276 : vector<8x8xf32>
      %cst_95 = arith.constant dense<0.000000e+00> : vector<8xf32>
      %278 = vector.multi_reduction <add>, %277, %cst_95 [1] : vector<8x8xf32> to vector<8xf32>
      %279 = vector.shape_cast %278 : vector<8xf32> to vector<8x1xf32>
      %280 = tpu.reciprocal %279 {approx = true} : vector<8x1xf32> -> vector<8x1xf32>
      %281 = vector.broadcast %280 : vector<8x1xf32> to vector<8x8xf32>
      %282 = arith.mulf %277, %281 : vector<8x8xf32>
      %283 = arith.truncf %282 : vector<8x8xf32> to vector<8x8xbf16>
      %284 = vector.extract_strided_slice %221 {offsets = [0, 24], sizes = [8, 8], strides = [1, 1]} : vector<8x32xbf16> to vector<8x8xbf16>
      %cst_96 = arith.constant dense<0.000000e+00> : vector<8x8xf32>
      %285 = tpu.matmul %283, %284, %cst_96 {dimension_numbers = #tpu.dot_dimension_numbers<[1], [0], [0], [1], [0, 0, 1, 1], [], []>} : vector<8x8xbf16>, vector<8x8xbf16>, vector<8x8xf32> -> vector<8x8xf32>
      %286 = tpu.concatenate %237, %253, %269, %285 in 1 : vector<8x8xf32>, vector<8x8xf32>, vector<8x8xf32>, vector<8x8xf32> -> vector<8x32xf32>
      %287 = tpu.concatenate %218, %286 in 0 : vector<8x32xf32>, vector<8x32xf32> -> vector<16x32xf32>
      %288 = arith.index_cast %arg21 : i32 to index
      %c0_97 = arith.constant 0 : index
      %c0_98 = arith.constant 0 : index
      %289 = vector.load %arg12[%288, %c0_97, %c0_98] : memref<4x32x32xbf16, #tpu.memory_space<vmem>>, vector<1x32x32xbf16>
      %290 = vector.shape_cast %289 : vector<1x32x32xbf16> to vector<32x32xbf16>
      %291 = arith.truncf %287 : vector<16x32xf32> to vector<16x32xbf16>
      %cst_99 = arith.constant dense<0.000000e+00> : vector<16x32xf32>
      %292 = tpu.matmul %291, %290, %cst_99 {dimension_numbers = #tpu.dot_dimension_numbers<[1], [0], [0], [1], [0, 0, 1, 1], [], []>} : vector<16x32xbf16>, vector<32x32xbf16>, vector<16x32xf32> -> vector<16x32xf32>
      %293 = arith.index_cast %arg21 : i32 to index
      %c0_100 = arith.constant 0 : index
      %c0_101 = arith.constant 0 : index
      %294 = vector.load %arg13[%293, %c0_100, %c0_101] : memref<4x1x32xf32, #tpu.memory_space<vmem>>, vector<1x1x32xf32>
      %295 = vector.shape_cast %294 : vector<1x1x32xf32> to vector<1x32xf32>
      %296 = vector.broadcast %295 : vector<1x32xf32> to vector<16x32xf32>
      %297 = arith.addf %292, %296 : vector<16x32xf32>
      %298 = arith.addf %arg22, %297 : vector<16x32xf32>
      %cst_102 = arith.constant dense<0.000000e+00> : vector<16xf32>
      %299 = vector.multi_reduction <add>, %298, %cst_102 [1] : vector<16x32xf32> to vector<16xf32>
      %300 = vector.shape_cast %299 : vector<16xf32> to vector<16x1xf32>
      %cst_103 = arith.constant 3.200000e+01 : f32
      %301 = vector.broadcast %cst_103 : f32 to vector<16x1xf32>
      %302 = arith.divf %300, %301 : vector<16x1xf32>
      %303 = vector.broadcast %302 : vector<16x1xf32> to vector<16x32xf32>
      %304 = arith.subf %298, %303 : vector<16x32xf32>
      %305 = arith.mulf %304, %304 : vector<16x32xf32>
      %cst_104 = arith.constant dense<0.000000e+00> : vector<16xf32>
      %306 = vector.multi_reduction <add>, %305, %cst_104 [1] : vector<16x32xf32> to vector<16xf32>
      %307 = vector.shape_cast %306 : vector<16xf32> to vector<16x1xf32>
      %cst_105 = arith.constant 3.200000e+01 : f32
      %308 = vector.broadcast %cst_105 : f32 to vector<16x1xf32>
      %309 = arith.divf %307, %308 : vector<16x1xf32>
      %310 = vector.broadcast %302 : vector<16x1xf32> to vector<16x32xf32>
      %311 = arith.subf %298, %310 : vector<16x32xf32>
      %cst_106 = arith.constant 9.99999974E-6 : f32
      %312 = vector.broadcast %cst_106 : f32 to vector<16x1xf32>
      %313 = arith.addf %309, %312 : vector<16x1xf32>
      %314 = math.rsqrt %313 : vector<16x1xf32>
      %315 = vector.broadcast %314 : vector<16x1xf32> to vector<16x32xf32>
      %316 = arith.mulf %311, %315 : vector<16x32xf32>
      %317 = arith.index_cast %arg21 : i32 to index
      %c0_107 = arith.constant 0 : index
      %c0_108 = arith.constant 0 : index
      %318 = vector.load %arg6[%317, %c0_107, %c0_108] : memref<4x1x32xf32, #tpu.memory_space<vmem>>, vector<1x1x32xf32>
      %319 = vector.shape_cast %318 : vector<1x1x32xf32> to vector<1x32xf32>
      %320 = vector.broadcast %319 : vector<1x32xf32> to vector<16x32xf32>
      %321 = arith.mulf %316, %320 : vector<16x32xf32>
      %322 = arith.index_cast %arg21 : i32 to index
      %c0_109 = arith.constant 0 : index
      %c0_110 = arith.constant 0 : index
      %323 = vector.load %arg7[%322, %c0_109, %c0_110] : memref<4x1x32xf32, #tpu.memory_space<vmem>>, vector<1x1x32xf32>
      %324 = vector.shape_cast %323 : vector<1x1x32xf32> to vector<1x32xf32>
      %325 = vector.broadcast %324 : vector<1x32xf32> to vector<16x32xf32>
      %326 = arith.addf %321, %325 : vector<16x32xf32>
      %327 = arith.index_cast %arg21 : i32 to index
      %c0_111 = arith.constant 0 : index
      %c0_112 = arith.constant 0 : index
      %328 = vector.load %arg14[%327, %c0_111, %c0_112] : memref<4x32x128xbf16, #tpu.memory_space<vmem>>, vector<1x32x128xbf16>
      %329 = vector.shape_cast %328 : vector<1x32x128xbf16> to vector<32x128xbf16>
      %330 = arith.truncf %326 : vector<16x32xf32> to vector<16x32xbf16>
      %cst_113 = arith.constant dense<0.000000e+00> : vector<16x128xf32>
      %331 = tpu.matmul %330, %329, %cst_113 {dimension_numbers = #tpu.dot_dimension_numbers<[1], [0], [0], [1], [0, 0, 1, 1], [], []>} : vector<16x32xbf16>, vector<32x128xbf16>, vector<16x128xf32> -> vector<16x128xf32>
      %332 = arith.index_cast %arg21 : i32 to index
      %c0_114 = arith.constant 0 : index
      %c0_115 = arith.constant 0 : index
      %333 = vector.load %arg15[%332, %c0_114, %c0_115] : memref<4x1x128xf32, #tpu.memory_space<vmem>>, vector<1x1x128xf32>
      %334 = vector.shape_cast %333 : vector<1x1x128xf32> to vector<1x128xf32>
      %335 = vector.broadcast %334 : vector<1x128xf32> to vector<16x128xf32>
      %336 = arith.addf %331, %335 : vector<16x128xf32>
      %cst_116 = arith.constant 0.000000e+00 : f32
      %337 = vector.broadcast %cst_116 : f32 to vector<16x128xf32>
      %338 = arith.maximumf %336, %337 : vector<16x128xf32>
      %339 = arith.index_cast %arg21 : i32 to index
      %c0_117 = arith.constant 0 : index
      %c0_118 = arith.constant 0 : index
      %340 = vector.load %arg16[%339, %c0_117, %c0_118] : memref<4x128x32xbf16, #tpu.memory_space<vmem>>, vector<1x128x32xbf16>
      %341 = vector.shape_cast %340 : vector<1x128x32xbf16> to vector<128x32xbf16>
      %342 = arith.truncf %338 : vector<16x128xf32> to vector<16x128xbf16>
      %cst_119 = arith.constant dense<0.000000e+00> : vector<16x32xf32>
      %343 = tpu.matmul %342, %341, %cst_119 {dimension_numbers = #tpu.dot_dimension_numbers<[1], [0], [0], [1], [0, 0, 1, 1], [], []>} : vector<16x128xbf16>, vector<128x32xbf16>, vector<16x32xf32> -> vector<16x32xf32>
      %344 = arith.addf %298, %343 : vector<16x32xf32>
      %345 = arith.index_cast %arg21 : i32 to index
      %c0_120 = arith.constant 0 : index
      %c0_121 = arith.constant 0 : index
      %346 = vector.load %arg17[%345, %c0_120, %c0_121] : memref<4x1x32xf32, #tpu.memory_space<vmem>>, vector<1x1x32xf32>
      %347 = vector.shape_cast %346 : vector<1x1x32xf32> to vector<1x32xf32>
      %348 = vector.broadcast %347 : vector<1x32xf32> to vector<16x32xf32>
      %349 = arith.addf %344, %348 : vector<16x32xf32>
      scf.yield %349 : vector<16x32xf32>
    }
    %c2_i32_11 = arith.constant 2 : i32
    %cst_12 = arith.constant dense<0.000000e+00> : vector<16xf32>
    %25 = vector.multi_reduction <add>, %24, %cst_12 [1] : vector<16x32xf32> to vector<16xf32>
    %26 = vector.shape_cast %25 : vector<16xf32> to vector<16x1xf32>
    %cst_13 = arith.constant 3.200000e+01 : f32
    %27 = vector.broadcast %cst_13 : f32 to vector<16x1xf32>
    %28 = arith.divf %26, %27 : vector<16x1xf32>
    %29 = vector.broadcast %28 : vector<16x1xf32> to vector<16x32xf32>
    %30 = arith.subf %24, %29 : vector<16x32xf32>
    %31 = arith.mulf %30, %30 : vector<16x32xf32>
    %cst_14 = arith.constant dense<0.000000e+00> : vector<16xf32>
    %32 = vector.multi_reduction <add>, %31, %cst_14 [1] : vector<16x32xf32> to vector<16xf32>
    %33 = vector.shape_cast %32 : vector<16xf32> to vector<16x1xf32>
    %cst_15 = arith.constant 3.200000e+01 : f32
    %34 = vector.broadcast %cst_15 : f32 to vector<16x1xf32>
    %35 = arith.divf %33, %34 : vector<16x1xf32>
    %36 = vector.broadcast %28 : vector<16x1xf32> to vector<16x32xf32>
    %37 = arith.subf %24, %36 : vector<16x32xf32>
    %cst_16 = arith.constant 9.99999974E-6 : f32
    %38 = vector.broadcast %cst_16 : f32 to vector<16x1xf32>
    %39 = arith.addf %35, %38 : vector<16x1xf32>
    %40 = math.rsqrt %39 : vector<16x1xf32>
    %41 = vector.broadcast %40 : vector<16x1xf32> to vector<16x32xf32>
    %42 = arith.mulf %37, %41 : vector<16x32xf32>
    %c0_17 = arith.constant 0 : index
    %c0_18 = arith.constant 0 : index
    %c0_19 = arith.constant 0 : index
    %43 = vector.load %arg18[%c0_17, %c0_18, %c0_19] : memref<2x1x32xf32, #tpu.memory_space<vmem>>, vector<1x1x32xf32>
    %44 = vector.shape_cast %43 : vector<1x1x32xf32> to vector<1x32xf32>
    %45 = vector.broadcast %44 : vector<1x32xf32> to vector<16x32xf32>
    %46 = arith.mulf %42, %45 : vector<16x32xf32>
    %c0_20 = arith.constant 0 : index
    %c0_21 = arith.constant 0 : index
    %c0_22 = arith.constant 0 : index
    %47 = vector.load %arg19[%c0_20, %c0_21, %c0_22] : memref<2x1x32xf32, #tpu.memory_space<vmem>>, vector<1x1x32xf32>
    %48 = vector.shape_cast %47 : vector<1x1x32xf32> to vector<1x32xf32>
    %49 = vector.broadcast %48 : vector<1x32xf32> to vector<16x32xf32>
    %50 = arith.addf %46, %49 : vector<16x32xf32>
    %cst_23 = arith.constant 5.65685415 : f32
    %51 = vector.broadcast %cst_23 : f32 to vector<16x32xf32>
    %52 = arith.mulf %51, %50 : vector<16x32xf32>
    %53 = arith.addf %52, %0 : vector<16x32xf32>
    %c2_i32_24 = arith.constant 2 : i32
    %c2_i32_25 = arith.constant 2 : i32
    %54 = arith.addi %c2_i32_24, %c2_i32_25 : i32
    %c1_i32_26 = arith.constant 1 : i32
    %55 = scf.for %arg21 = %c2_i32_24 to %54 step %c1_i32_26 iter_args(%arg22 = %53) -> (vector<16x32xf32>)  : i32 {
      %cst_41 = arith.constant dense<0.000000e+00> : vector<16xf32>
      %86 = vector.multi_reduction <add>, %arg22, %cst_41 [1] : vector<16x32xf32> to vector<16xf32>
      %87 = vector.shape_cast %86 : vector<16xf32> to vector<16x1xf32>
      %cst_42 = arith.constant 3.200000e+01 : f32
      %88 = vector.broadcast %cst_42 : f32 to vector<16x1xf32>
      %89 = arith.divf %87, %88 : vector<16x1xf32>
      %90 = vector.broadcast %89 : vector<16x1xf32> to vector<16x32xf32>
      %91 = arith.subf %arg22, %90 : vector<16x32xf32>
      %92 = arith.mulf %91, %91 : vector<16x32xf32>
      %cst_43 = arith.constant dense<0.000000e+00> : vector<16xf32>
      %93 = vector.multi_reduction <add>, %92, %cst_43 [1] : vector<16x32xf32> to vector<16xf32>
      %94 = vector.shape_cast %93 : vector<16xf32> to vector<16x1xf32>
      %cst_44 = arith.constant 3.200000e+01 : f32
      %95 = vector.broadcast %cst_44 : f32 to vector<16x1xf32>
      %96 = arith.divf %94, %95 : vector<16x1xf32>
      %97 = vector.broadcast %89 : vector<16x1xf32> to vector<16x32xf32>
      %98 = arith.subf %arg22, %97 : vector<16x32xf32>
      %cst_45 = arith.constant 9.99999974E-6 : f32
      %99 = vector.broadcast %cst_45 : f32 to vector<16x1xf32>
      %100 = arith.addf %96, %99 : vector<16x1xf32>
      %101 = math.rsqrt %100 : vector<16x1xf32>
      %102 = vector.broadcast %101 : vector<16x1xf32> to vector<16x32xf32>
      %103 = arith.mulf %98, %102 : vector<16x32xf32>
      %104 = arith.index_cast %arg21 : i32 to index
      %c0_46 = arith.constant 0 : index
      %c0_47 = arith.constant 0 : index
      %105 = vector.load %arg4[%104, %c0_46, %c0_47] : memref<4x1x32xf32, #tpu.memory_space<vmem>>, vector<1x1x32xf32>
      %106 = vector.shape_cast %105 : vector<1x1x32xf32> to vector<1x32xf32>
      %107 = vector.broadcast %106 : vector<1x32xf32> to vector<16x32xf32>
      %108 = arith.mulf %103, %107 : vector<16x32xf32>
      %109 = arith.index_cast %arg21 : i32 to index
      %c0_48 = arith.constant 0 : index
      %c0_49 = arith.constant 0 : index
      %110 = vector.load %arg5[%109, %c0_48, %c0_49] : memref<4x1x32xf32, #tpu.memory_space<vmem>>, vector<1x1x32xf32>
      %111 = vector.shape_cast %110 : vector<1x1x32xf32> to vector<1x32xf32>
      %112 = vector.broadcast %111 : vector<1x32xf32> to vector<16x32xf32>
      %113 = arith.addf %108, %112 : vector<16x32xf32>
      %114 = arith.index_cast %arg21 : i32 to index
      %c0_50 = arith.constant 0 : index
      %c0_51 = arith.constant 0 : index
      %115 = vector.load %arg8[%114, %c0_50, %c0_51] : memref<4x32x32xbf16, #tpu.memory_space<vmem>>, vector<1x32x32xbf16>
      %116 = vector.shape_cast %115 : vector<1x32x32xbf16> to vector<32x32xbf16>
      %117 = arith.truncf %113 : vector<16x32xf32> to vector<16x32xbf16>
      %cst_52 = arith.constant dense<0.000000e+00> : vector<16x32xf32>
      %118 = tpu.matmul %117, %116, %cst_52 {dimension_numbers = #tpu.dot_dimension_numbers<[1], [0], [0], [1], [0, 0, 1, 1], [], []>} : vector<16x32xbf16>, vector<32x32xbf16>, vector<16x32xf32> -> vector<16x32xf32>
      %119 = arith.index_cast %arg21 : i32 to index
      %c0_53 = arith.constant 0 : index
      %c0_54 = arith.constant 0 : index
      %120 = vector.load %arg9[%119, %c0_53, %c0_54] : memref<4x1x32xf32, #tpu.memory_space<vmem>>, vector<1x1x32xf32>
      %121 = vector.shape_cast %120 : vector<1x1x32xf32> to vector<1x32xf32>
      %122 = vector.broadcast %121 : vector<1x32xf32> to vector<16x32xf32>
      %123 = arith.addf %118, %122 : vector<16x32xf32>
      %cst_55 = arith.constant 0.353553385 : f32
      %124 = vector.broadcast %cst_55 : f32 to vector<16x32xf32>
      %125 = arith.mulf %123, %124 : vector<16x32xf32>
      %126 = arith.index_cast %arg21 : i32 to index
      %c0_56 = arith.constant 0 : index
      %c0_57 = arith.constant 0 : index
      %127 = vector.load %arg10[%126, %c0_56, %c0_57] : memref<4x32x64xbf16, #tpu.memory_space<vmem>>, vector<1x32x64xbf16>
      %128 = vector.shape_cast %127 : vector<1x32x64xbf16> to vector<32x64xbf16>
      %129 = arith.truncf %113 : vector<16x32xf32> to vector<16x32xbf16>
      %cst_58 = arith.constant dense<0.000000e+00> : vector<16x64xf32>
      %130 = tpu.matmul %129, %128, %cst_58 {dimension_numbers = #tpu.dot_dimension_numbers<[1], [0], [0], [1], [0, 0, 1, 1], [], []>} : vector<16x32xbf16>, vector<32x64xbf16>, vector<16x64xf32> -> vector<16x64xf32>
      %131 = arith.index_cast %arg21 : i32 to index
      %c0_59 = arith.constant 0 : index
      %c0_60 = arith.constant 0 : index
      %132 = vector.load %arg11[%131, %c0_59, %c0_60] : memref<4x1x64xf32, #tpu.memory_space<vmem>>, vector<1x1x64xf32>
      %133 = vector.shape_cast %132 : vector<1x1x64xf32> to vector<1x64xf32>
      %134 = vector.broadcast %133 : vector<1x64xf32> to vector<16x64xf32>
      %135 = arith.addf %130, %134 : vector<16x64xf32>
      %136 = vector.extract_strided_slice %135 {offsets = [0, 0], sizes = [16, 32], strides = [1, 1]} : vector<16x64xf32> to vector<16x32xf32>
      %137 = arith.truncf %136 : vector<16x32xf32> to vector<16x32xbf16>
      %138 = vector.extract_strided_slice %135 {offsets = [0, 32], sizes = [16, 32], strides = [1, 1]} : vector<16x64xf32> to vector<16x32xf32>
      %139 = arith.truncf %138 : vector<16x32xf32> to vector<16x32xbf16>
      %140 = arith.truncf %125 : vector<16x32xf32> to vector<16x32xbf16>
      %141 = vector.extract_strided_slice %140 {offsets = [0, 0], sizes = [8, 32], strides = [1, 1]} : vector<16x32xbf16> to vector<8x32xbf16>
      %142 = vector.extract_strided_slice %137 {offsets = [0, 0], sizes = [8, 32], strides = [1, 1]} : vector<16x32xbf16> to vector<8x32xbf16>
      %143 = vector.extract_strided_slice %139 {offsets = [0, 0], sizes = [8, 32], strides = [1, 1]} : vector<16x32xbf16> to vector<8x32xbf16>
      %144 = vector.extract_strided_slice %141 {offsets = [0, 0], sizes = [8, 8], strides = [1, 1]} : vector<8x32xbf16> to vector<8x8xbf16>
      %145 = vector.extract_strided_slice %142 {offsets = [0, 0], sizes = [8, 8], strides = [1, 1]} : vector<8x32xbf16> to vector<8x8xbf16>
      %cst_61 = arith.constant dense<0.000000e+00> : vector<8x8xf32>
      %146 = tpu.matmul %144, %145, %cst_61 {dimension_numbers = #tpu.dot_dimension_numbers<[1], [1], [0], [0], [0, 0, 1, 0], [], []>} : vector<8x8xbf16>, vector<8x8xbf16>, vector<8x8xf32> -> vector<8x8xf32>
      %cst_62 = arith.constant dense<0xFF800000> : vector<8xf32>
      %147 = vector.multi_reduction <maximumf>, %146, %cst_62 [1] : vector<8x8xf32> to vector<8xf32>
      %148 = vector.shape_cast %147 : vector<8xf32> to vector<8x1xf32>
      %149 = vector.broadcast %148 : vector<8x1xf32> to vector<8x8xf32>
      %150 = arith.subf %146, %149 : vector<8x8xf32>
      %151 = math.exp %150 : vector<8x8xf32>
      %cst_63 = arith.constant dense<0.000000e+00> : vector<8xf32>
      %152 = vector.multi_reduction <add>, %151, %cst_63 [1] : vector<8x8xf32> to vector<8xf32>
      %153 = vector.shape_cast %152 : vector<8xf32> to vector<8x1xf32>
      %154 = tpu.reciprocal %153 {approx = true} : vector<8x1xf32> -> vector<8x1xf32>
      %155 = vector.broadcast %154 : vector<8x1xf32> to vector<8x8xf32>
      %156 = arith.mulf %151, %155 : vector<8x8xf32>
      %157 = arith.truncf %156 : vector<8x8xf32> to vector<8x8xbf16>
      %158 = vector.extract_strided_slice %143 {offsets = [0, 0], sizes = [8, 8], strides = [1, 1]} : vector<8x32xbf16> to vector<8x8xbf16>
      %cst_64 = arith.constant dense<0.000000e+00> : vector<8x8xf32>
      %159 = tpu.matmul %157, %158, %cst_64 {dimension_numbers = #tpu.dot_dimension_numbers<[1], [0], [0], [1], [0, 0, 1, 1], [], []>} : vector<8x8xbf16>, vector<8x8xbf16>, vector<8x8xf32> -> vector<8x8xf32>
      %160 = vector.extract_strided_slice %141 {offsets = [0, 8], sizes = [8, 8], strides = [1, 1]} : vector<8x32xbf16> to vector<8x8xbf16>
      %161 = vector.extract_strided_slice %142 {offsets = [0, 8], sizes = [8, 8], strides = [1, 1]} : vector<8x32xbf16> to vector<8x8xbf16>
      %cst_65 = arith.constant dense<0.000000e+00> : vector<8x8xf32>
      %162 = tpu.matmul %160, %161, %cst_65 {dimension_numbers = #tpu.dot_dimension_numbers<[1], [1], [0], [0], [0, 0, 1, 0], [], []>} : vector<8x8xbf16>, vector<8x8xbf16>, vector<8x8xf32> -> vector<8x8xf32>
      %cst_66 = arith.constant dense<0xFF800000> : vector<8xf32>
      %163 = vector.multi_reduction <maximumf>, %162, %cst_66 [1] : vector<8x8xf32> to vector<8xf32>
      %164 = vector.shape_cast %163 : vector<8xf32> to vector<8x1xf32>
      %165 = vector.broadcast %164 : vector<8x1xf32> to vector<8x8xf32>
      %166 = arith.subf %162, %165 : vector<8x8xf32>
      %167 = math.exp %166 : vector<8x8xf32>
      %cst_67 = arith.constant dense<0.000000e+00> : vector<8xf32>
      %168 = vector.multi_reduction <add>, %167, %cst_67 [1] : vector<8x8xf32> to vector<8xf32>
      %169 = vector.shape_cast %168 : vector<8xf32> to vector<8x1xf32>
      %170 = tpu.reciprocal %169 {approx = true} : vector<8x1xf32> -> vector<8x1xf32>
      %171 = vector.broadcast %170 : vector<8x1xf32> to vector<8x8xf32>
      %172 = arith.mulf %167, %171 : vector<8x8xf32>
      %173 = arith.truncf %172 : vector<8x8xf32> to vector<8x8xbf16>
      %174 = vector.extract_strided_slice %143 {offsets = [0, 8], sizes = [8, 8], strides = [1, 1]} : vector<8x32xbf16> to vector<8x8xbf16>
      %cst_68 = arith.constant dense<0.000000e+00> : vector<8x8xf32>
      %175 = tpu.matmul %173, %174, %cst_68 {dimension_numbers = #tpu.dot_dimension_numbers<[1], [0], [0], [1], [0, 0, 1, 1], [], []>} : vector<8x8xbf16>, vector<8x8xbf16>, vector<8x8xf32> -> vector<8x8xf32>
      %176 = vector.extract_strided_slice %141 {offsets = [0, 16], sizes = [8, 8], strides = [1, 1]} : vector<8x32xbf16> to vector<8x8xbf16>
      %177 = vector.extract_strided_slice %142 {offsets = [0, 16], sizes = [8, 8], strides = [1, 1]} : vector<8x32xbf16> to vector<8x8xbf16>
      %cst_69 = arith.constant dense<0.000000e+00> : vector<8x8xf32>
      %178 = tpu.matmul %176, %177, %cst_69 {dimension_numbers = #tpu.dot_dimension_numbers<[1], [1], [0], [0], [0, 0, 1, 0], [], []>} : vector<8x8xbf16>, vector<8x8xbf16>, vector<8x8xf32> -> vector<8x8xf32>
      %cst_70 = arith.constant dense<0xFF800000> : vector<8xf32>
      %179 = vector.multi_reduction <maximumf>, %178, %cst_70 [1] : vector<8x8xf32> to vector<8xf32>
      %180 = vector.shape_cast %179 : vector<8xf32> to vector<8x1xf32>
      %181 = vector.broadcast %180 : vector<8x1xf32> to vector<8x8xf32>
      %182 = arith.subf %178, %181 : vector<8x8xf32>
      %183 = math.exp %182 : vector<8x8xf32>
      %cst_71 = arith.constant dense<0.000000e+00> : vector<8xf32>
      %184 = vector.multi_reduction <add>, %183, %cst_71 [1] : vector<8x8xf32> to vector<8xf32>
      %185 = vector.shape_cast %184 : vector<8xf32> to vector<8x1xf32>
      %186 = tpu.reciprocal %185 {approx = true} : vector<8x1xf32> -> vector<8x1xf32>
      %187 = vector.broadcast %186 : vector<8x1xf32> to vector<8x8xf32>
      %188 = arith.mulf %183, %187 : vector<8x8xf32>
      %189 = arith.truncf %188 : vector<8x8xf32> to vector<8x8xbf16>
      %190 = vector.extract_strided_slice %143 {offsets = [0, 16], sizes = [8, 8], strides = [1, 1]} : vector<8x32xbf16> to vector<8x8xbf16>
      %cst_72 = arith.constant dense<0.000000e+00> : vector<8x8xf32>
      %191 = tpu.matmul %189, %190, %cst_72 {dimension_numbers = #tpu.dot_dimension_numbers<[1], [0], [0], [1], [0, 0, 1, 1], [], []>} : vector<8x8xbf16>, vector<8x8xbf16>, vector<8x8xf32> -> vector<8x8xf32>
      %192 = vector.extract_strided_slice %141 {offsets = [0, 24], sizes = [8, 8], strides = [1, 1]} : vector<8x32xbf16> to vector<8x8xbf16>
      %193 = vector.extract_strided_slice %142 {offsets = [0, 24], sizes = [8, 8], strides = [1, 1]} : vector<8x32xbf16> to vector<8x8xbf16>
      %cst_73 = arith.constant dense<0.000000e+00> : vector<8x8xf32>
      %194 = tpu.matmul %192, %193, %cst_73 {dimension_numbers = #tpu.dot_dimension_numbers<[1], [1], [0], [0], [0, 0, 1, 0], [], []>} : vector<8x8xbf16>, vector<8x8xbf16>, vector<8x8xf32> -> vector<8x8xf32>
      %cst_74 = arith.constant dense<0xFF800000> : vector<8xf32>
      %195 = vector.multi_reduction <maximumf>, %194, %cst_74 [1] : vector<8x8xf32> to vector<8xf32>
      %196 = vector.shape_cast %195 : vector<8xf32> to vector<8x1xf32>
      %197 = vector.broadcast %196 : vector<8x1xf32> to vector<8x8xf32>
      %198 = arith.subf %194, %197 : vector<8x8xf32>
      %199 = math.exp %198 : vector<8x8xf32>
      %cst_75 = arith.constant dense<0.000000e+00> : vector<8xf32>
      %200 = vector.multi_reduction <add>, %199, %cst_75 [1] : vector<8x8xf32> to vector<8xf32>
      %201 = vector.shape_cast %200 : vector<8xf32> to vector<8x1xf32>
      %202 = tpu.reciprocal %201 {approx = true} : vector<8x1xf32> -> vector<8x1xf32>
      %203 = vector.broadcast %202 : vector<8x1xf32> to vector<8x8xf32>
      %204 = arith.mulf %199, %203 : vector<8x8xf32>
      %205 = arith.truncf %204 : vector<8x8xf32> to vector<8x8xbf16>
      %206 = vector.extract_strided_slice %143 {offsets = [0, 24], sizes = [8, 8], strides = [1, 1]} : vector<8x32xbf16> to vector<8x8xbf16>
      %cst_76 = arith.constant dense<0.000000e+00> : vector<8x8xf32>
      %207 = tpu.matmul %205, %206, %cst_76 {dimension_numbers = #tpu.dot_dimension_numbers<[1], [0], [0], [1], [0, 0, 1, 1], [], []>} : vector<8x8xbf16>, vector<8x8xbf16>, vector<8x8xf32> -> vector<8x8xf32>
      %208 = tpu.concatenate %159, %175, %191, %207 in 1 : vector<8x8xf32>, vector<8x8xf32>, vector<8x8xf32>, vector<8x8xf32> -> vector<8x32xf32>
      %209 = vector.extract_strided_slice %140 {offsets = [8, 0], sizes = [8, 32], strides = [1, 1]} : vector<16x32xbf16> to vector<8x32xbf16>
      %210 = vector.extract_strided_slice %137 {offsets = [8, 0], sizes = [8, 32], strides = [1, 1]} : vector<16x32xbf16> to vector<8x32xbf16>
      %211 = vector.extract_strided_slice %139 {offsets = [8, 0], sizes = [8, 32], strides = [1, 1]} : vector<16x32xbf16> to vector<8x32xbf16>
      %212 = vector.extract_strided_slice %209 {offsets = [0, 0], sizes = [8, 8], strides = [1, 1]} : vector<8x32xbf16> to vector<8x8xbf16>
      %213 = vector.extract_strided_slice %210 {offsets = [0, 0], sizes = [8, 8], strides = [1, 1]} : vector<8x32xbf16> to vector<8x8xbf16>
      %cst_77 = arith.constant dense<0.000000e+00> : vector<8x8xf32>
      %214 = tpu.matmul %212, %213, %cst_77 {dimension_numbers = #tpu.dot_dimension_numbers<[1], [1], [0], [0], [0, 0, 1, 0], [], []>} : vector<8x8xbf16>, vector<8x8xbf16>, vector<8x8xf32> -> vector<8x8xf32>
      %cst_78 = arith.constant dense<0xFF800000> : vector<8xf32>
      %215 = vector.multi_reduction <maximumf>, %214, %cst_78 [1] : vector<8x8xf32> to vector<8xf32>
      %216 = vector.shape_cast %215 : vector<8xf32> to vector<8x1xf32>
      %217 = vector.broadcast %216 : vector<8x1xf32> to vector<8x8xf32>
      %218 = arith.subf %214, %217 : vector<8x8xf32>
      %219 = math.exp %218 : vector<8x8xf32>
      %cst_79 = arith.constant dense<0.000000e+00> : vector<8xf32>
      %220 = vector.multi_reduction <add>, %219, %cst_79 [1] : vector<8x8xf32> to vector<8xf32>
      %221 = vector.shape_cast %220 : vector<8xf32> to vector<8x1xf32>
      %222 = tpu.reciprocal %221 {approx = true} : vector<8x1xf32> -> vector<8x1xf32>
      %223 = vector.broadcast %222 : vector<8x1xf32> to vector<8x8xf32>
      %224 = arith.mulf %219, %223 : vector<8x8xf32>
      %225 = arith.truncf %224 : vector<8x8xf32> to vector<8x8xbf16>
      %226 = vector.extract_strided_slice %211 {offsets = [0, 0], sizes = [8, 8], strides = [1, 1]} : vector<8x32xbf16> to vector<8x8xbf16>
      %cst_80 = arith.constant dense<0.000000e+00> : vector<8x8xf32>
      %227 = tpu.matmul %225, %226, %cst_80 {dimension_numbers = #tpu.dot_dimension_numbers<[1], [0], [0], [1], [0, 0, 1, 1], [], []>} : vector<8x8xbf16>, vector<8x8xbf16>, vector<8x8xf32> -> vector<8x8xf32>
      %228 = vector.extract_strided_slice %209 {offsets = [0, 8], sizes = [8, 8], strides = [1, 1]} : vector<8x32xbf16> to vector<8x8xbf16>
      %229 = vector.extract_strided_slice %210 {offsets = [0, 8], sizes = [8, 8], strides = [1, 1]} : vector<8x32xbf16> to vector<8x8xbf16>
      %cst_81 = arith.constant dense<0.000000e+00> : vector<8x8xf32>
      %230 = tpu.matmul %228, %229, %cst_81 {dimension_numbers = #tpu.dot_dimension_numbers<[1], [1], [0], [0], [0, 0, 1, 0], [], []>} : vector<8x8xbf16>, vector<8x8xbf16>, vector<8x8xf32> -> vector<8x8xf32>
      %cst_82 = arith.constant dense<0xFF800000> : vector<8xf32>
      %231 = vector.multi_reduction <maximumf>, %230, %cst_82 [1] : vector<8x8xf32> to vector<8xf32>
      %232 = vector.shape_cast %231 : vector<8xf32> to vector<8x1xf32>
      %233 = vector.broadcast %232 : vector<8x1xf32> to vector<8x8xf32>
      %234 = arith.subf %230, %233 : vector<8x8xf32>
      %235 = math.exp %234 : vector<8x8xf32>
      %cst_83 = arith.constant dense<0.000000e+00> : vector<8xf32>
      %236 = vector.multi_reduction <add>, %235, %cst_83 [1] : vector<8x8xf32> to vector<8xf32>
      %237 = vector.shape_cast %236 : vector<8xf32> to vector<8x1xf32>
      %238 = tpu.reciprocal %237 {approx = true} : vector<8x1xf32> -> vector<8x1xf32>
      %239 = vector.broadcast %238 : vector<8x1xf32> to vector<8x8xf32>
      %240 = arith.mulf %235, %239 : vector<8x8xf32>
      %241 = arith.truncf %240 : vector<8x8xf32> to vector<8x8xbf16>
      %242 = vector.extract_strided_slice %211 {offsets = [0, 8], sizes = [8, 8], strides = [1, 1]} : vector<8x32xbf16> to vector<8x8xbf16>
      %cst_84 = arith.constant dense<0.000000e+00> : vector<8x8xf32>
      %243 = tpu.matmul %241, %242, %cst_84 {dimension_numbers = #tpu.dot_dimension_numbers<[1], [0], [0], [1], [0, 0, 1, 1], [], []>} : vector<8x8xbf16>, vector<8x8xbf16>, vector<8x8xf32> -> vector<8x8xf32>
      %244 = vector.extract_strided_slice %209 {offsets = [0, 16], sizes = [8, 8], strides = [1, 1]} : vector<8x32xbf16> to vector<8x8xbf16>
      %245 = vector.extract_strided_slice %210 {offsets = [0, 16], sizes = [8, 8], strides = [1, 1]} : vector<8x32xbf16> to vector<8x8xbf16>
      %cst_85 = arith.constant dense<0.000000e+00> : vector<8x8xf32>
      %246 = tpu.matmul %244, %245, %cst_85 {dimension_numbers = #tpu.dot_dimension_numbers<[1], [1], [0], [0], [0, 0, 1, 0], [], []>} : vector<8x8xbf16>, vector<8x8xbf16>, vector<8x8xf32> -> vector<8x8xf32>
      %cst_86 = arith.constant dense<0xFF800000> : vector<8xf32>
      %247 = vector.multi_reduction <maximumf>, %246, %cst_86 [1] : vector<8x8xf32> to vector<8xf32>
      %248 = vector.shape_cast %247 : vector<8xf32> to vector<8x1xf32>
      %249 = vector.broadcast %248 : vector<8x1xf32> to vector<8x8xf32>
      %250 = arith.subf %246, %249 : vector<8x8xf32>
      %251 = math.exp %250 : vector<8x8xf32>
      %cst_87 = arith.constant dense<0.000000e+00> : vector<8xf32>
      %252 = vector.multi_reduction <add>, %251, %cst_87 [1] : vector<8x8xf32> to vector<8xf32>
      %253 = vector.shape_cast %252 : vector<8xf32> to vector<8x1xf32>
      %254 = tpu.reciprocal %253 {approx = true} : vector<8x1xf32> -> vector<8x1xf32>
      %255 = vector.broadcast %254 : vector<8x1xf32> to vector<8x8xf32>
      %256 = arith.mulf %251, %255 : vector<8x8xf32>
      %257 = arith.truncf %256 : vector<8x8xf32> to vector<8x8xbf16>
      %258 = vector.extract_strided_slice %211 {offsets = [0, 16], sizes = [8, 8], strides = [1, 1]} : vector<8x32xbf16> to vector<8x8xbf16>
      %cst_88 = arith.constant dense<0.000000e+00> : vector<8x8xf32>
      %259 = tpu.matmul %257, %258, %cst_88 {dimension_numbers = #tpu.dot_dimension_numbers<[1], [0], [0], [1], [0, 0, 1, 1], [], []>} : vector<8x8xbf16>, vector<8x8xbf16>, vector<8x8xf32> -> vector<8x8xf32>
      %260 = vector.extract_strided_slice %209 {offsets = [0, 24], sizes = [8, 8], strides = [1, 1]} : vector<8x32xbf16> to vector<8x8xbf16>
      %261 = vector.extract_strided_slice %210 {offsets = [0, 24], sizes = [8, 8], strides = [1, 1]} : vector<8x32xbf16> to vector<8x8xbf16>
      %cst_89 = arith.constant dense<0.000000e+00> : vector<8x8xf32>
      %262 = tpu.matmul %260, %261, %cst_89 {dimension_numbers = #tpu.dot_dimension_numbers<[1], [1], [0], [0], [0, 0, 1, 0], [], []>} : vector<8x8xbf16>, vector<8x8xbf16>, vector<8x8xf32> -> vector<8x8xf32>
      %cst_90 = arith.constant dense<0xFF800000> : vector<8xf32>
      %263 = vector.multi_reduction <maximumf>, %262, %cst_90 [1] : vector<8x8xf32> to vector<8xf32>
      %264 = vector.shape_cast %263 : vector<8xf32> to vector<8x1xf32>
      %265 = vector.broadcast %264 : vector<8x1xf32> to vector<8x8xf32>
      %266 = arith.subf %262, %265 : vector<8x8xf32>
      %267 = math.exp %266 : vector<8x8xf32>
      %cst_91 = arith.constant dense<0.000000e+00> : vector<8xf32>
      %268 = vector.multi_reduction <add>, %267, %cst_91 [1] : vector<8x8xf32> to vector<8xf32>
      %269 = vector.shape_cast %268 : vector<8xf32> to vector<8x1xf32>
      %270 = tpu.reciprocal %269 {approx = true} : vector<8x1xf32> -> vector<8x1xf32>
      %271 = vector.broadcast %270 : vector<8x1xf32> to vector<8x8xf32>
      %272 = arith.mulf %267, %271 : vector<8x8xf32>
      %273 = arith.truncf %272 : vector<8x8xf32> to vector<8x8xbf16>
      %274 = vector.extract_strided_slice %211 {offsets = [0, 24], sizes = [8, 8], strides = [1, 1]} : vector<8x32xbf16> to vector<8x8xbf16>
      %cst_92 = arith.constant dense<0.000000e+00> : vector<8x8xf32>
      %275 = tpu.matmul %273, %274, %cst_92 {dimension_numbers = #tpu.dot_dimension_numbers<[1], [0], [0], [1], [0, 0, 1, 1], [], []>} : vector<8x8xbf16>, vector<8x8xbf16>, vector<8x8xf32> -> vector<8x8xf32>
      %276 = tpu.concatenate %227, %243, %259, %275 in 1 : vector<8x8xf32>, vector<8x8xf32>, vector<8x8xf32>, vector<8x8xf32> -> vector<8x32xf32>
      %277 = tpu.concatenate %208, %276 in 0 : vector<8x32xf32>, vector<8x32xf32> -> vector<16x32xf32>
      %278 = arith.index_cast %arg21 : i32 to index
      %c0_93 = arith.constant 0 : index
      %c0_94 = arith.constant 0 : index
      %279 = vector.load %arg12[%278, %c0_93, %c0_94] : memref<4x32x32xbf16, #tpu.memory_space<vmem>>, vector<1x32x32xbf16>
      %280 = vector.shape_cast %279 : vector<1x32x32xbf16> to vector<32x32xbf16>
      %281 = arith.truncf %277 : vector<16x32xf32> to vector<16x32xbf16>
      %cst_95 = arith.constant dense<0.000000e+00> : vector<16x32xf32>
      %282 = tpu.matmul %281, %280, %cst_95 {dimension_numbers = #tpu.dot_dimension_numbers<[1], [0], [0], [1], [0, 0, 1, 1], [], []>} : vector<16x32xbf16>, vector<32x32xbf16>, vector<16x32xf32> -> vector<16x32xf32>
      %283 = arith.index_cast %arg21 : i32 to index
      %c0_96 = arith.constant 0 : index
      %c0_97 = arith.constant 0 : index
      %284 = vector.load %arg13[%283, %c0_96, %c0_97] : memref<4x1x32xf32, #tpu.memory_space<vmem>>, vector<1x1x32xf32>
      %285 = vector.shape_cast %284 : vector<1x1x32xf32> to vector<1x32xf32>
      %286 = vector.broadcast %285 : vector<1x32xf32> to vector<16x32xf32>
      %287 = arith.addf %282, %286 : vector<16x32xf32>
      %288 = arith.addf %arg22, %287 : vector<16x32xf32>
      %cst_98 = arith.constant dense<0.000000e+00> : vector<16xf32>
      %289 = vector.multi_reduction <add>, %288, %cst_98 [1] : vector<16x32xf32> to vector<16xf32>
      %290 = vector.shape_cast %289 : vector<16xf32> to vector<16x1xf32>
      %cst_99 = arith.constant 3.200000e+01 : f32
      %291 = vector.broadcast %cst_99 : f32 to vector<16x1xf32>
      %292 = arith.divf %290, %291 : vector<16x1xf32>
      %293 = vector.broadcast %292 : vector<16x1xf32> to vector<16x32xf32>
      %294 = arith.subf %288, %293 : vector<16x32xf32>
      %295 = arith.mulf %294, %294 : vector<16x32xf32>
      %cst_100 = arith.constant dense<0.000000e+00> : vector<16xf32>
      %296 = vector.multi_reduction <add>, %295, %cst_100 [1] : vector<16x32xf32> to vector<16xf32>
      %297 = vector.shape_cast %296 : vector<16xf32> to vector<16x1xf32>
      %cst_101 = arith.constant 3.200000e+01 : f32
      %298 = vector.broadcast %cst_101 : f32 to vector<16x1xf32>
      %299 = arith.divf %297, %298 : vector<16x1xf32>
      %300 = vector.broadcast %292 : vector<16x1xf32> to vector<16x32xf32>
      %301 = arith.subf %288, %300 : vector<16x32xf32>
      %cst_102 = arith.constant 9.99999974E-6 : f32
      %302 = vector.broadcast %cst_102 : f32 to vector<16x1xf32>
      %303 = arith.addf %299, %302 : vector<16x1xf32>
      %304 = math.rsqrt %303 : vector<16x1xf32>
      %305 = vector.broadcast %304 : vector<16x1xf32> to vector<16x32xf32>
      %306 = arith.mulf %301, %305 : vector<16x32xf32>
      %307 = arith.index_cast %arg21 : i32 to index
      %c0_103 = arith.constant 0 : index
      %c0_104 = arith.constant 0 : index
      %308 = vector.load %arg6[%307, %c0_103, %c0_104] : memref<4x1x32xf32, #tpu.memory_space<vmem>>, vector<1x1x32xf32>
      %309 = vector.shape_cast %308 : vector<1x1x32xf32> to vector<1x32xf32>
      %310 = vector.broadcast %309 : vector<1x32xf32> to vector<16x32xf32>
      %311 = arith.mulf %306, %310 : vector<16x32xf32>
      %312 = arith.index_cast %arg21 : i32 to index
      %c0_105 = arith.constant 0 : index
      %c0_106 = arith.constant 0 : index
      %313 = vector.load %arg7[%312, %c0_105, %c0_106] : memref<4x1x32xf32, #tpu.memory_space<vmem>>, vector<1x1x32xf32>
      %314 = vector.shape_cast %313 : vector<1x1x32xf32> to vector<1x32xf32>
      %315 = vector.broadcast %314 : vector<1x32xf32> to vector<16x32xf32>
      %316 = arith.addf %311, %315 : vector<16x32xf32>
      %317 = arith.index_cast %arg21 : i32 to index
      %c0_107 = arith.constant 0 : index
      %c0_108 = arith.constant 0 : index
      %318 = vector.load %arg14[%317, %c0_107, %c0_108] : memref<4x32x128xbf16, #tpu.memory_space<vmem>>, vector<1x32x128xbf16>
      %319 = vector.shape_cast %318 : vector<1x32x128xbf16> to vector<32x128xbf16>
      %320 = arith.truncf %316 : vector<16x32xf32> to vector<16x32xbf16>
      %cst_109 = arith.constant dense<0.000000e+00> : vector<16x128xf32>
      %321 = tpu.matmul %320, %319, %cst_109 {dimension_numbers = #tpu.dot_dimension_numbers<[1], [0], [0], [1], [0, 0, 1, 1], [], []>} : vector<16x32xbf16>, vector<32x128xbf16>, vector<16x128xf32> -> vector<16x128xf32>
      %322 = arith.index_cast %arg21 : i32 to index
      %c0_110 = arith.constant 0 : index
      %c0_111 = arith.constant 0 : index
      %323 = vector.load %arg15[%322, %c0_110, %c0_111] : memref<4x1x128xf32, #tpu.memory_space<vmem>>, vector<1x1x128xf32>
      %324 = vector.shape_cast %323 : vector<1x1x128xf32> to vector<1x128xf32>
      %325 = vector.broadcast %324 : vector<1x128xf32> to vector<16x128xf32>
      %326 = arith.addf %321, %325 : vector<16x128xf32>
      %cst_112 = arith.constant 0.000000e+00 : f32
      %327 = vector.broadcast %cst_112 : f32 to vector<16x128xf32>
      %328 = arith.maximumf %326, %327 : vector<16x128xf32>
      %329 = arith.index_cast %arg21 : i32 to index
      %c0_113 = arith.constant 0 : index
      %c0_114 = arith.constant 0 : index
      %330 = vector.load %arg16[%329, %c0_113, %c0_114] : memref<4x128x32xbf16, #tpu.memory_space<vmem>>, vector<1x128x32xbf16>
      %331 = vector.shape_cast %330 : vector<1x128x32xbf16> to vector<128x32xbf16>
      %332 = arith.truncf %328 : vector<16x128xf32> to vector<16x128xbf16>
      %cst_115 = arith.constant dense<0.000000e+00> : vector<16x32xf32>
      %333 = tpu.matmul %332, %331, %cst_115 {dimension_numbers = #tpu.dot_dimension_numbers<[1], [0], [0], [1], [0, 0, 1, 1], [], []>} : vector<16x128xbf16>, vector<128x32xbf16>, vector<16x32xf32> -> vector<16x32xf32>
      %334 = arith.addf %288, %333 : vector<16x32xf32>
      %335 = arith.index_cast %arg21 : i32 to index
      %c0_116 = arith.constant 0 : index
      %c0_117 = arith.constant 0 : index
      %336 = vector.load %arg17[%335, %c0_116, %c0_117] : memref<4x1x32xf32, #tpu.memory_space<vmem>>, vector<1x1x32xf32>
      %337 = vector.shape_cast %336 : vector<1x1x32xf32> to vector<1x32xf32>
      %338 = vector.broadcast %337 : vector<1x32xf32> to vector<16x32xf32>
      %339 = arith.addf %334, %338 : vector<16x32xf32>
      scf.yield %339 : vector<16x32xf32>
    }
    %c2_i32_27 = arith.constant 2 : i32
    %cst_28 = arith.constant dense<0.000000e+00> : vector<16xf32>
    %56 = vector.multi_reduction <add>, %55, %cst_28 [1] : vector<16x32xf32> to vector<16xf32>
    %57 = vector.shape_cast %56 : vector<16xf32> to vector<16x1xf32>
    %cst_29 = arith.constant 3.200000e+01 : f32
    %58 = vector.broadcast %cst_29 : f32 to vector<16x1xf32>
    %59 = arith.divf %57, %58 : vector<16x1xf32>
    %60 = vector.broadcast %59 : vector<16x1xf32> to vector<16x32xf32>
    %61 = arith.subf %55, %60 : vector<16x32xf32>
    %62 = arith.mulf %61, %61 : vector<16x32xf32>
    %cst_30 = arith.constant dense<0.000000e+00> : vector<16xf32>
    %63 = vector.multi_reduction <add>, %62, %cst_30 [1] : vector<16x32xf32> to vector<16xf32>
    %64 = vector.shape_cast %63 : vector<16xf32> to vector<16x1xf32>
    %cst_31 = arith.constant 3.200000e+01 : f32
    %65 = vector.broadcast %cst_31 : f32 to vector<16x1xf32>
    %66 = arith.divf %64, %65 : vector<16x1xf32>
    %67 = vector.broadcast %59 : vector<16x1xf32> to vector<16x32xf32>
    %68 = arith.subf %55, %67 : vector<16x32xf32>
    %cst_32 = arith.constant 9.99999974E-6 : f32
    %69 = vector.broadcast %cst_32 : f32 to vector<16x1xf32>
    %70 = arith.addf %66, %69 : vector<16x1xf32>
    %71 = math.rsqrt %70 : vector<16x1xf32>
    %72 = vector.broadcast %71 : vector<16x1xf32> to vector<16x32xf32>
    %73 = arith.mulf %68, %72 : vector<16x32xf32>
    %c1 = arith.constant 1 : index
    %c0_33 = arith.constant 0 : index
    %c0_34 = arith.constant 0 : index
    %74 = vector.load %arg18[%c1, %c0_33, %c0_34] : memref<2x1x32xf32, #tpu.memory_space<vmem>>, vector<1x1x32xf32>
    %75 = vector.shape_cast %74 : vector<1x1x32xf32> to vector<1x32xf32>
    %76 = vector.broadcast %75 : vector<1x32xf32> to vector<16x32xf32>
    %77 = arith.mulf %73, %76 : vector<16x32xf32>
    %c1_35 = arith.constant 1 : index
    %c0_36 = arith.constant 0 : index
    %c0_37 = arith.constant 0 : index
    %78 = vector.load %arg19[%c1_35, %c0_36, %c0_37] : memref<2x1x32xf32, #tpu.memory_space<vmem>>, vector<1x1x32xf32>
    %79 = vector.shape_cast %78 : vector<1x1x32xf32> to vector<1x32xf32>
    %80 = vector.broadcast %79 : vector<1x32xf32> to vector<16x32xf32>
    %81 = arith.addf %77, %80 : vector<16x32xf32>
    %82 = arith.truncf %81 : vector<16x32xf32> to vector<16x32xbf16>
    %c0_38 = arith.constant 0 : index
    %c0_39 = arith.constant 0 : index
    %c0_40 = arith.constant 0 : index
    %83 = vector.load %arg20[%c0_38, %c0_39, %c0_40] : memref<1x16x32xbf16, #tpu.memory_space<vmem>>, vector<1x16x32xbf16>
    %84 = vector.shape_cast %83 : vector<1x16x32xbf16> to vector<16x32xbf16>
    %85 = vector.shape_cast %82 : vector<16x32xbf16> to vector<1x16x32xbf16>
    tpu.vector_store %arg20[%c0_38, %c0_39, %c0_40], %85 {strides = array<i32>} : memref<1x16x32xbf16, #tpu.memory_space<vmem>>, vector<1x16x32xbf16>,
    return
  }
  func.func @transform_0(%arg0: i32) -> (i32, i32, i32) {
    %c0_i32 = arith.constant 0 : i32
    %c0_i32_0 = arith.constant 0 : i32
    %c0_i32_1 = arith.constant 0 : i32
    return %arg0, %c0_i32, %c0_i32_0 : i32, i32, i32
  }
  func.func @transform_1(%arg0: i32) -> (i32, i32, i32) {
    %c1_i32 = arith.constant 1 : i32
    %0 = arith.subi %c1_i32, %arg0 : i32
    %c0_i32 = arith.constant 0 : i32
    %c0_i32_0 = arith.constant 0 : i32
    %c0_i32_1 = arith.constant 0 : i32
    return %0, %c0_i32, %c0_i32_0 : i32, i32, i32
  }
  func.func @transform_2(%arg0: i32) -> (i32, i32) {
    %c0_i32 = arith.constant 0 : i32
    %c0_i32_0 = arith.constant 0 : i32
    %c0_i32_1 = arith.constant 0 : i32
    return %c0_i32, %c0_i32_0 : i32, i32
  }
  func.func @transform_3(%arg0: i32) -> (i32, i32, i32) {
    %c0_i32 = arith.constant 0 : i32
    %c0_i32_0 = arith.constant 0 : i32
    %c0_i32_1 = arith.constant 0 : i32
    return %arg0, %c0_i32, %c0_i32_0 : i32, i32, i32
  }
  func.func @transform_4(%arg0: i32) -> (i32, i32, i32) {
    %c0_i32 = arith.constant 0 : i32
    %c0_i32_0 = arith.constant 0 : i32
    %c0_i32_1 = arith.constant 0 : i32
    return %arg0, %c0_i32, %c0_i32_0 : i32, i32, i32
  }
  func.func @transform_5(%arg0: i32) -> (i32, i32, i32) {
    %c0_i32 = arith.constant 0 : i32
    %c0_i32_0 = arith.constant 0 : i32
    %c0_i32_1 = arith.constant 0 : i32
    return %arg0, %c0_i32, %c0_i32_0 : i32, i32, i32
  }
  func.func @transform_6(%arg0: i32) -> (i32, i32, i32) {
    %c0_i32 = arith.constant 0 : i32
    %c0_i32_0 = arith.constant 0 : i32
    %c0_i32_1 = arith.constant 0 : i32
    return %arg0, %c0_i32, %c0_i32_0 : i32, i32, i32
  }
  func.func @transform_7(%arg0: i32) -> (i32, i32, i32) {
    %c0_i32 = arith.constant 0 : i32
    %c0_i32_0 = arith.constant 0 : i32
    %c0_i32_1 = arith.constant 0 : i32
    return %arg0, %c0_i32, %c0_i32_0 : i32, i32, i32
  }
  func.func @transform_8(%arg0: i32) -> (i32, i32, i32) {
    %c0_i32 = arith.constant 0 : i32
    %c0_i32_0 = arith.constant 0 : i32
    %c0_i32_1 = arith.constant 0 : i32
    return %arg0, %c0_i32, %c0_i32_0 : i32, i32, i32
  }
  func.func @transform_9(%arg0: i32) -> (i32, i32, i32) {
    %c0_i32 = arith.constant 0 : i32
    %c0_i32_0 = arith.constant 0 : i32
    %c0_i32_1 = arith.constant 0 : i32
    return %arg0, %c0_i32, %c0_i32_0 : i32, i32, i32
  }
  func.func @transform_10(%arg0: i32) -> (i32, i32, i32) {
    %c0_i32 = arith.constant 0 : i32
    %c0_i32_0 = arith.constant 0 : i32
    %c0_i32_1 = arith.constant 0 : i32
    return %arg0, %c0_i32, %c0_i32_0 : i32, i32, i32
  }
  func.func @transform_11(%arg0: i32) -> (i32, i32, i32) {
    %c0_i32 = arith.constant 0 : i32
    %c0_i32_0 = arith.constant 0 : i32
    %c0_i32_1 = arith.constant 0 : i32
    return %arg0, %c0_i32, %c0_i32_0 : i32, i32, i32
  }
  func.func @transform_12(%arg0: i32) -> (i32, i32, i32) {
    %c0_i32 = arith.constant 0 : i32
    %c0_i32_0 = arith.constant 0 : i32
    %c0_i32_1 = arith.constant 0 : i32
    return %arg0, %c0_i32, %c0_i32_0 : i32, i32, i32
  }
  func.func @transform_13(%arg0: i32) -> (i32, i32, i32) {
    %c0_i32 = arith.constant 0 : i32
    %c0_i32_0 = arith.constant 0 : i32
    %c0_i32_1 = arith.constant 0 : i32
    return %arg0, %c0_i32, %c0_i32_0 : i32, i32, i32
  }
  func.func @transform_14(%arg0: i32) -> (i32, i32, i32) {
    %c0_i32 = arith.constant 0 : i32
    %c0_i32_0 = arith.constant 0 : i32
    %c0_i32_1 = arith.constant 0 : i32
    return %arg0, %c0_i32, %c0_i32_0 : i32, i32, i32
  }
  func.func @transform_15(%arg0: i32) -> (i32, i32, i32) {
    %c0_i32 = arith.constant 0 : i32
    %c0_i32_0 = arith.constant 0 : i32
    %c0_i32_1 = arith.constant 0 : i32
    return %arg0, %c0_i32, %c0_i32_0 : i32, i32, i32
  }
  func.func @transform_16(%arg0: i32) -> (i32, i32, i32) {
    %c0_i32 = arith.constant 0 : i32
    %c0_i32_0 = arith.constant 0 : i32
    %c0_i32_1 = arith.constant 0 : i32
    return %arg0, %c0_i32, %c0_i32_0 : i32, i32, i32
  }
  func.func @transform_17(%arg0: i32) -> (i32, i32, i32) {
    %c0_i32 = arith.constant 0 : i32
    %c0_i32_0 = arith.constant 0 : i32
    %c0_i32_1 = arith.constant 0 : i32
    return %arg0, %c0_i32, %c0_i32_0 : i32, i32, i32
  }
  func.func @transform_18(%arg0: i32) -> (i32, i32, i32) {
    %c0_i32 = arith.constant 0 : i32
    %c0_i32_0 = arith.constant 0 : i32
    %c0_i32_1 = arith.constant 0 : i32
    return %arg0, %c0_i32, %c0_i32_0 : i32, i32, i32
  }
  func.func @transform_19(%arg0: i32) -> (i32, i32, i32) {
    %c0_i32 = arith.constant 0 : i32
    %c0_i32_0 = arith.constant 0 : i32
    %c0_i32_1 = arith.constant 0 : i32
    return %arg0, %c0_i32, %c0_i32_0 : i32, i32, i32
  }
}

</mosaic_0001>

<bundles_post_ra>
// kernel: _lambda_.3
= control target key start
LH: loop header
LB: loop body
LE: loop exit
PB: predicated region body
PF: predicated region fallthrough
CT: control target
= control target key end

     0   :  { %s446_s28 = smov 32   ;;  %v447_v2 = vmov 0.0   ;;  %vm448_vm0 = vmmov 0   ;;  %s564_s0 = inlined_call_operand.vmem [shape: bf16[2,16,32], index: 0, kind: input, shape index: {}]   ;;  %s565_s1 = inlined_call_operand.vmem [shape: bf16[64,64], index: 1, kind: input, shape index: {}]   ;;  %s566_s2 = inlined_call_operand.vmem [shape: f32[1,64], index: 2, kind: input, shape index: {}, may-alias: {2,4}]   ;;  %s567_s3 = inlined_call_operand.vmem [shape: bf16[64,64], index: 3, kind: input, shape index: {}]   ;;  %s568_s4 = inlined_call_operand.vmem [shape: f32[1,64], index: 4, kind: input, shape index: {}, may-alias: {2,4}]   ;;  %s569_s5 = inlined_call_operand.vmem [shape: bf16[64,32], index: 5, kind: input, shape index: {}]   ;;  %s570_s6 = inlined_call_operand.vmem [shape: f32[1,32], index: 6, kind: input, shape index: {}]   ;;  %s571_s7 = inlined_call_operand.hbm [shape: f32[16,32], index: 7, kind: output, shape index: {}]  }
   0x1   :  { %v408_v0 = vld [vmem:[%s564_s0 + $0x8] sm:$0xff]   ;;  %v409_v1 = vld [vmem:[%s565_s1] sm:$0xff]   ;;  %366 = vmatprep.subr.bf16.mxu0 %v447_v2  ;;  %378 = vmatprep.subr.bf16.mxu1 %v447_v2  ;;  %v411_v5 = vld [vmem:[%s565_s1 + $0x10] sm:$0xff]  }
   0x2   :  { %43 = vrot.lane.b32.xlu0 %v408_v0, %s446_s28  ;;  %367 = vmatpush3.bf16.msra.mxu0 %v409_v1  ;;  %v410_v3 = vld [vmem:[%s565_s1 + $0x8] sm:$0xff]   ;;  %v414_v4 = vld [vmem:[%s567_s3] sm:$0xff]   ;;  %v412_v7 = vld [vmem:[%s565_s1 + $0x18] sm:$0xff]  }
   0x3   :  { %368 = vmatprep.subr.bf16.mxu0 %v447_v2  ;;  %374 = vmatprep.mubr.msk.bf16.mxu0 %vm448_vm0, %v447_v2  ;;  %v415_v6 = vld [vmem:[%s567_s3 + $0x8] sm:$0xff]  }
   0x4   :  { %386 = vmatprep.mubr.msk.bf16.mxu1 %vm448_vm0, %v447_v2  ;;  %379 = vmatpush3.bf16.msra.mxu1 %v414_v4 }
   0x5   :  { %380 = vmatprep.subr.bf16.mxu1 %v447_v2 }
   0x6   :  { %369 = vmatpush3.bf16.msra.mxu0 %v410_v3 }
   0x7   :  { %370 = vmatprep.subr.bf16.mxu0 %v447_v2 }
   0x8   :  { %381 = vmatpush3.bf16.msra.mxu1 %v415_v6 }
   0xa   :  { %371 = vmatpush3.bf16.msra.mxu0 %v411_v5 }
   0xb   :  { %372 = vmatprep.subr.bf16.mxu0 %v447_v2 }
   0xc   :  { %12 = vsyncpa [#allocation3], 0  ;;  %382 = vmatprep.subr.bf16.mxu1 %v447_v2  ;;  %v413_v8 = vld [vmem:[%s564_s0] sm:$0xff]   ;;  %vm45_vm1 = vcmask 261120   ;;  %vm89_vm2 = vcmask 523264   ;;  %v416_v11 = vld [vmem:[%s567_s3 + $0x10] sm:$0xff]  }
   0xd   :  { %383 = vmatpush3.bf16.msra.mxu1 %v416_v11  ;;  %v417_v12 = vld [vmem:[%s567_s3 + $0x18] sm:$0xff]   ;;  %v418_v13 = vld [vmem:[%s569_s5] sm:$0xff]   ;;  %v419_v14 = vld [vmem:[%s569_s5 + $0x8] sm:$0xff]   ;;  %s449_s8 = smov [#allocation2]  }
   0xe   :  { %373 = vmatpush3.bf16.msra.mxu0 %v412_v7  ;;  %384 = vmatprep.subr.bf16.mxu1 %v447_v2  ;;  %v333_v15 = vld [vmem:[%s566_s2] ss:$0 sm:$0xff]  ;;  %v420_v27 = vld [vmem:[%s569_s5 + $0x10] sm:$0xff]   ;;  %v421_v28 = vld [vmem:[%s569_s5 + $0x18] sm:$0xff]   ;;  %s318_s9 = sshll.u32 %s449_s8, 4  ;;  %s319_s9 = int_to_ptr.vmem [resolvable:$true] %s318_s9 }
   0xf   :  { %390 = vmatprep.subr.bf16.mxu0 %v447_v2  ;;  %v339_v29 = vld [vmem:[%s568_s4] ss:$0 sm:$0xff]  ;;  %s422_s4 = scalar_lea.vmem %s319_s9, 256  ;;  %p427_p1 = scmp.lt.s32.totalorder %s319_s9, %s319_s9 }
  0x10   :  { %v345_v41 = vld [vmem:[%s570_s6] ss:$0 sm:$0xff]  ;;  %p423_p0 = scmp.ne.s32.totalorder %s319_s9, %s422_s4  ;;  %p428_p2 = scmp.lt.s32.totalorder %s422_s4, %s422_s4 }
  0x11   :  { %385 = vmatpush3.bf16.msra.mxu1 %v417_v12 }
  0x12   :  { %p429_p3 = por %p428_p2, %p427_p1 }
  0x14   :  { %p430_p4 = pnand %p429_p3, %p423_p0 }
  0x74   :  { %v44_v9 = vpop.permute.xlu0 %43 }
  0x75   :  { %v48_v10 = vsel %vm45_vm1, %v413_v8, %v44_v9 }
  0x76   :  { %375 = vmatmul.mubr.msk.bf16.vlgmr.msra.gmra.mrb[0].mxu0 %vm89_vm2, %v48_v10  ;;  %v223_v31 = vunpack.c.l.bf16 %v48_v10  ;;  %v224_v35 = vunpack.c.h.bf16 %v48_v10 }
  0x77   :  { %398 = vmatprep.mubr.msk.bf16.mxu0 %vm448_vm0, %v447_v2  ;;  %391 = vmatpush3.bf16.msra.mxu0 %v418_v13 }
  0x78   :  { %392 = vmatprep.subr.bf16.mxu0 %v447_v2 }
  0x7b   :  { %393 = vmatpush3.bf16.msra.mxu0 %v419_v14 }
  0x7c   :  { %394 = vmatprep.subr.bf16.mxu0 %v447_v2 }
  0x7f   :  { %395 = vmatpush3.bf16.msra.mxu0 %v420_v27 }
  0x80   :  { %396 = vmatprep.subr.bf16.mxu0 %v447_v2 }
  0x83   :  { %397 = vmatpush3.bf16.msra.mxu0 %v421_v28 }
 0x149   :  { %v126_v16 = vpop.f32.mrb[0].mxu0 }
 0x14a   :  { %v127_v17 = vadd.f32 %v333_v15, %v126_v16  ;;  %v376_v18 = vpop.f32.mrb[1].mxu0 }
 0x14b   :  { %v129_v19 = vpop.f32.mrb[2].mxu0 }
 0x14c   :  { %v135_v20 = vmul.f32 0.01, %v127_v17  ;;  %v130_v21 = vadd.f32 %v333_v15, %v129_v19  ;;  %v377_v22 = vpop.f32.mrb[3].mxu0  ;;  %vm133_vm3 = vcmp.ge.f32.partialorder %v127_v17, 0.0 }
 0x14e   :  { %vm134_vm4 = vcmp.ge.f32.partialorder %v130_v21, 0.0  ;;  %v136_v23 = vmul.f32 0.01, %v130_v21  ;;  %v137_v24 = vsel %vm133_vm3, %v127_v17, %v135_v20 }
 0x150   :  { %v138_v25 = vsel %vm134_vm4, %v130_v21, %v136_v23 }
 0x151   :  { %v147_v26 = vpack.c.bf16 %v138_v25, %v137_v24 }
 0x153   :  { %387 = vmatmul.mubr.msk.bf16.vlgmr.msra.gmra.mrb[0].mxu1 %vm89_vm2, %v147_v26 }
 0x226   :  { %v216_v30 = vpop.f32.mrb[0].mxu1 }
 0x227   :  { %v217_v32 = vadd.f32 %v339_v29, %v216_v30  ;;  %v388_v33 = vpop.f32.mrb[1].mxu1 }
 0x228   :  { %v219_v34 = vpop.f32.mrb[2].mxu1 }
 0x229   :  { %v225_v36 = vadd.f32 %v223_v31, %v217_v32  ;;  %v220_v37 = vadd.f32 %v339_v29, %v219_v34  ;;  %v389_v38 = vpop.f32.mrb[3].mxu1 }
 0x22b   :  { %v226_v39 = vadd.f32 %v224_v35, %v220_v37 }
 0x22d   :  { %v235_v40 = vpack.c.bf16 %v226_v39, %v225_v36 }
 0x22f   :  { %399 = vmatmul.mubr.msk.bf16.vlgmr.msra.gmra.mrb[4].mxu0 %vm89_vm2, %v235_v40 }
 0x302   :  { %v304_v42 = vpop.f32.mrb[4].mxu0 }
 0x303   :  { %v305_v43 = vadd.f32 %v345_v41, %v304_v42  ;;  %v400_v44 = vpop.f32.mrb[5].mxu0 }
 0x304   :  { %v307_v45 = vpop.f32.mrb[6].mxu0 }
 0x305   :  { %311 = vst.msk [vmem:[#allocation2] sm:$0xff] %vm45_vm1, %v305_v43  ;;  %v308_v46 = vadd.f32 %v345_v41, %v307_v45  ;;  %v401_v47 = vpop.f32.mrb[7].mxu0 }
 0x307   :  { %312 = vst.msk [vmem:[#allocation2 + $0x8] sm:$0xff] %vm45_vm1, %v308_v46 }
 0x308   :  { %433 = shalt.err (!%p430_p4)
}
 0x309   :  { %s434_s11 = scalar_lea.hbm %s571_s7, 256 }
 0x30a   :  { %p435_p5 = scmp.ne.s32.totalorder %s571_s7, %s434_s11  ;;  %p438_p6 = scmp.lt.u32.totalorder %s434_s11, %s571_s7 }
 0x30c   :  { %p440_p7 = pnand %p438_p6, %p435_p5 }
 0x30e   :  { %443 = shalt.err (!%p440_p7)
}
 0x30f   :  { %s450_s16 = smov 128   ;;  %s451_s17 = smov 8  }
 0x310   :  { %324 = dma.vmem_to_hbm [thread:$0]  %s319_s9, 256, %s571_s7, [#allocation3], %s450_s16, %s450_s16, %s451_s17  }
 0x311   :  { %444 = dma.done.wait [#allocation3], 256  }
 0x312   :  { %445 = vsyncadd [#allocation3], 4294967040 }
 0x313   :  { %328 = vsyncpa [#allocation3], 1 }

// kernel: _lambda_.2
= control target key start
LH: loop header
LB: loop body
LE: loop exit
PB: predicated region body
PF: predicated region fallthrough
CT: control target
= control target key end

     0   :  { %s6381_s0 = inlined_call_operand.vmem [shape: f32[2,16,32], index: 0, kind: input, shape index: {}, may-alias: {0,1}]   ;;  %s6382_s1 = inlined_call_operand.vmem [shape: f32[2,16,32], index: 1, kind: input, shape index: {}, may-alias: {0,1}]   ;;  %s6383_s2 = inlined_call_operand.vmem [shape: f32[16,32], index: 2, kind: input, shape index: {}]   ;;  %s6384_s3 = inlined_call_operand.vmem [shape: f32[8,1,32], index: 3, kind: input, shape index: {}, may-alias: {3,5}]   ;;  %s6385_s4 = inlined_call_operand.vmem [shape: f32[8,1,32], index: 4, kind: input, shape index: {}, may-alias: {4,6,8,12,16}]   ;;  %s6386_s5 = inlined_call_operand.vmem [shape: f32[8,1,32], index: 5, kind: input, shape index: {}, may-alias: {3,5}]   ;;  %s6387_s6 = inlined_call_operand.vmem [shape: f32[8,1,32], index: 6, kind: input, shape index: {}, may-alias: {4,6,8,12,16}]   ;;  %s6388_s7 = inlined_call_operand.vmem [shape: bf16[8,32,32], index: 7, kind: input, shape index: {}]   ;;  %s6389_s8 = inlined_call_operand.vmem [shape: f32[8,1,32], index: 8, kind: input, shape index: {}, may-alias: {4,6,8,12,16}]   ;;  %s6390_s9 = inlined_call_operand.vmem [shape: bf16[8,32,64], index: 9, kind: input, shape index: {}]   ;;  %s6391_s10 = inlined_call_operand.vmem [shape: f32[8,1,64], index: 10, kind: input, shape index: {}]   ;;  %s6392_s11 = inlined_call_operand.hbm [shape: bf16[8,32,32], index: 11, kind: input, shape index: {}]   ;;  %s6393_s12 = inlined_call_operand.vmem [shape: f32[8,1,32], index: 12, kind: input, shape index: {}, may-alias: {4,6,8,12,16}]   ;;  %s6394_s13 = inlined_call_operand.hbm [shape: bf16[8,32,128], index: 13, kind: input, shape index: {}]   ;;  %s6395_s14 = inlined_call_operand.vmem [shape: f32[8,1,128], index: 14, kind: input, shape index: {}]   ;;  %s6396_s15 = inlined_call_operand.hbm [shape: bf16[8,128,32], index: 15, kind: input, shape index: {}]   ;;  %s6397_s16 = inlined_call_operand.vmem [shape: f32[8,1,32], index: 16, kind: input, shape index: {}, may-alias: {4,6,8,12,16}]   ;;  %s6398_s17 = inlined_call_operand.vmem [shape: f32[4,1,32], index: 17, kind: input, shape index: {}]   ;;  %s6399_s18 = inlined_call_operand.vmem [shape: f32[4,1,32], index: 18, kind: input, shape index: {}]   ;;  %s6400_s19 = inlined_call_operand.vmem [shape: bf16[2,16,32], index: 19, kind: output, shape index: {}]  }
   0x1   :  { %6415 = sst [smem:[#allocation14_spill]] %s6381_s0 }
   0x2   :  { %6416 = sst [smem:[#allocation15_spill]] %s6382_s1 }
   0x3   :  { %6417 = sst [smem:[#allocation16_spill]] %s6383_s2 }
   0x4   :  { %6418 = sst [smem:[#allocation17_spill]] %s6384_s3 }
   0x5   :  { %6419 = sst [smem:[#allocation18_spill]] %s6385_s4 }
   0x6   :  { %6420 = sst [smem:[#allocation19_spill]] %s6386_s5 }
   0x7   :  { %6421 = sst [smem:[#allocation20_spill]] %s6387_s6 }
   0x8   :  { %6422 = sst [smem:[#allocation21_spill]] %s6388_s7 }
   0x9   :  { %6423 = sst [smem:[#allocation22_spill]] %s6389_s8 }
   0xa   :  { %6424 = sst [smem:[#allocation23_spill]] %s6390_s9 }
   0xb   :  { %6425 = sst [smem:[#allocation24_spill]] %s6391_s10 }
   0xc   :  { %6426 = sst [smem:[#allocation25_spill]] %s6392_s11 }
   0xd   :  { %6427 = sst [smem:[#allocation26_spill]] %s6393_s12 }
   0xe   :  { %6428 = sst [smem:[#allocation27_spill]] %s6394_s13 }
   0xf   :  { %6429 = sst [smem:[#allocation28_spill]] %s6395_s14 }
  0x10   :  { %6430 = sst [smem:[#allocation29_spill]] %s6396_s15 }
  0x11   :  { %6431 = sst [smem:[#allocation30_spill]] %s6397_s16 }
  0x12   :  { %6432 = sst [smem:[#allocation31_spill]] %s6398_s17 }
  0x13   :  { %6433 = sst [smem:[#allocation32_spill]] %s6399_s18 }
  0x14   :  { %6434 = sst [smem:[#allocation33_spill]] %s6400_s19 }
  0x15   :  { %24 = vsyncpa [#allocation3], 0 }
  0x16   :  { %26 = vsyncpa [#allocation3 + $0x1], 0 }
  0x17   :  { %27 = vsyncpa [#allocation5], 0 }
  0x18   :  { %29 = vsyncpa [#allocation5 + $0x1], 0  ;;  %s5482_s0 = smov 0   ;;  %s5484_s30 = smov 0  }
  0x19   :  { %s5486_s20 = smov 0   ;;  %s5488_s21 = smov 0  }
  0x1a LB: > { %6435 = sst [smem:[#allocation9_spill]] %s5319_s30  ;;  %s5501_s1 = sadd.s32 4294967295, %s5327_s21   ;;  %s5327_s21 = sphi %s5488_s21, %s6477_s21   ;;  %s5323_s20 = sphi %s5486_s20, %s6480_s20   ;;  %s5319_s30 = sphi %s5484_s30, %s6479_s30   ;;  %s5315_s0 = sphi %s5482_s0, %s6478_s0  }
  0x1b   : > { %6436 = sst [smem:[#allocation10_spill]] %s5323_s20  ;;  %s5504_s22 = sadd.s32 1, %s5327_s21  }
  0x1c   : > { %6437 = sst [smem:[#allocation11_spill]] %s5504_s22  ;;  %s322_s2 = ssub.s32 %s5327_s21, %s5504_s22 }
  0x1d   : > { %s325_s23 = sadd.s32 1, %s5323_s20  ;;  %p323_p0 = scmp.eq.s32.totalorder %s322_s2, 0 }
  0x1e   : > { %p332_p1 = scmp.ne.s32.totalorder %s5323_s20, %s5319_s30  ;;  %p333_p2 = scmp.eq.s32.totalorder %s5327_s21, 0 }
  0x1f   : > { %p338_p3 = scmp.ne.s32.totalorder %s5319_s30, %s5315_s0  ;;  %p339_p5 = scmp.eq.s32.totalorder %s5501_s1, 0 }
  0x20   : > { %s5514_s24 = scalar_select %p323_p0, %s5323_s20, %s325_s23  }
  0x21   : > { %p334_p4 = por %p333_p2, %p332_p1  ;;  %p4914_p6 = scmp.lt.s32.totalorder %s5327_s21, 2 }
  0x22   : > { %6438 = sst [smem:[#allocation12_spill]] %s5514_s24  ;;  %p5518_p7 = por %p339_p5, %p338_p3 }
  0x23   : > { %s5523_s3 = sand.u32 1, %s5323_s20   ;;  %s6406_s27 = sshll.u32 %s5327_s21, 10 }
  0x24   : > { %s6439_s25 = scalar_select %p5518_p7, 1, 0 }
  0x25   : > { %s6405_s26 = sshll.u32 %s5523_s3, 6  ;;  %p5527_p8 = pnand %p4914_p6, %p334_p4 }
  0x26   : > { %s689_s29 = sand.u32 1, %s5327_s21   ;;  %s6441_s13 = sld [smem:[#allocation27_spill]] }
  0x27   : > { %s693_s24 = scalar_lea.vmem [#allocation4], %s6405_s26  ;;  %s5545_s22 = scalar_lea.sflag [#allocation5], %s689_s29 }
  0x28   : > { %s701_s20 = sshll.u32 %s693_s24, 4  ;;  %p5551_p12 = pneg %p5527_p8  ;;  %s5542_s20 = int_to_ptr.vmem [resolvable:$true] %s701_s20 }
  0x2c   : > { %s5537_s23 = scalar_lea.hbm %s6441_s13, %s6406_s27  ;;  %s5180_s24 = scalar_lea.hbm %s6441_s13, 2048 }
  0x2d   : > { %s5175_s18 = scalar_lea.hbm %s5537_s23, 1024  ;;  %p5181_p1 = scmp.lt.u32.totalorder %s5537_s23, %s6441_s13 }
  0x2e   : > { %p5176_p11 = scmp.ne.s32.totalorder %s5537_s23, %s5175_s18  ;;  %p5182_p2 = scmp.lt.u32.totalorder %s5180_s24, %s5175_s18 }
  0x2f   : > { %p5184_p4 = scmp.lt.u32.totalorder %s5175_s18, %s5537_s23 }
  0x30   : > { %p5178_p13 = pnand %p5551_p12, %p5176_p11  ;;  %p5183_p3 = por %p5182_p2, %p5181_p1 }
  0x32   : > { %p5179_p0 = pneg %p5178_p13  ;;  %p5185_p5 = por %p5184_p4, %p5183_p3 }
  0x34   : > { %p5186_p6 = pnand %p5185_p5, %p5179_p0 }
  0x36   : > { %5189 = shalt.err (!%p5186_p6)
}
  0x37   : > { %s5190_s29 = scalar_lea.vmem %s5542_s20, 1024  ;;  %s5353_s26 = smov [#allocation4]  }
  0x38   : > { %p5191_p11 = scmp.ne.s32.totalorder %s5542_s20, %s5190_s29  ;;  %s5195_s2 = sshll.u32 %s5353_s26, 4  ;;  %s5196_s2 = int_to_ptr.vmem [resolvable:$false] %s5195_s2 }
  0x39   : > { %s5197_s17 = scalar_lea.vmem %s5196_s2, 2048  ;;  %p5198_p10 = scmp.lt.s32.totalorder %s5542_s20, %s5196_s2 }
  0x3a   : > { %p5193_p13 = pnand %p5191_p11, %p5551_p12  ;;  %p5199_p7 = scmp.lt.s32.totalorder %s5197_s17, %s5190_s29 }
  0x3c   : > { %p5194_p9 = pneg %p5193_p13  ;;  %p5200_p1 = por %p5199_p7, %p5198_p10 }
  0x3e   : > { %p5201_p2 = pnand %p5200_p1, %p5194_p9 }
  0x40   : > { %5204 = shalt.err (!%p5201_p2)
}
  0x41   : > { %s6408_s18 = smov 64   ;;  %s6410_s27 = smov 4  }
  0x42   : > { %4910 = dma.hbm_to_vmem [thread:$0]  (!%p5527_p8), %s5537_s23, 1024, %s5542_s20, %s5545_s22, %s6408_s18, %s6408_s18, %s6410_s27  }
  0x43   : > { %p6443_p7 = scmp.lt.s32.totalorder %s5327_s21, 3  ;;  %p6444_p9 = scmp.ge.s32.totalorder %s5327_s21, 1 }
  0x44   : > { %s6446_s29 = sshll.u32 %s5327_s21, 10  ;;  %s6447_s11 = sld [smem:[#allocation25_spill]] }
  0x45   : > { %p5582_p10 = pnand %p6444_p9, %p6443_p7  ;;  %s6448_s13 = sshll.u32 %s5523_s3, 6 }
  0x46   : > { %s663_s16 = scalar_lea.vmem [#allocation2], %s6448_s13  ;;  %s4328_s20 = sshll.u32 %s5523_s3, 8 }
  0x47   : > { %s6445_s24 = scalar_select %p5582_p10, 1, 0 }
  0x48   : > { %s671_s14 = sshll.u32 %s663_s16, 4  ;;  %s660_s23 = scalar_lea.sflag [#allocation3], %s5523_s3  ;;  %s5596_s14 = int_to_ptr.vmem [resolvable:$true] %s671_s14 }
  0x4a   : > { %s5591_s17 = scalar_lea.hbm %s6447_s11, %s6446_s29  ;;  %s5210_s29 = scalar_lea.hbm %s6447_s11, 2048 }
  0x4b   : > { %s5205_s18 = scalar_lea.hbm %s5591_s17, 1024  ;;  %p5211_p5 = scmp.lt.u32.totalorder %s5591_s17, %s6447_s11 }
  0x4c   : > { %p5206_p0 = scmp.ne.s32.totalorder %s5591_s17, %s5205_s18  ;;  %p5212_p6 = scmp.lt.u32.totalorder %s5210_s29, %s5205_s18 }
  0x4d   : > { %p5214_p13 = scmp.lt.u32.totalorder %s5205_s18, %s5591_s17 }
  0x4e   : > { %p5208_p3 = pnand %p5206_p0, %p5551_p12  ;;  %p5213_p11 = por %p5212_p6, %p5211_p5 }
  0x50   : > { %p5209_p4 = pneg %p5208_p3  ;;  %p5215_p1 = por %p5214_p13, %p5213_p11 }
  0x52   : > { %p5216_p2 = pnand %p5215_p1, %p5209_p4 }
  0x54   : > { %5219 = shalt.err (!%p5216_p2)
}
  0x55   : > { %s5220_s13 = scalar_lea.vmem %s5596_s14, 1024  ;;  %s5356_s16 = smov [#allocation2]  }
  0x56   : > { %p5221_p7 = scmp.ne.s32.totalorder %s5596_s14, %s5220_s13  ;;  %s5225_s27 = sshll.u32 %s5356_s16, 4  ;;  %s5226_s27 = int_to_ptr.vmem [resolvable:$false] %s5225_s27 }
  0x57   : > { %s5227_s12 = scalar_lea.vmem %s5226_s27, 2048  ;;  %p5228_p3 = scmp.lt.s32.totalorder %s5596_s14, %s5226_s27 }
  0x58   : > { %p5223_p9 = pnand %p5221_p7, %p5551_p12  ;;  %p5229_p10 = scmp.lt.s32.totalorder %s5227_s12, %s5220_s13 }
  0x5a   : > { %p5224_p0 = pneg %p5223_p9  ;;  %p5230_p5 = por %p5229_p10, %p5228_p3 }
  0x5c   : > { %p5231_p6 = pnand %p5230_p5, %p5224_p0 }
  0x5e   : > { %5234 = shalt.err (!%p5231_p6)
}
  0x5f   : > { %s6449_s18 = smov 4   ;;  %s6450_s26 = smov 64  }
  0x60   : > { %4907 = dma.hbm_to_vmem [thread:$0]  (!%p5527_p8), %s5591_s17, 1024, %s5596_s14, %s660_s23, %s6450_s26, %s6450_s26, %s6449_s18  }
  0x61   : > { %s4478_s29 = sshll.u32 %s5327_s21, 12  ;;  %s723_s2 = scalar_lea.vmem [#allocation6], %s4328_s20 }
  0x62   : > { %s731_s13 = sshll.u32 %s723_s2, 4  ;;  %s6451_s15 = sld [smem:[#allocation29_spill]]  ;;  %s5633_s13 = int_to_ptr.vmem [resolvable:$true] %s731_s13 }
  0x68   : > { %s5631_s12 = scalar_lea.hbm %s6451_s15, %s4478_s29  ;;  %s5240_s3 = scalar_lea.hbm %s6451_s15, 8192 }
  0x69   : > { %s5235_s11 = scalar_lea.hbm %s5631_s12, 4096  ;;  %p5241_p13 = scmp.lt.u32.totalorder %s5631_s12, %s6451_s15 }
  0x6a   : > { %p5236_p10 = scmp.ne.s32.totalorder %s5631_s12, %s5235_s11  ;;  %p5242_p1 = scmp.lt.u32.totalorder %s5240_s3, %s5235_s11 }
  0x6b   : > { %p5244_p7 = scmp.lt.u32.totalorder %s5235_s11, %s5631_s12 }
  0x6c   : > { %p5238_p4 = pnand %p5236_p10, %p5551_p12  ;;  %p5243_p2 = por %p5242_p1, %p5241_p13 }
  0x6e   : > { %p5239_p11 = pneg %p5238_p4  ;;  %p5245_p9 = por %p5244_p7, %p5243_p2 }
  0x70   : > { %p5246_p0 = pnand %p5245_p9, %p5239_p11 }
  0x72   : > { %5249 = shalt.err (!%p5246_p0)
}
  0x73   : > { %s5250_s23 = scalar_lea.vmem %s5633_s13, 4096  ;;  %s5357_s29 = smov [#allocation6]  }
  0x74   : > { %p5251_p3 = scmp.ne.s32.totalorder %s5633_s13, %s5250_s23  ;;  %s5255_s2 = sshll.u32 %s5357_s29, 4  ;;  %s5256_s2 = int_to_ptr.vmem [resolvable:$false] %s5255_s2 }
  0x75   : > { %s5257_s16 = scalar_lea.vmem %s5256_s2, 8192  ;;  %p5258_p10 = scmp.lt.s32.totalorder %s5633_s13, %s5256_s2 }
  0x76   : > { %p5253_p5 = pnand %p5251_p3, %p5551_p12  ;;  %p5259_p4 = scmp.lt.s32.totalorder %s5257_s16, %s5250_s23 }
  0x78   : > { %p5254_p6 = pneg %p5253_p5  ;;  %p5260_p13 = por %p5259_p4, %p5258_p10 }
  0x7a   : > { %p5261_p1 = pnand %p5260_p13, %p5254_p6 }
  0x7c   : > { %5264 = shalt.err (!%p5261_p1)
}
  0x7d   : > { %4913 = dma.hbm_to_vmem [thread:$0]  (!%p5527_p8), %s5631_s12, 4096, %s5633_s13, %s5545_s22, %s6450_s26, %s6450_s26, %s6449_s18  }
  0x7e   : > { %p6452_p12 = scmp.ne.s32.totalorder %s6445_s24, 0 }
  0x80   : > { %767 = sbr.rel (%p6452_p12) target bundleno = 6338 (0x18c2), region = 96 }
  0x87   : > { %s5663_s11 = sand.u32 1, %s5319_s30   ;;  %p6453_p11 = scmp.ne.s32.totalorder %s6439_s25, 0 }
  0x88   : > { %s4333_s0 = sshll.u32 %s5663_s11, 6  ;;  %s770_s27 = scalar_lea.sflag [#allocation3], %s5663_s11 }
  0x89   : > { %s5667_s14 = scalar_lea.vmem [#allocation2], %s4333_s0 }
  0x8a   : > { %5306 = dma.done.wait (%p6453_p11), %s770_s27, 1024  }
  0x8b   : > { %5308 = vsyncadd (%p6453_p11), %s770_s27, 4294966272  ;;  %s778_s22 = sand.u32 1, %s5501_s1   ;;  %s5674_s24 = scalar_lea.vmem [#allocation4], %s4333_s0 }
  0x8c   : > { %s779_s28 = scalar_lea.sflag [#allocation5], %s778_s22 }
  0x8d   : > { %5310 = dma.done.wait (%p6453_p11), %s779_s28, 5120  }
  0x8e   : > { %5312 = vsyncadd (%p6453_p11), %s779_s28, 4294962176  ;;  %p923_p8 = scmp.lt.s32.totalorder %s5501_s1, 1  ;;  %s928_s18 = ssub.s32 1, %s5501_s1  ;;  %vm1019_vm0 = vcmask 261120  }
  0x8f   : > { %p929_p2 = scmp.lt.s32.totalorder %s928_s18, 1  ;;  %s6454_s17 = sld [smem:[#allocation14_spill]] }
  0x90   : > { %s924_s26 = scalar_select %p923_p8, %s5501_s1, 1 }
  0x91   : > { %s6482_s18 = smov (!%p929_p2, %s928_s18), 1  ;;  %s6455_s19 = sld [smem:[#allocation33_spill]] }
  0x92   : > { %s4479_s13 = sshll.u32 %s924_s26, 4  ;;  %s4483_s12 = sshll.u32 %s924_s26, 3 }
  0x93   : > { %s4480_s25 = sshll.u32 %s6482_s18, 4  ;;  %s6457_s27 = sld [smem:[#allocation16_spill]] }
  0x94   : > { %s6458_s21 = sld [smem:[#allocation15_spill]]  ;;  %s4340_s18 = sshll.u32 %s5501_s1, 2 }
  0x95   : > { %s927_s20 = scalar_lea.vmem %s6454_s17, %s4479_s13  ;;  %p936_p7 = scmp.lt.s32.totalorder %s4340_s18, 7 }
  0x96   : > { %v1015_v2 = vld [vmem:[%s927_s20] sm:$0xff]   ;;  %v1016_v3 = vld [vmem:[%s927_s20 + $0x8] sm:$0xff]   ;;  %s4335_s17 = sshll.u32 %s5663_s11, 8  ;;  %s6460_s4 = sld [smem:[#allocation18_spill]] }
  0x97   : > { %s5689_s2 = scalar_lea.vmem %s6455_s19, %s4483_s12  ;;  %s4355_s12 = sshll.u32 %s5501_s1, 1 }
  0x98   : > { %6456 = sst [smem:[#allocation13_spill]] %s5689_s2  ;;  %p998_p9 = scmp.lt.s32.totalorder %s4355_s12, 3 }
  0x99   : > { %v5694_v0 = vld [vmem:[%s6457_s27] sm:$0xff]  ;;  %v5699_v1 = vld [vmem:[%s6457_s27 + $0x8] sm:$0xff]  ;;  %s6484_s18 = smov (!%p936_p7, %s4340_s18), 7  ;;  %s6461_s5 = sld [smem:[#allocation19_spill]] }
  0x9a   : > { %s933_s3 = scalar_lea.vmem %s6458_s21, %s4480_s25  ;;  %s6486_s12 = smov (!%p998_p9, %s4355_s12), 3 }
  0x9b   : > { %v1017_v4 = vld [vmem:[%s933_s3] sm:$0xff]  ;;  %v1018_v5 = vld [vmem:[%s933_s3 + $0x8] sm:$0xff]  ;;  %s4481_s20 = sshll.u32 %s6484_s18, 4  ;;  %s6459_s25 = sld [smem:[#allocation17_spill]] }
  0x9c   : > { %v1020_v6 = vsel %vm1019_vm0, %v1017_v4, 0.0  ;;  %v1023_v7 = vsel %vm1019_vm0, %v1018_v5, 0.0  ;;  %s5719_s28 = scalar_lea.vmem %s6460_s4, %s6484_s18  ;;  %s6462_s6 = sld [smem:[#allocation20_spill]] }
  0x9d   : > { %1021 = vadd.xlane.f32.xlu0 %v1020_v6  ;;  %s6463_s7 = sld [smem:[#allocation21_spill]]  ;;  %s6464_s8 = sld [smem:[#allocation22_spill]] }
  0x9e   : > { %s6465_s9 = sld [smem:[#allocation23_spill]]  ;;  %s6466_s10 = sld [smem:[#allocation24_spill]] }
  0x9f   : > { %s5724_s21 = scalar_lea.vmem %s6461_s5, %s6484_s18  ;;  %s6467_s15 = sld [smem:[#allocation26_spill]] }
  0xa0   : > { %s6468_s29 = sld [smem:[#allocation28_spill]]  ;;  %s6469_s4 = sld [smem:[#allocation30_spill]] }
  0xa1   : > { %1024 = vadd.xlane.f32.xlu0 %v1023_v7  ;;  %s5714_s16 = scalar_lea.vmem %s6459_s25, %s6484_s18  ;;  %s6470_s5 = sld [smem:[#allocation31_spill]] }
  0xa2   : > { %s5729_s11 = scalar_lea.vmem %s6462_s6, %s6484_s18  ;;  %s6471_s6 = sld [smem:[#allocation32_spill]] }
  0xa3   : > { %s5734_s23 = scalar_lea.vmem %s6463_s7, %s4481_s20  ;;  %s5739_s0 = scalar_lea.vmem %s6464_s8, %s6484_s18 }
  0xa4   : > { %s5744_s26 = scalar_lea.vmem %s6465_s9, %s4481_s20  ;;  %s5749_s1 = scalar_lea.vmem %s6466_s10, %s6484_s18 }
  0xa5   : > { %s5754_s19 = scalar_lea.vmem %s6467_s15, %s6484_s18  ;;  %s5780_s7 = scalar_lea.vmem [#allocation6], %s4335_s17 }
  0xa6   : > { %s5759_s25 = scalar_lea.vmem %s6468_s29, %s6484_s18  ;;  %s5764_s20 = scalar_lea.vmem %s6469_s4, %s6484_s18 }
  0xa7   : > { %s5769_s13 = scalar_lea.vmem %s6470_s5, %s6486_s12  ;;  %s5786_s8 = smov 0  }
  0xa8   : > { %s5774_s3 = scalar_lea.vmem %s6471_s6, %s6486_s12 }
 0x12a   : > { %v1022_v8 = vpop.xlane.xlu0 %1021 }
 0x12b   : > { %v1027_v9 = vmul.f32 0.03125, %v1022_v8 }
 0x12d   : > { %v1029_v10 = vsub.f32 %v1017_v4, %v1027_v9 }
 0x12e   : > { %v1025_v11 = vpop.xlane.xlu0 %1024 }
 0x12f   : > { %v1028_v12 = vmul.f32 0.03125, %v1025_v11  ;;  %v1031_v13 = vmul.f32 %v1029_v10, %v1029_v10 }
 0x131   : > { %v1030_v14 = vsub.f32 %v1018_v5, %v1028_v12  ;;  %v1033_v15 = vsel %vm1019_vm0, %v1031_v13, 0.0 }
 0x132   : > { %1034 = vadd.xlane.f32.xlu1 %v1033_v15 }
 0x133   : > { %v1032_v16 = vmul.f32 %v1030_v14, %v1030_v14 }
 0x135   : > { %v1036_v17 = vsel %vm1019_vm0, %v1032_v16, 0.0 }
 0x136   : > { %1037 = vadd.xlane.f32.xlu1 %v1036_v17 }
 0x1bf   : > { %v1035_v18 = vpop.xlane.xlu1 %1034 }
 0x1c0   : > { %v1039_v19 = vmul.f32 0.03125, %v1035_v18 }
 0x1c2   : > { %v1041_v20 = vadd.f32 1e-05, %v1039_v19 }
 0x1c3   : > { %v1038_v21 = vpop.xlane.xlu1 %1037 }
 0x1c4   : > { %5021 = vrsqrt.f32 %v1041_v20  ;;  %v1040_v22 = vmul.f32 0.03125, %v1038_v21 }
 0x1c6   : > { %v1042_v23 = vadd.f32 1e-05, %v1040_v22 }
 0x1c8   : > { %5023 = vrsqrt.f32 %v1042_v23 }
 0x1ce   : > { %v5022_v24 = vpop.eup %5021 }
 0x1cf   : > { %v5776_v25 = vmul.f32 %v5022_v24, %v1029_v10 }
 0x1d2   : > { %v5024_v26 = vpop.eup %5023 }
 0x1d3   : > { %v5778_v27 = vmul.f32 %v5024_v26, %v1030_v14 }
 0x1d4 LB: >> { %v1055_v28 = vsel %vm1019_vm0, %v5335_v2, 0.0  ;;  %v1058_v29 = vsel %vm1019_vm0, %v5331_v3, 0.0  ;;  %v5358_v40 = vmov 0.0   ;;  %vm5359_vm1 = vmmov 0   ;;  %s5809_s9 = sshll.u32 %s5339_s8, 4  ;;  %s4488_s10 = sshll.u32 %s5339_s8, 6  ;;  %s5339_s8 = sphi %s5786_s8, %s1052_s8   ;;  %v5335_v2 = vphi %v1015_v2, %v6473_v2   ;;  %v5331_v3 = vphi %v1016_v3, %v6472_v3  }
 0x1d5   : >> { %1056 = vadd.xlane.f32.xlu0 %v1055_v28  ;;  %4602 = vmatprep.subr.bf16.mxu1 %v5358_v40  ;;  %s1107_s30 = scalar_lea.vmem %s5734_s23, %s5809_s9  ;;  %s5818_s2 = scalar_lea.vmem %s5780_s7, %s4488_s10 [#allocation6]  ;;  %vm1252_vm2 = vcmask 64512   ;;  %vm1317_vm3 = vcmask 1043456   ;;  %vm1705_vm4 = vcmask 130048   ;;  %vm1707_vm5 = vcmask 195584  }
 0x1d6   : >> { %4606 = vmatprep.mubr.msk.bf16.mxu1 %vm5359_vm1, %v5358_v40  ;;  %4630 = vmatprep.subr.bf16.mxu0 %v5358_v40  ;;  %v5040_v41 = vld [vmem:[%s1107_s30] sm:$0xff]   ;;  %v5041_v42 = vld [vmem:[%s1107_s30 + $0x8] sm:$0xff]   ;;  %s1180_s27 = scalar_lea.vmem %s5744_s26, %s5809_s9  ;;  %s1081_s18 = scalar_lea.vmem %s5714_s16, %s5339_s8 }
 0x1d7   : >> { %4632 = vmatprep.mubr.msk.bf16.mxu0 %vm5359_vm1, %v5358_v40  ;;  %4603 = vmatpush3.bf16.msra.mxu1 %v5040_v41  ;;  %v4359_v51 = vld [vmem:[%s1081_s18] ss:$0 sm:$0xff]  ;;  %s1091_s12 = scalar_lea.vmem %s5719_s28, %s5339_s8  ;;  %v5043_v5 = vld [vmem:[%s1180_s27 + $0x8] sm:$0xff]   ;;  %s1113_s17 = scalar_lea.vmem %s5739_s0, %s5339_s8 }
 0x1d8   : >> { %4604 = vmatprep.subr.bf16.mxu1 %v5358_v40  ;;  %v4360_v55 = vld [vmem:[%s1091_s12] ss:$0 sm:$0xff]  ;;  %v1101_v59 = vmul.f32 %v4359_v51, %v5776_v25  ;;  %v1102_v60 = vmul.f32 %v4359_v51, %v5778_v27  ;;  %s1186_s15 = scalar_lea.vmem %s5749_s1, %s5339_s8  ;;  %s5360_s29 = smov 120  }
 0x1d9   : >> { %1059 = vadd.xlane.f32.xlu0 %v1058_v29  ;;  %v5042_v61 = vld [vmem:[%s1180_s27] sm:$0xff]   ;;  %s5361_s4 = smov 112   ;;  %s5362_s22 = smov 104  }
 0x1da   : >> { %v1103_v63 = vadd.f32 %v4360_v55, %v1101_v59  ;;  %v1104_v4 = vadd.f32 %v4360_v55, %v1102_v60  ;;  %v4363_v7 = vld [vmem:[%s1113_s17] ss:$0 sm:$0xff]  ;;  %s5363_s5 = smov 88   ;;  %s5364_s6 = smov 96  }
 0x1db   : >> { %4605 = vmatpush3.bf16.msra.mxu1 %v5041_v42  ;;  %v4368_v17 = vld [vmem:[%s1186_s15] ss:$0 sm:$0xff]  ;;  %s5365_s10 = smov 80   ;;  %s5366_s30 = smov 72  }
 0x1dc   : >> { %4610 = vmatprep.subr.bf16.mxu1 %v5358_v40  ;;  %v1185_v6 = vpack.c.bf16 %v1104_v4, %v1103_v63  ;;  %s2163_s27 = scalar_lea.vmem %s5667_s14, %s5809_s9 [#allocation2]  ;;  %s5367_s18 = smov 8  }
 0x1dd   : >> { %s5368_s12 = smov 16   ;;  %s5369_s17 = smov 24  }
 0x1de   : >> { %s2169_s15 = scalar_lea.vmem %s5754_s19, %s5339_s8 }
 0x262   : >> { %v1057_v30 = vpop.xlane.xlu0 %1056 }
 0x263   : >> { %v1061_v31 = vmul.f32 0.03125, %v1057_v30 }
 0x265   : >> { %v1063_v32 = vsub.f32 %v5335_v2, %v1061_v31 }
 0x266   : >> { %v1060_v33 = vpop.xlane.xlu0 %1059 }
 0x267   : >> { %v1062_v34 = vmul.f32 0.03125, %v1060_v33  ;;  %v1065_v35 = vmul.f32 %v1063_v32, %v1063_v32 }
 0x269   : >> { %v1064_v36 = vsub.f32 %v5331_v3, %v1062_v34  ;;  %v1067_v37 = vsel %vm1019_vm0, %v1065_v35, 0.0 }
 0x26a   : >> { %1068 = vadd.xlane.f32.xlu1 %v1067_v37 }
 0x26b   : >> { %v1066_v38 = vmul.f32 %v1064_v36, %v1064_v36 }
 0x26d   : >> { %v1070_v39 = vsel %vm1019_vm0, %v1066_v38, 0.0 }
 0x26e   : >> { %1071 = vadd.xlane.f32.xlu1 %v1070_v39 }
 0x2f7   : >> { %v1069_v43 = vpop.xlane.xlu1 %1068 }
 0x2f8   : >> { %v1073_v44 = vmul.f32 0.03125, %v1069_v43 }
 0x2fa   : >> { %v1075_v45 = vadd.f32 1e-05, %v1073_v44 }
 0x2fb   : >> { %v1072_v46 = vpop.xlane.xlu1 %1071 }
 0x2fc   : >> { %5056 = vrsqrt.f32 %v1075_v45  ;;  %v1074_v47 = vmul.f32 0.03125, %v1072_v46 }
 0x2fe   : >> { %v1076_v48 = vadd.f32 1e-05, %v1074_v47 }
 0x300   : >> { %5058 = vrsqrt.f32 %v1076_v48 }
 0x306   : >> { %v5057_v49 = vpop.eup %5056 }
 0x307   : >> { %v1079_v50 = vmul.f32 %v5057_v49, %v1063_v32 }
 0x309   : >> { %v1089_v54 = vmul.f32 %v4359_v51, %v1079_v50 }
 0x30a   : >> { %v5059_v52 = vpop.eup %5058 }
 0x30b   : >> { %v1080_v53 = vmul.f32 %v5059_v52, %v1064_v36  ;;  %v1099_v57 = vadd.f32 %v4360_v55, %v1089_v54 }
 0x30d   : >> { %v1090_v56 = vmul.f32 %v4359_v51, %v1080_v53 }
 0x30f   : >> { %v1100_v58 = vadd.f32 %v4360_v55, %v1090_v56 }
 0x311   : >> { %v1112_v62 = vpack.c.bf16 %v1100_v58, %v1099_v57 }
 0x313   : >> { %4607 = vmatmul.mubr.msk.bf16.vlgmr.msra.gmra.mrb[0].mxu1 %vm1019_vm0, %v1112_v62 }
 0x314   : >> { %4611 = vmatpush3.bf16.msra.mxu1 %v5042_v61  ;;  %4614 = vmatprep.mubr.msk.bf16.mxu1 %vm5359_vm1, %v5358_v40 }
 0x315   : >> { %4612 = vmatprep.subr.bf16.mxu1 %v5358_v40 }
 0x318   : >> { %4613 = vmatpush3.bf16.msra.mxu1 %v5043_v5 }
 0x319   : >> { %4618 = vmatprep.subr.bf16.mxu1 %v5358_v40 }
 0x31b   : >> { %4615 = vmatmul.mubr.msk.bf16.vlgmr.msra.gmra.mrb[4].mxu1 %vm1019_vm0, %v1185_v6 }
 0x31c   : >> { %4620 = vmatprep.mubr.msk.bf16.mxu1 %vm5359_vm1, %v5358_v40 }
 0x3e6   : >> { %v1170_v8 = vpop.f32.mrb[0].mxu1 }
 0x3e7   : >> { %v1171_v9 = vadd.f32 %v4363_v7, %v1170_v8  ;;  %v4608_v10 = vpop.f32.mrb[1].mxu1 }
 0x3e8   : >> { %v1173_v11 = vpop.f32.mrb[2].mxu1 }
 0x3e9   : >> { %v1174_v12 = vadd.f32 %v4363_v7, %v1173_v11  ;;  %v4609_v13 = vpop.f32.mrb[3].mxu1  ;;  %v1177_v14 = vmul.f32 0.35355338, %v1171_v9 }
 0x3eb   : >> { %v1178_v15 = vmul.f32 0.35355338, %v1174_v12 }
 0x3ed   : >> { %v1251_v16 = vpack.c.bf16 %v1178_v15, %v1177_v14 }
 0x3ee   : >> { %v1243_v18 = vpop.f32.mrb[4].mxu1 }
 0x3ef   : >> { %1362 = vrot.lane.b32.xlu1 %v1251_v16, %s5360_s29  ;;  %v4616_v19 = vpop.f32.mrb[5].mxu1  ;;  %v1244_v21 = vadd.f32 %v4368_v17, %v1243_v18  ;;  %v1709_v29 = vrot.slane %v1251_v16, 4 }
 0x3f0   : >> { %v1246_v20 = vpop.f32.mrb[6].mxu1 }
 0x3f1   : >> { %v1247_v22 = vadd.f32 %v4368_v17, %v1246_v20  ;;  %v4617_v23 = vpop.f32.mrb[7].mxu1 }
 0x3f3   : >> { %v5842_v24 = vpack.c.bf16 %v1247_v22, %v1244_v21 }
 0x3f5   : >> { %1474 = vrot.lane.b32.xlu1 %v5842_v24, %s5361_s4  ;;  %1364 = vrot.lane.b32.xlu0 %v5842_v24, %s5360_s29  ;;  %v1257_v26 = vsel %vm1252_vm2, %v5842_v24, 0  ;;  %v5851_v28 = vrot.slane %v5842_v24, 4 }
 0x3f6   : >> { %4619 = vmatpush3.bf16.xpose.msra.mxu1 %v1257_v26 }
 0x3f7   : >> { %4624 = vmatprep.subr.bf16.mxu1 %v5358_v40  ;;  %v1715_v39 = vsel %vm1252_vm2, %v5851_v28, 0 }
 0x3f9   : >> { %1472 = vrot.lane.b32.xlu1 %v1251_v16, %s5361_s4  ;;  %1584 = vrot.lane.b32.xlu0 %v5842_v24, %s5362_s22 }
 0x3fd   : >> { %1582 = vrot.lane.b32.xlu1 %v1251_v16, %s5362_s22  ;;  %1819 = vrot.lane.b32.xlu0 %v5851_v28, %s5360_s29 }
 0x3fe   : >> { %4621 = vmatmul.mubr.msk.bf16.vlgmr.msra.gmra.mrb[8].mxu1 %vm1252_vm2, %v1251_v16 }
 0x3ff   : >> { %4626 = vmatprep.mubr.msk.bf16.mxu1 %vm5359_vm1, %v5358_v40 }
 0x401   : >> { %1817 = vrot.lane.b32.xlu1 %v1709_v29, %s5360_s29  ;;  %1929 = vrot.lane.b32.xlu0 %v5851_v28, %s5361_s4  ;;  %s2282_s29 = scalar_lea.vmem %s5674_s24, %s5809_s9 [#allocation4]  ;;  %s2261_s9 = scalar_lea.vmem %s5724_s21, %s5339_s8 }
 0x405   : >> { %1927 = vrot.lane.b32.xlu1 %v1709_v29, %s5361_s4  ;;  %2039 = vrot.lane.b32.xlu0 %v5851_v28, %s5362_s22  ;;  %s2271_s4 = scalar_lea.vmem %s5729_s11, %s5339_s8 }
 0x409   : >> { %2037 = vrot.lane.b32.xlu1 %v1709_v29, %s5362_s22  ;;  %s2288_s22 = scalar_lea.vmem %s5759_s25, %s5339_s8 }
 0x40d   : >> { %1424 = vrot.lane.b32.xlu1 %v5842_v24, %s5363_s5 }
 0x461   : >> { %v1363_v32 = vpop.permute.xlu1 %1362 }
 0x467   : >> { %v1365_v30 = vpop.permute.xlu0 %1364  ;;  %v1475_v33 = vpop.permute.xlu1 %1474 }
 0x468   : >> { %v1370_v31 = vsel %vm1252_vm2, %v1365_v30, 0  ;;  %v1480_v34 = vsel %vm1252_vm2, %v1475_v33, 0 }
 0x469   : >> { %4631 = vmatpush3.bf16.xpose.msra.mxu0 %v1370_v31 }
 0x46a   : >> { %4642 = vmatprep.subr.bf16.mxu0 %v5358_v40 }
 0x46b   : >> { %v1585_v35 = vpop.permute.xlu0 %1584  ;;  %v1473_v36 = vpop.permute.xlu1 %1472 }
 0x46c   : >> { %v1590_v37 = vsel %vm1252_vm2, %v1585_v35, 0 }
 0x46f   : >> { %v1583_v38 = vpop.permute.xlu1 %1582  ;;  %v1820_v41 = vpop.permute.xlu0 %1819 }
 0x470   : >> { %4633 = vmatmul.mubr.msk.bf16.vlgmr.msra.gmra.mrb[0].mxu0 %vm1252_vm2, %v1363_v32  ;;  %v1825_v42 = vsel %vm1252_vm2, %v1820_v41, 0 }
 0x471   : >> { %4643 = vmatpush3.bf16.xpose.msra.mxu0 %v1480_v34  ;;  %4644 = vmatprep.mubr.msk.bf16.mxu0 %vm5359_vm1, %v5358_v40 }
 0x472   : >> { %4654 = vmatprep.subr.bf16.mxu0 %v5358_v40 }
 0x473   : >> { %v1930_v43 = vpop.permute.xlu0 %1929  ;;  %v1818_v44 = vpop.permute.xlu1 %1817 }
 0x474   : >> { %v1935_v45 = vsel %vm1252_vm2, %v1930_v43, 0 }
 0x477   : >> { %v2040_v46 = vpop.permute.xlu0 %2039  ;;  %v1928_v47 = vpop.permute.xlu1 %1927 }
 0x478   : >> { %4645 = vmatmul.mubr.msk.bf16.vlgmr.msra.gmra.mrb[4].mxu0 %vm1252_vm2, %v1473_v36  ;;  %v2045_v48 = vsel %vm1252_vm2, %v2040_v46, 0 }
 0x479   : >> { %4655 = vmatpush3.bf16.xpose.msra.mxu0 %v1590_v37  ;;  %4656 = vmatprep.mubr.msk.bf16.mxu0 %vm5359_vm1, %v5358_v40 }
 0x47a   : >> { %4666 = vmatprep.subr.bf16.mxu0 %v5358_v40 }
 0x47b   : >> { %v2038_v49 = vpop.permute.xlu1 %2037 }
 0x480   : >> { %4657 = vmatmul.mubr.msk.bf16.vlgmr.msra.gmra.mrb[8].mxu0 %vm1252_vm2, %v1583_v38 }
 0x481   : >> { %4667 = vmatpush3.bf16.xpose.msra.mxu0 %v1715_v39  ;;  %4668 = vmatprep.mubr.msk.bf16.mxu0 %vm5359_vm1, %v5358_v40 }
 0x482   : >> { %4678 = vmatprep.subr.bf16.mxu0 %v5358_v40 }
 0x488   : >> { %4669 = vmatmul.mubr.msk.bf16.vlgmr.msra.gmra.mrb[12].mxu0 %vm1252_vm2, %v1709_v29 }
 0x489   : >> { %4679 = vmatpush3.bf16.xpose.msra.mxu0 %v1825_v42  ;;  %4680 = vmatprep.mubr.msk.bf16.mxu0 %vm5359_vm1, %v5358_v40  ;;  %v1425_v42 = vpop.permute.xlu1 %1424 }
 0x48a   : >> { %4690 = vmatprep.subr.bf16.mxu0 %v5358_v40 }
 0x490   : >> { %4681 = vmatmul.mubr.msk.bf16.vlgmr.msra.gmra.mrb[16].mxu0 %vm1252_vm2, %v1818_v44 }
 0x491   : >> { %4691 = vmatpush3.bf16.xpose.msra.mxu0 %v1935_v45  ;;  %4692 = vmatprep.mubr.msk.bf16.mxu0 %vm5359_vm1, %v5358_v40 }
 0x492   : >> { %4702 = vmatprep.subr.bf16.mxu0 %v5358_v40 }
 0x498   : >> { %4693 = vmatmul.mubr.msk.bf16.vlgmr.msra.gmra.mrb[20].mxu0 %vm1252_vm2, %v1928_v47 }
 0x499   : >> { %4703 = vmatpush3.bf16.xpose.msra.mxu0 %v2045_v48  ;;  %4704 = vmatprep.mubr.msk.bf16.mxu0 %vm5359_vm1, %v5358_v40 }
 0x49a   : >> { %4714 = vmatprep.subr.bf16.mxu0 %v5358_v40 }
 0x4a0   : >> { %4705 = vmatmul.mubr.msk.bf16.vlgmr.msra.gmra.mrb[24].mxu0 %vm1252_vm2, %v2038_v49 }
 0x4a1   : >> { %4718 = vmatprep.mubr.msk.bf16.mxu0 %vm5359_vm1, %v5358_v40 }
 0x4d1   : >> { %v1293_v50 = vpop.f32.mrb[8].mxu1 }
 0x4d2   : >> { %v4622_v51 = vpop.f32.mrb[9].mxu1  ;;  %v1299_v52 = vsel %vm1252_vm2, %v1293_v50, -inf }
 0x4d3   : >> { %1300 = vmax.xlane.f32.xlu0 %v1299_v52  ;;  %v1296_v53 = vpop.f32.mrb[10].mxu1 }
 0x4d4   : >> { %v4623_v54 = vpop.f32.mrb[11].mxu1 }
 0x4e9   : >> { %1312 = vrot.lane.b32.xlu0 %v5842_v24, %s5364_s6 }
 0x543   : >> { %v1406_v55 = vpop.f32.mrb[0].mxu0 }
 0x544   : >> { %v4634_v56 = vpop.f32.mrb[1].mxu0  ;;  %v1412_v57 = vsel %vm1252_vm2, %v1406_v55, -inf }
 0x545   : >> { %1413 = vmax.xlane.f32.xlu1 %v1412_v57  ;;  %v1409_v58 = vpop.f32.mrb[2].mxu0 }
 0x546   : >> { %v4635_v59 = vpop.f32.mrb[3].mxu0 }
 0x54b   : >> { %v1516_v60 = vpop.f32.mrb[4].mxu0 }
 0x54c   : >> { %v4646_v61 = vpop.f32.mrb[5].mxu0  ;;  %v1522_v62 = vsel %vm1252_vm2, %v1516_v60, -inf }
 0x54d   : >> { %v1519_v63 = vpop.f32.mrb[6].mxu0  ;;  %1523 = vmax.xlane.f32.xlu0 %v1522_v62 }
 0x54e   : >> { %v4647_v4 = vpop.f32.mrb[7].mxu0 }
 0x553   : >> { %v5902_v5 = vpop.f32.mrb[8].mxu0 }
 0x554   : >> { %v4658_v6 = vpop.f32.mrb[9].mxu0  ;;  %v1632_v7 = vsel %vm1252_vm2, %v5902_v5, -inf }
 0x555   : >> { %v1629_v8 = vpop.f32.mrb[10].mxu0  ;;  %1633 = vmax.xlane.f32.xlu0 %v1632_v7 }
 0x556   : >> { %v4659_v9 = vpop.f32.mrb[11].mxu0 }
 0x55b   : >> { %v5906_v10 = vpop.f32.mrb[12].mxu0 }
 0x55c   : >> { %v4670_v11 = vpop.f32.mrb[13].mxu0  ;;  %v1757_v12 = vsel %vm1252_vm2, %v5906_v10, -inf }
 0x55d   : >> { %v1754_v13 = vpop.f32.mrb[14].mxu0  ;;  %1758 = vmax.xlane.f32.xlu0 %v1757_v12 }
 0x55e   : >> { %v4671_v14 = vpop.f32.mrb[15].mxu0 }
 0x560   : >> { %v1301_v15 = vpop.xlane.xlu0 %1300 }
 0x561   : >> { %v1302_v37 = vsub.f32 %v1293_v50, %v1301_v15 }
 0x563   : >> { %v1861_v16 = vpop.f32.mrb[16].mxu0  ;;  %v1303_v38 = vmul.f32 1.442695, %v1302_v37 }
 0x564   : >> { %v1313_v17 = vpop.permute.xlu0 %1312  ;;  %v4682_v18 = vpop.f32.mrb[17].mxu0  ;;  %v1867_v19 = vsel %vm1252_vm2, %v1861_v16, -inf }
 0x565   : >> { %v1319_v20 = vsel %vm1317_vm3, %v1313_v17, 0  ;;  %1868 = vmax.xlane.f32.xlu1 %v1867_v19  ;;  %v1864_v21 = vpop.f32.mrb[18].mxu0  ;;  %5060 = vpow2.f32 %v1303_v38  ;;  %v1430_v18 = vsel %vm1317_vm3, %v1425_v42, 0 }
 0x566   : >> { %4625 = vmatpush3.bf16.msra.mxu1 %v1319_v20  ;;  %v4683_v22 = vpop.f32.mrb[19].mxu0 }
 0x567   : >> { %4636 = vmatprep.subr.bf16.mxu1 %v5358_v40 }
 0x56b   : >> { %v1971_v23 = vpop.f32.mrb[20].mxu0 }
 0x56c   : >> { %v4694_v26 = vpop.f32.mrb[21].mxu0  ;;  %v1977_v29 = vsel %vm1252_vm2, %v1971_v23, -inf }
 0x56d   : >> { %v1974_v30 = vpop.f32.mrb[22].mxu0  ;;  %1978 = vmax.xlane.f32.xlu0 %v1977_v29 }
 0x56e   : >> { %v4695_v31 = vpop.f32.mrb[23].mxu0 }
 0x56f   : >> { %v5061_v39 = vpop.eup %5060 }
 0x570   : >> { %v1305_v41 = vsel %vm1252_vm2, %v5061_v39, 0.0 }
 0x573   : >> { %v5914_v32 = vpop.f32.mrb[24].mxu0 }
 0x574   : >> { %v4706_v33 = vpop.f32.mrb[25].mxu0  ;;  %v2087_v34 = vsel %vm1252_vm2, %v5914_v32, -inf }
 0x575   : >> { %2088 = vmax.xlane.f32.xlu1 %v2087_v34  ;;  %v2084_v35 = vpop.f32.mrb[26].mxu0 }
 0x576   : >> { %v4707_v36 = vpop.f32.mrb[27].mxu0 }
 0x583   : >> { %1534 = vrot.lane.b32.xlu0 %v5842_v24, %s5365_s10 }
 0x5a2   : >> { %1306 = vadd.xlane.f32.xlu0 %v1305_v41 }
 0x5d2   : >> { %v1414_v43 = vpop.xlane.xlu1 %1413 }
 0x5d3   : >> { %v1415_v44 = vsub.f32 %v1406_v55, %v1414_v43 }
 0x5d5   : >> { %v1416_v45 = vmul.f32 1.442695, %v1415_v44 }
 0x5d7   : >> { %5062 = vpow2.f32 %v1416_v45 }
 0x5da   : >> { %v1524_v46 = vpop.xlane.xlu0 %1523 }
 0x5db   : >> { %v1525_v47 = vsub.f32 %v1516_v60, %v1524_v46 }
 0x5dd   : >> { %v1526_v48 = vmul.f32 1.442695, %v1525_v47 }
 0x5df   : >> { %5064 = vpow2.f32 %v1526_v48 }
 0x5e1   : >> { %v5921_v49 = vpop.eup %5062 }
 0x5e2   : >> { %v1418_v50 = vsel %vm1252_vm2, %v5921_v49, 0.0  ;;  %v1634_v53 = vpop.xlane.xlu0 %1633 }
 0x5e3   : >> { %1419 = vadd.xlane.f32.xlu1 %v1418_v50  ;;  %v1635_v54 = vsub.f32 %v5902_v5, %v1634_v53 }
 0x5e5   : >> { %v1636_v56 = vmul.f32 1.442695, %v1635_v54 }
 0x5e7   : >> { %5066 = vpow2.f32 %v1636_v56 }
 0x5e9   : >> { %v5925_v51 = vpop.eup %5064 }
 0x5ea   : >> { %v1528_v52 = vsel %vm1252_vm2, %v5925_v51, 0.0  ;;  %v1759_v55 = vpop.xlane.xlu0 %1758 }
 0x5eb   : >> { %1529 = vadd.xlane.f32.xlu0 %v1528_v52  ;;  %v1760_v57 = vsub.f32 %v5906_v10, %v1759_v55 }
 0x5ed   : >> { %v1761_v61 = vmul.f32 1.442695, %v1760_v57 }
 0x5ef   : >> { %5068 = vpow2.f32 %v1761_v61 }
 0x5f1   : >> { %v5067_v6 = vpop.eup %5066 }
 0x5f2   : >> { %v1869_v58 = vpop.xlane.xlu1 %1868 }
 0x5f3   : >> { %v1870_v60 = vsub.f32 %v1861_v16, %v1869_v58 }
 0x5f4   : >> { %1769 = vrot.lane.b32.xlu1 %v5851_v28, %s5364_s6 }
 0x5f5   : >> { %v1871_v63 = vmul.f32 1.442695, %v1870_v60 }
 0x5f7   : >> { %5070 = vpow2.f32 %v1871_v63 }
 0x5f9   : >> { %v5936_v7 = vpop.eup %5068 }
 0x5fa   : >> { %v1979_v59 = vpop.xlane.xlu0 %1978  ;;  %v1763_v8 = vsel %vm1252_vm2, %v5936_v7, 0.0 }
 0x5fb   : >> { %v1980_v62 = vsub.f32 %v1971_v23, %v1979_v59 }
 0x5fd   : >> { %v1981_v4 = vmul.f32 1.442695, %v1980_v62 }
 0x5fe   : >> { %v1535_v12 = vpop.permute.xlu0 %1534 }
 0x5ff   : >> { %5072 = vpow2.f32 %v1981_v4 }
 0x601   : >> { %1644 = vrot.lane.b32.xlu0 %v5842_v24, %s5366_s30  ;;  %v1638_v24 = vsel %vm1252_vm2, %v5067_v6, 0.0  ;;  %v5938_v5 = vpop.eup %5070 }
 0x602   : >> { %v1873_v10 = vsel %vm1252_vm2, %v5938_v5, 0.0  ;;  %v2089_v16 = vpop.xlane.xlu1 %2088 }
 0x603   : >> { %v2090_v19 = vsub.f32 %v5914_v32, %v2089_v16  ;;  %v1540_v32 = vsel %vm1317_vm3, %v1535_v12, 0 }
 0x605   : >> { %v2091_v20 = vmul.f32 1.442695, %v2090_v19 }
 0x609   : >> { %v5942_v9 = vpop.eup %5072 }
 0x60a   : >> { %v1983_v11 = vsel %vm1252_vm2, %v5942_v9, 0.0 }
 0x618   : >> { %1639 = vadd.xlane.f32.xlu1 %v1638_v24 }
 0x61c   : >> { %1764 = vadd.xlane.f32.xlu1 %v1763_v8 }
 0x620   : >> { %1874 = vadd.xlane.f32.xlu1 %v1873_v10  ;;  %1984 = vadd.xlane.f32.xlu0 %v1983_v11 }
 0x62f   : >> { %v1307_v13 = vpop.xlane.xlu0 %1306 }
 0x630   : >> { %5074 = vrcp.f32 %v1307_v13 }
 0x631   : >> { %1879 = vrot.lane.b32.xlu1 %v5851_v28, %s5363_s5  ;;  %5076 = vpow2.f32 %v2091_v20  ;;  %s2465_s5 = scalar_lea.vmem %s5764_s20, %s5339_s8  ;;  %s1052_s8 = sadd.s32 1, %s5339_s8  }
 0x632   : >> { %p1049_p0 = scmp.ge.s32.totalorder %s1052_s8, 2  }
 0x633   : > { %s6080_s8 = smov (%p1049_p0), 2  }
 0x636   : >> { %1989 = vrot.lane.b32.xlu0 %v5851_v28, %s5365_s10 }
 0x63a   : >> { %v5075_v14 = vpop.eup %5074 }
 0x63b   : >> { %v1309_v15 = vmul.f32 %v5075_v14, %v5061_v39  ;;  %v5958_v21 = vpop.eup %5076 }
 0x63c   : >> { %v2093_v22 = vsel %vm1252_vm2, %v5958_v21, 0.0 }
 0x63d   : >> { %v1310_v17 = vpack.c.bf16 %v1309_v15, %v1309_v15 }
 0x63f   : >> { %4627 = vmatmul.mubr.msk.bf16.vlgmr.msra.gmra.mrb[12].mxu1 %vm1252_vm2, %v1310_v17 }
 0x640   : >> { %4637 = vmatpush3.bf16.msra.mxu1 %v1430_v18  ;;  %4638 = vmatprep.mubr.msk.bf16.mxu1 %vm5359_vm1, %v5358_v40 }
 0x641   : >> { %4648 = vmatprep.subr.bf16.mxu1 %v5358_v40 }
 0x655   : >> { %2094 = vadd.xlane.f32.xlu1 %v2093_v22 }
 0x666   : >> { %2099 = vrot.lane.b32.xlu1 %v5851_v28, %s5366_s30 }
 0x670   : >> { %v1420_v23 = vpop.xlane.xlu1 %1419 }
 0x671   : >> { %5078 = vrcp.f32 %v1420_v23 }
 0x674   : >> { %v1770_v37 = vpop.permute.xlu1 %1769 }
 0x675   : >> { %v1775_v46 = vsel %vm1317_vm3, %v1770_v37, 0 }
 0x678   : >> { %v1530_v26 = vpop.xlane.xlu0 %1529 }
 0x679   : >> { %5080 = vrcp.f32 %v1530_v26 }
 0x67b   : >> { %v5079_v29 = vpop.eup %5078 }
 0x67c   : >> { %v1422_v30 = vmul.f32 %v5079_v29, %v5921_v49  ;;  %v1645_v34 = vpop.permute.xlu0 %1644 }
 0x67d   : >> { %v1650_v36 = vsel %vm1317_vm3, %v1645_v34, 0 }
 0x67e   : >> { %v1423_v31 = vpack.c.bf16 %v1422_v30, %v1422_v30 }
 0x680   : >> { %4639 = vmatmul.mubr.msk.bf16.vlgmr.msra.gmra.mrb[16].mxu1 %vm1252_vm2, %v1423_v31 }
 0x681   : >> { %4649 = vmatpush3.bf16.msra.mxu1 %v1540_v32  ;;  %4650 = vmatprep.mubr.msk.bf16.mxu1 %vm5359_vm1, %v5358_v40  ;;  %v5044_v32 = vld [vmem:[%s2163_s27] sm:$0xff]  }
 0x682   : >> { %4660 = vmatprep.subr.bf16.mxu1 %v5358_v40  ;;  %4715 = vmatpush3.bf16.msra.mxu0 %v5044_v32 }
 0x683   : >> { %v5081_v33 = vpop.eup %5080  ;;  %4716 = vmatprep.subr.bf16.mxu0 %v5358_v40 }
 0x684   : >> { %v1532_v28 = vmul.f32 %v5081_v33, %v5925_v51 }
 0x686   : >> { %v1533_v35 = vpack.c.bf16 %v1532_v28, %v1532_v28 }
 0x688   : >> { %4651 = vmatmul.mubr.msk.bf16.vlgmr.msra.gmra.mrb[20].mxu1 %vm1252_vm2, %v1533_v35 }
 0x689   : >> { %4661 = vmatpush3.bf16.msra.mxu1 %v1650_v36  ;;  %4662 = vmatprep.mubr.msk.bf16.mxu1 %vm5359_vm1, %v5358_v40 }
 0x68a   : >> { %4672 = vmatprep.subr.bf16.mxu1 %v5358_v40 }
 0x6a5   : >> { %v1640_v38 = vpop.xlane.xlu1 %1639 }
 0x6a6   : >> { %5082 = vrcp.f32 %v1640_v38 }
 0x6a9   : >> { %v1765_v39 = vpop.xlane.xlu1 %1764 }
 0x6aa   : >> { %5084 = vrcp.f32 %v1765_v39  ;;  %v5045_v39 = vld [vmem:[%s2163_s27 + $0x8] sm:$0xff]  }
 0x6ab   : >> { %4717 = vmatpush3.bf16.msra.mxu0 %v5045_v39  ;;  %v4393_v39 = vld [vmem:[%s2261_s9] ss:$0 sm:$0xff] }
 0x6ac   : >> { %4730 = vmatprep.subr.bf16.mxu0 %v5358_v40 }
 0x6ad   : >> { %v1875_v41 = vpop.xlane.xlu1 %1874  ;;  %v1985_v48 = vpop.xlane.xlu0 %1984 }
 0x6ae   : >> { %5086 = vrcp.f32 %v1875_v41 }
 0x6af   : >> { %5088 = vrcp.f32 %v1985_v48 }
 0x6b0   : >> { %v5083_v42 = vpop.eup %5082 }
 0x6b1   : >> { %v1642_v43 = vmul.f32 %v5083_v42, %v5067_v6  ;;  %v1880_v49 = vpop.permute.xlu1 %1879  ;;  %v1990_v54 = vpop.permute.xlu0 %1989 }
 0x6b2   : >> { %v1885_v52 = vsel %vm1317_vm3, %v1880_v49, 0  ;;  %v1995_v57 = vsel %vm1317_vm3, %v1990_v54, 0 }
 0x6b3   : >> { %v1643_v44 = vpack.c.bf16 %v1642_v43, %v1642_v43 }
 0x6b4   : >> { %v5085_v45 = vpop.eup %5084 }
 0x6b5   : >> { %4663 = vmatmul.mubr.msk.bf16.vlgmr.msra.gmra.mrb[24].mxu1 %vm1252_vm2, %v1643_v44  ;;  %v1767_v47 = vmul.f32 %v5085_v45, %v5936_v7 }
 0x6b6   : >> { %4673 = vmatpush3.bf16.msra.mxu1 %v1775_v46  ;;  %4674 = vmatprep.mubr.msk.bf16.mxu1 %vm5359_vm1, %v5358_v40 }
 0x6b7   : >> { %4684 = vmatprep.subr.bf16.mxu1 %v5358_v40  ;;  %v1768_v50 = vpack.c.bf16 %v1767_v47, %v1767_v47 }
 0x6b8   : >> { %v5087_v51 = vpop.eup %5086 }
 0x6b9   : >> { %v1877_v53 = vmul.f32 %v5087_v51, %v5938_v5  ;;  %v5089_v56 = vpop.eup %5088 }
 0x6ba   : >> { %v1987_v58 = vmul.f32 %v5089_v56, %v5942_v9 }
 0x6bb   : >> { %v1878_v55 = vpack.c.bf16 %v1877_v53, %v1877_v53 }
 0x6bc   : >> { %v1988_v59 = vpack.c.bf16 %v1987_v58, %v1987_v58 }
 0x6bd   : >> { %4675 = vmatmul.mubr.msk.bf16.vlgmr.msra.gmra.mrb[28].mxu1 %vm1252_vm2, %v1768_v50 }
 0x6be   : >> { %4685 = vmatpush3.bf16.msra.mxu1 %v1885_v52  ;;  %4686 = vmatprep.mubr.msk.bf16.mxu1 %vm5359_vm1, %v5358_v40 }
 0x6bf   : >> { %4696 = vmatprep.subr.bf16.mxu1 %v5358_v40 }
 0x6c5   : >> { %4687 = vmatmul.mubr.msk.bf16.vlgmr.msra.gmra.mrb[32].mxu1 %vm1252_vm2, %v1878_v55 }
 0x6c6   : >> { %4697 = vmatpush3.bf16.msra.mxu1 %v1995_v57  ;;  %4698 = vmatprep.mubr.msk.bf16.mxu1 %vm5359_vm1, %v5358_v40 }
 0x6c7   : >> { %4708 = vmatprep.subr.bf16.mxu1 %v5358_v40 }
 0x6cd   : >> { %4699 = vmatmul.mubr.msk.bf16.vlgmr.msra.gmra.mrb[36].mxu1 %vm1252_vm2, %v1988_v59 }
 0x6ce   : >> { %4710 = vmatprep.mubr.msk.bf16.mxu1 %vm5359_vm1, %v5358_v40 }
 0x6e2   : >> { %v2095_v60 = vpop.xlane.xlu1 %2094 }
 0x6e3   : >> { %5090 = vrcp.f32 %v2095_v60 }
 0x6e6   : >> { %v2100_v61 = vpop.permute.xlu1 %2099 }
 0x6e7   : >> { %v2105_v62 = vsel %vm1317_vm3, %v2100_v61, 0 }
 0x6e8   : >> { %4709 = vmatpush3.bf16.msra.mxu1 %v2105_v62  ;;  %v4389_v62 = vld [vmem:[%s2169_s15] ss:$0 sm:$0xff] }
 0x6e9   : >> { %4722 = vmatprep.subr.bf16.mxu1 %v5358_v40 }
 0x6ed   : >> { %v5091_v63 = vpop.eup %5090 }
 0x6ee   : >> { %v2097_v4 = vmul.f32 %v5091_v63, %v5958_v21 }
 0x6f0   : >> { %v2098_v6 = vpack.c.bf16 %v2097_v4, %v2097_v4 }
 0x6f2   : >> { %4711 = vmatmul.mubr.msk.bf16.vlgmr.msra.gmra.mrb[40].mxu1 %vm1252_vm2, %v2098_v6 }
 0x6f3   : >> { %4726 = vmatprep.mubr.msk.bf16.mxu1 %vm5359_vm1, %v5358_v40 }
 0x712   : >> { %v1355_v24 = vpop.f32.mrb[12].mxu1 }
 0x713   : >> { %v4628_v7 = vpop.f32.mrb[13].mxu1 }
 0x714   : >> { %v1358_v5 = vpop.f32.mrb[14].mxu1 }
 0x715   : >> { %v4629_v8 = vpop.f32.mrb[15].mxu1 }
 0x753   : >> { %v1466_v9 = vpop.f32.mrb[16].mxu1 }
 0x754   : >> { %v4640_v10 = vpop.f32.mrb[17].mxu1 }
 0x755   : >> { %v1469_v11 = vpop.f32.mrb[18].mxu1 }
 0x756   : >> { %v4641_v12 = vpop.f32.mrb[19].mxu1 }
 0x75b   : >> { %v1576_v13 = vpop.f32.mrb[20].mxu1 }
 0x75c   : >> { %v4652_v14 = vpop.f32.mrb[21].mxu1 }
 0x75d   : >> { %v1579_v15 = vpop.f32.mrb[22].mxu1 }
 0x75e   : >> { %v4653_v16 = vpop.f32.mrb[23].mxu1 }
 0x788   : >> { %v1686_v17 = vpop.f32.mrb[24].mxu1 }
 0x789   : >> { %v4664_v18 = vpop.f32.mrb[25].mxu1 }
 0x78a   : >> { %v1689_v19 = vpop.f32.mrb[26].mxu1 }
 0x78b   : >> { %v4665_v20 = vpop.f32.mrb[27].mxu1 }
 0x78c   : >> { %v5046_v20 = vld [vmem:[%s2282_s29] sm:$0xff]  }
 0x78d   : >> { %4723 = vmatpush3.bf16.msra.mxu1 %v5046_v20 }
 0x78e   : >> { %4724 = vmatprep.subr.bf16.mxu1 %v5358_v40 }
 0x790   : >> { %v1811_v21 = vpop.f32.mrb[28].mxu1 }
 0x791   : >> { %v4676_v22 = vpop.f32.mrb[29].mxu1 }
 0x792   : >> { %v1814_v23 = vpop.f32.mrb[30].mxu1  ;;  %v5048_v22 = vld [vmem:[%s5818_s2] sm:$0xff]  }
 0x793   : >> { %v4677_v26 = vpop.f32.mrb[31].mxu1  ;;  %v5049_v23 = vld [vmem:[%s5818_s2 + $0x8] sm:$0xff]  }
 0x794   : >> { %v5050_v26 = vld [vmem:[%s5818_s2 + $0x10] sm:$0xff]  }
 0x798   : >> { %v1921_v29 = vpop.f32.mrb[32].mxu1 }
 0x799   : >> { %v5025_v30 = vpack.i.bf16 %v1921_v29, %v1466_v9  ;;  %v4688_v31 = vpop.f32.mrb[33].mxu1  ;;  %v5051_v29 = vld [vmem:[%s5818_s2 + $0x18] sm:$0xff]  }
 0x79a   : >> { %v1924_v33 = vpop.f32.mrb[34].mxu1  ;;  %v5053_v31 = vld [vmem:[%s5818_s2 + $0x28] sm:$0xff]  }
 0x79b   : >> { %5026 = vrot.lane.b32.xlu0 %v5025_v30, %s5367_s18  ;;  %v4689_v28 = vpop.f32.mrb[35].mxu1  ;;  %v5052_v30 = vld [vmem:[%s5818_s2 + $0x20] sm:$0xff]  }
 0x7a0   : >> { %v2031_v34 = vpop.f32.mrb[36].mxu1 }
 0x7a1   : >> { %v5030_v35 = vpack.i.bf16 %v2031_v34, %v1576_v13  ;;  %v4700_v36 = vpop.f32.mrb[37].mxu1 }
 0x7a2   : >> { %v2034_v37 = vpop.f32.mrb[38].mxu1 }
 0x7a3   : >> { %5031 = vrot.lane.b32.xlu1 %v5030_v35, %s5368_s12  ;;  %v4701_v38 = vpop.f32.mrb[39].mxu1 }
 0x7c5   : >> { %v2141_v41 = vpop.f32.mrb[40].mxu1 }
 0x7c6   : >> { %v5035_v42 = vpack.i.bf16 %v2141_v41, %v1686_v17  ;;  %v4712_v43 = vpop.f32.mrb[41].mxu1 }
 0x7c7   : >> { %v2144_v44 = vpop.f32.mrb[42].mxu1 }
 0x7c8   : >> { %5036 = vrot.lane.b32.xlu0 %v5035_v42, %s5369_s17  ;;  %v4713_v45 = vpop.f32.mrb[43].mxu1  ;;  %v4394_v44 = vld [vmem:[%s2271_s4] ss:$0 sm:$0xff] }
 0x80d   : >> { %v5027_v46 = vpop.permute.xlu0 %5026 }
 0x80e   : >> { %v5029_v48 = vunpack.i.h.bf16 %v5027_v46  ;;  %v5028_v49 = vunpack.i.l.bf16 %v5027_v46 }
 0x810   : >> { %v2159_v53 = vsel %vm1252_vm2, %v1811_v21, %v5029_v48  ;;  %v1704_v54 = vsel %vm1252_vm2, %v1355_v24, %v5028_v49  ;;  %v5047_v21 = vld [vmem:[%s2282_s29 + $0x8] sm:$0xff]   ;;  %v5054_v49 = vld [vmem:[%s5818_s2 + $0x30] sm:$0xff]  }
 0x811   : >> { %4725 = vmatpush3.bf16.msra.mxu1 %v5047_v21 }
 0x815   : >> { %v5032_v47 = vpop.permute.xlu1 %5031 }
 0x816   : >> { %v5034_v50 = vunpack.i.h.bf16 %v5032_v47  ;;  %v5033_v51 = vunpack.i.l.bf16 %v5032_v47 }
 0x818   : >> { %v2160_v57 = vsel %vm1705_vm4, %v2159_v53, %v5034_v50  ;;  %v1706_v58 = vsel %vm1705_vm4, %v1704_v54, %v5033_v51  ;;  %v5055_v50 = vld [vmem:[%s5818_s2 + $0x38] sm:$0xff]   ;;  %v4396_v51 = vld [vmem:[%s2288_s22] ss:$0 sm:$0xff] }
 0x83a   : >> { %v5037_v52 = vpop.permute.xlu0 %5036 }
 0x83b   : >> { %v5039_v55 = vunpack.i.h.bf16 %v5037_v52  ;;  %v5038_v56 = vunpack.i.l.bf16 %v5037_v52 }
 0x83d   : >> { %v2161_v59 = vsel %vm1707_vm5, %v2160_v57, %v5039_v55  ;;  %v1708_v60 = vsel %vm1707_vm5, %v1706_v58, %v5038_v56 }
 0x83e   : >> { %v2168_v61 = vpack.c.bf16 %v2161_v59, %v1708_v60 }
 0x840   : >> { %4719 = vmatmul.mubr.msk.bf16.vlgmr.msra.gmra.mrb[28].mxu0 %vm1019_vm0, %v2168_v61 }
 0x841   : >> { %4746 = vmatprep.mubr.msk.bf16.mxu0 %vm5359_vm1, %v5358_v40  ;;  %4731 = vmatpush3.bf16.msra.mxu0 %v5048_v22 }
 0x842   : >> { %4732 = vmatprep.subr.bf16.mxu0 %v5358_v40 }
 0x845   : >> { %4733 = vmatpush3.bf16.msra.mxu0 %v5049_v23  ;;  %v4411_v23 = vld [vmem:[%s5769_s13] ss:$0 sm:$0xff] (%p1049_p0) }
 0x846   : >> { %4734 = vmatprep.subr.bf16.mxu0 %v5358_v40 }
 0x849   : >> { %4735 = vmatpush3.bf16.msra.mxu0 %v5050_v26 }
 0x84a   : >> { %4736 = vmatprep.subr.bf16.mxu0 %v5358_v40 }
 0x84d   : >> { %4737 = vmatpush3.bf16.msra.mxu0 %v5051_v29  ;;  %v4412_v29 = vld [vmem:[%s5774_s3] ss:$0 sm:$0xff] (%p1049_p0) }
 0x84e   : >> { %4738 = vmatprep.subr.bf16.mxu0 %v5358_v40 }
 0x851   : >> { %4739 = vmatpush3.bf16.msra.mxu0 %v5052_v30 }
 0x852   : >> { %4740 = vmatprep.subr.bf16.mxu0 %v5358_v40 }
 0x855   : >> { %4741 = vmatpush3.bf16.msra.mxu0 %v5053_v31 }
 0x856   : >> { %4742 = vmatprep.subr.bf16.mxu0 %v5358_v40 }
 0x859   : >> { %4743 = vmatpush3.bf16.msra.mxu0 %v5054_v49 }
 0x85a   : >> { %4744 = vmatprep.subr.bf16.mxu0 %v5358_v40 }
 0x85d   : >> { %4745 = vmatpush3.bf16.msra.mxu0 %v5055_v50 }
 0x913   : >> { %v2226_v63 = vpop.f32.mrb[28].mxu0 }
 0x914   : >> { %v2227_v4 = vadd.f32 %v4389_v62, %v2226_v63  ;;  %v4720_v6 = vpop.f32.mrb[29].mxu0 }
 0x915   : >> { %v2229_v24 = vpop.f32.mrb[30].mxu0 }
 0x916   : >> { %v6019_v7 = vadd.f32 %v5335_v2, %v2227_v4  ;;  %v2230_v5 = vadd.f32 %v4389_v62, %v2229_v24  ;;  %v4721_v8 = vpop.f32.mrb[31].mxu0  ;;  %v4410_v62 = vld [vmem:[%s2465_s5] ss:$0 sm:$0xff] }
 0x918   : >> { %v6022_v9 = vadd.f32 %v5331_v3, %v2230_v5  ;;  %v2235_v10 = vsel %vm1019_vm0, %v6019_v7, 0.0 }
 0x919   : >> { %2236 = vadd.xlane.f32.xlu1 %v2235_v10 }
 0x91a   : >> { %v2238_v11 = vsel %vm1019_vm0, %v6022_v9, 0.0 }
 0x91b   : >> { %2239 = vadd.xlane.f32.xlu0 %v2238_v11 }
 0x9a6   : >> { %v2237_v12 = vpop.xlane.xlu1 %2236 }
 0x9a7   : >> { %v2241_v13 = vmul.f32 0.03125, %v2237_v12 }
 0x9a8   : >> { %v2240_v14 = vpop.xlane.xlu0 %2239 }
 0x9a9   : >> { %v2243_v2 = vsub.f32 %v6019_v7, %v2241_v13  ;;  %v2242_v15 = vmul.f32 0.03125, %v2240_v14 }
 0x9ab   : >> { %v2244_v3 = vsub.f32 %v6022_v9, %v2242_v15  ;;  %v2245_v16 = vmul.f32 %v2243_v2, %v2243_v2 }
 0x9ad   : >> { %v2247_v17 = vsel %vm1019_vm0, %v2245_v16, 0.0  ;;  %v2246_v18 = vmul.f32 %v2244_v3, %v2244_v3 }
 0x9ae   : >> { %2248 = vadd.xlane.f32.xlu0 %v2247_v17 }
 0x9af   : >> { %v2250_v19 = vsel %vm1019_vm0, %v2246_v18, 0.0 }
 0x9b2   : >> { %2251 = vadd.xlane.f32.xlu0 %v2250_v19 }
 0xa3b   : >> { %v2249_v32 = vpop.xlane.xlu0 %2248 }
 0xa3c   : >> { %v2253_v33 = vmul.f32 0.03125, %v2249_v32 }
 0xa3e   : >> { %v2255_v28 = vadd.f32 1e-05, %v2253_v33 }
 0xa3f   : >> { %v2252_v34 = vpop.xlane.xlu0 %2251 }
 0xa40   : >> { %5092 = vrsqrt.f32 %v2255_v28  ;;  %v2254_v35 = vmul.f32 0.03125, %v2252_v34 }
 0xa42   : >> { %v2256_v36 = vadd.f32 1e-05, %v2254_v35 }
 0xa44   : >> { %5094 = vrsqrt.f32 %v2256_v36 }
 0xa4a   : >> { %v5093_v37 = vpop.eup %5092 }
 0xa4b   : >> { %v2259_v38 = vmul.f32 %v5093_v37, %v2243_v2 }
 0xa4d   : >> { %v2269_v43 = vmul.f32 %v4393_v39, %v2259_v38 }
 0xa4e   : >> { %v5095_v41 = vpop.eup %5094 }
 0xa4f   : >> { %v2260_v42 = vmul.f32 %v5095_v41, %v2244_v3  ;;  %v2279_v46 = vadd.f32 %v4394_v44, %v2269_v43 }
 0xa51   : >> { %v2270_v45 = vmul.f32 %v4393_v39, %v2260_v42 }
 0xa53   : >> { %v2280_v47 = vadd.f32 %v4394_v44, %v2270_v45 }
 0xa55   : >> { %v2287_v48 = vpack.c.bf16 %v2280_v47, %v2279_v46 }
 0xa57   : >> { %4727 = vmatmul.mubr.msk.bf16.vlgmr.msra.gmra.mrb[44].mxu1 %vm1019_vm0, %v2287_v48 }
 0xb2a   : >> { %v2345_v52 = vpop.f32.mrb[44].mxu1 }
 0xb2b   : >> { %v2346_v53 = vadd.f32 %v4396_v51, %v2345_v52  ;;  %v4728_v54 = vpop.f32.mrb[45].mxu1 }
 0xb2c   : >> { %v2348_v55 = vpop.f32.mrb[46].mxu1 }
 0xb2d   : >> { %v2349_v56 = vadd.f32 %v4396_v51, %v2348_v55  ;;  %v4729_v57 = vpop.f32.mrb[47].mxu1  ;;  %v2352_v58 = vmax.f32 %v2346_v53, 0.0 }
 0xb2f   : >> { %v2353_v59 = vmax.f32 %v2349_v56, 0.0 }
 0xb31   : >> { %v2373_v60 = vpack.c.bf16 %v2353_v59, %v2352_v58 }
 0xb33   : >> { %4747 = vmatmul.mubr.bf16.vlgmr.msra.gmra.mrb[32].mxu0 %v2373_v60 }
 0xc06   : >> { %v2456_v61 = vpop.f32.mrb[32].mxu0 }
 0xc07   : >> { %v2463_v63 = vadd.f32 %v2456_v61, %v6019_v7  ;;  %v4748_v40 = vpop.f32.mrb[33].mxu0  ;;  %1051 = sbr.rel (!%p1049_p0) target bundleno = 468 (0x1d4), region = 249 }
 0xc08   : >> { %v2459_v4 = vpop.f32.mrb[34].mxu0 }
 0xc09   : >> { %v2473_v6 = vadd.f32 %v4410_v62, %v2463_v63   ;;  %v2464_v24 = vadd.f32 %v2459_v4, %v6022_v9  ;;  %v4749_v5 = vpop.f32.mrb[35].mxu0 }
 0xc0b   : >> { %v2474_v8 = vadd.f32 %v4410_v62, %v2464_v24   ;;  %v6473_v2 = vmov %v2473_v6  ;;  %v2475_v10 = vsel (%p1049_p0), %vm1019_vm0, %v2473_v6, 0.0 }
 0xc0c   : > { %2476 = vadd.xlane.f32.xlu0 (%p1049_p0), %v2475_v10 }
 0xc0d   : >> { %v6472_v3 = vmov %v2474_v8  ;;  %v2478_v7 = vsel (%p1049_p0), %vm1019_vm0, %v2474_v8, 0.0 }
 0xc10   : > { %2479 = vadd.xlane.f32.xlu0 %v2478_v7 }
 0xc99   : > { %v2477_v11 = vpop.xlane.xlu0 %2476 }
 0xc9a   : > { %v2481_v9 = vmul.f32 0.03125, %v2477_v11 }
 0xc9c   : > { %v2483_v12 = vsub.f32 %v2473_v6, %v2481_v9 }
 0xc9d   : > { %v2480_v13 = vpop.xlane.xlu0 %2479 }
 0xc9e   : > { %v2482_v14 = vmul.f32 0.03125, %v2480_v13  ;;  %v2485_v2 = vmul.f32 %v2483_v12, %v2483_v12 }
 0xca0   : > { %v2484_v15 = vsub.f32 %v2474_v8, %v2482_v14  ;;  %v2487_v16 = vsel %vm1019_vm0, %v2485_v2, 0.0 }
 0xca1   : > { %2488 = vadd.xlane.f32.xlu1 %v2487_v16 }
 0xca2   : > { %v2486_v17 = vmul.f32 %v2484_v15, %v2484_v15 }
 0xca4   : > { %v2490_v25 = vsel %vm1019_vm0, %v2486_v17, 0.0 }
 0xca5   : > { %2491 = vadd.xlane.f32.xlu1 %v2490_v25 }
 0xd2e   : > { %v2489_v27 = vpop.xlane.xlu1 %2488 }
 0xd2f   : > { %v2493_v3 = vmul.f32 0.03125, %v2489_v27 }
 0xd31   : > { %v2495_v18 = vadd.f32 1e-05, %v2493_v3 }
 0xd32   : > { %v2492_v19 = vpop.xlane.xlu1 %2491 }
 0xd33   : > { %5096 = vrsqrt.f32 %v2495_v18  ;;  %v2494_v20 = vmul.f32 0.03125, %v2492_v19 }
 0xd35   : > { %v2496_v21 = vadd.f32 1e-05, %v2494_v20 }
 0xd37   : > { %5098 = vrsqrt.f32 %v2496_v21 }
 0xd3d   : > { %v5097_v22 = vpop.eup %5096 }
 0xd3e   : > { %v2499_v26 = vmul.f32 %v5097_v22, %v2483_v12 }
 0xd40   : > { %v2508_v30 = vmul.f32 %v4411_v23, %v2499_v26 }
 0xd41   : > { %v5099_v31 = vpop.eup %5098 }
 0xd42   : > { %v2517_v32 = vadd.f32 %v4412_v29, %v2508_v30  ;;  %v2500_v33 = vmul.f32 %v5099_v31, %v2484_v15 }
 0xd44   : > { %v2519_v28 = vmul.f32 5.656854, %v2517_v32  ;;  %v2509_v34 = vmul.f32 %v4411_v23, %v2500_v33 }
 0xd46   : > { %v2521_v35 = vadd.f32 %v2519_v28, %v5694_v0   ;;  %v2518_v36 = vadd.f32 %v4412_v29, %v2509_v34 }
 0xd48   : > { %v2520_v37 = vmul.f32 5.656854, %v2518_v36 }
 0xd4a   : > { %v2522_v38 = vadd.f32 %v2520_v37, %v5699_v1  }
 0xd4b LB: >> { %v2531_v0 = vsel %vm1019_vm0, %v5347_v35, 0.0  ;;  %v2534_v1 = vsel %vm1019_vm0, %v5343_v38, 0.0  ;;  %v5370_v50 = vmov 0.0   ;;  %vm5371_vm6 = vmmov 0   ;;  %s6103_s2 = sshll.u32 %s5351_s8, 4  ;;  %s4493_s6 = sshll.u32 %s5351_s8, 6  ;;  %s5351_s8 = sphi %s6080_s8, %s2528_s8   ;;  %v5347_v35 = vphi %v2521_v35, %v6475_v35   ;;  %v5343_v38 = vphi %v2522_v38, %v6474_v38  }
 0xd4c   : >> { %2532 = vadd.xlane.f32.xlu0 %v2531_v0  ;;  %4750 = vmatprep.subr.bf16.mxu1 %v5370_v50  ;;  %s2579_s10 = scalar_lea.vmem %s5734_s23, %s6103_s2  ;;  %s6112_s30 = scalar_lea.vmem %s5780_s7, %s4493_s6 [#allocation6] }
 0xd4d   : >> { %4754 = vmatprep.mubr.msk.bf16.mxu1 %vm5371_vm6, %v5370_v50  ;;  %4778 = vmatprep.subr.bf16.mxu0 %v5370_v50  ;;  %v5115_v51 = vld [vmem:[%s2579_s10] sm:$0xff]   ;;  %v5116_v52 = vld [vmem:[%s2579_s10 + $0x8] sm:$0xff]   ;;  %s2652_s27 = scalar_lea.vmem %s5744_s26, %s6103_s2  ;;  %s2557_s18 = scalar_lea.vmem %s5714_s16, %s5351_s8 }
 0xd4e   : >> { %4780 = vmatprep.mubr.msk.bf16.mxu0 %vm5371_vm6, %v5370_v50  ;;  %4751 = vmatpush3.bf16.msra.mxu1 %v5115_v51  ;;  %v4413_v61 = vld [vmem:[%s2557_s18] ss:$0 sm:$0xff]  ;;  %s2567_s12 = scalar_lea.vmem %s5719_s28, %s5351_s8  ;;  %v5118_v7 = vld [vmem:[%s2652_s27 + $0x8] sm:$0xff]   ;;  %s2585_s17 = scalar_lea.vmem %s5739_s0, %s5351_s8 }
 0xd4f   : >> { %4752 = vmatprep.subr.bf16.mxu1 %v5370_v50  ;;  %v4414_v4 = vld [vmem:[%s2567_s12] ss:$0 sm:$0xff]  ;;  %s2657_s15 = scalar_lea.vmem %s5749_s1, %s5351_s8  ;;  %s5372_s29 = smov 120  }
 0xd50   : >> { %2535 = vadd.xlane.f32.xlu0 %v2534_v1  ;;  %v5117_v8 = vld [vmem:[%s2652_s27] sm:$0xff]   ;;  %s5373_s9 = smov 112   ;;  %s5374_s4 = smov 104  }
 0xd51   : >> { %v4417_v11 = vld [vmem:[%s2585_s17] ss:$0 sm:$0xff]  ;;  %s5375_s22 = smov 88   ;;  %s5376_s5 = smov 96  }
 0xd52   : >> { %4753 = vmatpush3.bf16.msra.mxu1 %v5116_v52  ;;  %v4422_v27 = vld [vmem:[%s2657_s15] ss:$0 sm:$0xff]  ;;  %s5377_s6 = smov 80   ;;  %s5378_s10 = smov 72  }
 0xd53   : >> { %4758 = vmatprep.subr.bf16.mxu1 %v5370_v50  ;;  %s3631_s27 = scalar_lea.vmem %s5667_s14, %s6103_s2 [#allocation2]  ;;  %s5379_s18 = smov 8  }
 0xd54   : >> { %s5380_s12 = smov 16   ;;  %s5381_s17 = smov 24  }
 0xd55   : >> { %s3637_s15 = scalar_lea.vmem %s5754_s19, %s5351_s8 }
 0xdd9   : >> { %v2533_v39 = vpop.xlane.xlu0 %2532 }
 0xdda   : >> { %v2537_v41 = vmul.f32 0.03125, %v2533_v39 }
 0xddc   : >> { %v2539_v42 = vsub.f32 %v5347_v35, %v2537_v41 }
 0xddd   : >> { %v2536_v43 = vpop.xlane.xlu0 %2535 }
 0xdde   : >> { %v2538_v44 = vmul.f32 0.03125, %v2536_v43  ;;  %v2541_v45 = vmul.f32 %v2539_v42, %v2539_v42 }
 0xde0   : >> { %v2540_v46 = vsub.f32 %v5343_v38, %v2538_v44  ;;  %v2543_v47 = vsel %vm1019_vm0, %v2541_v45, 0.0 }
 0xde1   : >> { %2544 = vadd.xlane.f32.xlu1 %v2543_v47 }
 0xde2   : >> { %v2542_v48 = vmul.f32 %v2540_v46, %v2540_v46 }
 0xde4   : >> { %v2546_v49 = vsel %vm1019_vm0, %v2542_v48, 0.0 }
 0xde5   : >> { %2547 = vadd.xlane.f32.xlu1 %v2546_v49 }
 0xe6e   : >> { %v2545_v53 = vpop.xlane.xlu1 %2544 }
 0xe6f   : >> { %v2549_v54 = vmul.f32 0.03125, %v2545_v53 }
 0xe71   : >> { %v2551_v55 = vadd.f32 1e-05, %v2549_v54 }
 0xe72   : >> { %v2548_v56 = vpop.xlane.xlu1 %2547 }
 0xe73   : >> { %5131 = vrsqrt.f32 %v2551_v55  ;;  %v2550_v57 = vmul.f32 0.03125, %v2548_v56 }
 0xe75   : >> { %v2552_v58 = vadd.f32 1e-05, %v2550_v57 }
 0xe77   : >> { %5133 = vrsqrt.f32 %v2552_v58 }
 0xe7d   : >> { %v5132_v59 = vpop.eup %5131 }
 0xe7e   : >> { %v2555_v60 = vmul.f32 %v5132_v59, %v2539_v42 }
 0xe80   : >> { %v2565_v40 = vmul.f32 %v4413_v61, %v2555_v60 }
 0xe81   : >> { %v5134_v62 = vpop.eup %5133 }
 0xe82   : >> { %v2556_v63 = vmul.f32 %v5134_v62, %v2540_v46  ;;  %v2575_v24 = vadd.f32 %v4414_v4, %v2565_v40 }
 0xe84   : >> { %v2566_v6 = vmul.f32 %v4413_v61, %v2556_v63 }
 0xe86   : >> { %v2576_v5 = vadd.f32 %v4414_v4, %v2566_v6 }
 0xe88   : >> { %v2584_v10 = vpack.c.bf16 %v2576_v5, %v2575_v24 }
 0xe8a   : >> { %4755 = vmatmul.mubr.msk.bf16.vlgmr.msra.gmra.mrb[0].mxu1 %vm1019_vm0, %v2584_v10 }
 0xe8b   : >> { %4759 = vmatpush3.bf16.msra.mxu1 %v5117_v8  ;;  %4762 = vmatprep.mubr.msk.bf16.mxu1 %vm5371_vm6, %v5370_v50 }
 0xe8c   : >> { %4760 = vmatprep.subr.bf16.mxu1 %v5370_v50 }
 0xe8f   : >> { %4761 = vmatpush3.bf16.msra.mxu1 %v5118_v7 }
 0xe90   : >> { %4766 = vmatprep.subr.bf16.mxu1 %v5370_v50 }
 0xe92   : >> { %4763 = vmatmul.mubr.msk.bf16.vlgmr.msra.gmra.mrb[4].mxu1 %vm1019_vm0, %v2584_v10 }
 0xe93   : >> { %4768 = vmatprep.mubr.msk.bf16.mxu1 %vm5371_vm6, %v5370_v50 }
 0xf5d   : >> { %v2642_v9 = vpop.f32.mrb[0].mxu1 }
 0xf5e   : >> { %v2643_v12 = vadd.f32 %v4417_v11, %v2642_v9  ;;  %v4756_v13 = vpop.f32.mrb[1].mxu1 }
 0xf5f   : >> { %v2645_v14 = vpop.f32.mrb[2].mxu1 }
 0xf60   : >> { %v2646_v2 = vadd.f32 %v4417_v11, %v2645_v14  ;;  %v4757_v15 = vpop.f32.mrb[3].mxu1  ;;  %v2649_v16 = vmul.f32 0.35355338, %v2643_v12 }
 0xf62   : >> { %v2650_v17 = vmul.f32 0.35355338, %v2646_v2 }
 0xf64   : >> { %v2719_v25 = vpack.c.bf16 %v2650_v17, %v2649_v16 }
 0xf65   : >> { %v2711_v3 = vpop.f32.mrb[4].mxu1 }
 0xf66   : >> { %2830 = vrot.lane.b32.xlu1 %v2719_v25, %s5372_s29  ;;  %v4764_v18 = vpop.f32.mrb[5].mxu1  ;;  %v2712_v20 = vadd.f32 %v4422_v27, %v2711_v3  ;;  %v3177_v30 = vrot.slane %v2719_v25, 4 }
 0xf67   : >> { %v2714_v19 = vpop.f32.mrb[6].mxu1 }
 0xf68   : >> { %v2715_v21 = vadd.f32 %v4422_v27, %v2714_v19  ;;  %v4765_v22 = vpop.f32.mrb[7].mxu1 }
 0xf6a   : >> { %v6134_v23 = vpack.c.bf16 %v2715_v21, %v2712_v20 }
 0xf6c   : >> { %2942 = vrot.lane.b32.xlu1 %v6134_v23, %s5373_s9  ;;  %2832 = vrot.lane.b32.xlu0 %v6134_v23, %s5372_s29  ;;  %v2725_v26 = vsel %vm1252_vm2, %v6134_v23, 0  ;;  %v6143_v29 = vrot.slane %v6134_v23, 4 }
 0xf6d   : >> { %4767 = vmatpush3.bf16.xpose.msra.mxu1 %v2725_v26 }
 0xf6e   : >> { %4772 = vmatprep.subr.bf16.mxu1 %v5370_v50  ;;  %v3183_v39 = vsel %vm1252_vm2, %v6143_v29, 0 }
 0xf70   : >> { %2940 = vrot.lane.b32.xlu1 %v2719_v25, %s5373_s9  ;;  %3052 = vrot.lane.b32.xlu0 %v6134_v23, %s5374_s4 }
 0xf74   : >> { %3050 = vrot.lane.b32.xlu1 %v2719_v25, %s5374_s4  ;;  %3287 = vrot.lane.b32.xlu0 %v6143_v29, %s5372_s29 }
 0xf75   : >> { %4769 = vmatmul.mubr.msk.bf16.vlgmr.msra.gmra.mrb[8].mxu1 %vm1252_vm2, %v2719_v25 }
 0xf76   : >> { %4774 = vmatprep.mubr.msk.bf16.mxu1 %vm5371_vm6, %v5370_v50 }
 0xf78   : >> { %3285 = vrot.lane.b32.xlu1 %v3177_v30, %s5372_s29  ;;  %3397 = vrot.lane.b32.xlu0 %v6143_v29, %s5373_s9  ;;  %s3750_s29 = scalar_lea.vmem %s5674_s24, %s6103_s2 [#allocation4]  ;;  %s3729_s2 = scalar_lea.vmem %s5724_s21, %s5351_s8 }
 0xf7c   : >> { %3395 = vrot.lane.b32.xlu1 %v3177_v30, %s5373_s9  ;;  %3507 = vrot.lane.b32.xlu0 %v6143_v29, %s5374_s4  ;;  %s3739_s9 = scalar_lea.vmem %s5729_s11, %s5351_s8 }
 0xf80   : >> { %3505 = vrot.lane.b32.xlu1 %v3177_v30, %s5374_s4  ;;  %s3756_s4 = scalar_lea.vmem %s5759_s25, %s5351_s8 }
 0xf84   : >> { %2892 = vrot.lane.b32.xlu1 %v6134_v23, %s5375_s22 }
 0xfd8   : >> { %v2831_v33 = vpop.permute.xlu1 %2830 }
 0xfde   : >> { %v2833_v31 = vpop.permute.xlu0 %2832  ;;  %v2943_v28 = vpop.permute.xlu1 %2942 }
 0xfdf   : >> { %v2838_v32 = vsel %vm1252_vm2, %v2833_v31, 0  ;;  %v2948_v34 = vsel %vm1252_vm2, %v2943_v28, 0 }
 0xfe0   : >> { %4779 = vmatpush3.bf16.xpose.msra.mxu0 %v2838_v32 }
 0xfe1   : >> { %4790 = vmatprep.subr.bf16.mxu0 %v5370_v50 }
 0xfe2   : >> { %v3053_v36 = vpop.permute.xlu0 %3052  ;;  %v2941_v37 = vpop.permute.xlu1 %2940 }
 0xfe3   : >> { %v3058_v0 = vsel %vm1252_vm2, %v3053_v36, 0 }
 0xfe6   : >> { %v3051_v1 = vpop.permute.xlu1 %3050  ;;  %v3288_v41 = vpop.permute.xlu0 %3287 }
 0xfe7   : >> { %4781 = vmatmul.mubr.msk.bf16.vlgmr.msra.gmra.mrb[0].mxu0 %vm1252_vm2, %v2831_v33  ;;  %v3293_v42 = vsel %vm1252_vm2, %v3288_v41, 0 }
 0xfe8   : >> { %4791 = vmatpush3.bf16.xpose.msra.mxu0 %v2948_v34  ;;  %4792 = vmatprep.mubr.msk.bf16.mxu0 %vm5371_vm6, %v5370_v50 }
 0xfe9   : >> { %4802 = vmatprep.subr.bf16.mxu0 %v5370_v50 }
 0xfea   : >> { %v3398_v43 = vpop.permute.xlu0 %3397  ;;  %v3286_v44 = vpop.permute.xlu1 %3285 }
 0xfeb   : >> { %v3403_v45 = vsel %vm1252_vm2, %v3398_v43, 0 }
 0xfee   : >> { %v3508_v46 = vpop.permute.xlu0 %3507  ;;  %v3396_v47 = vpop.permute.xlu1 %3395 }
 0xfef   : >> { %4793 = vmatmul.mubr.msk.bf16.vlgmr.msra.gmra.mrb[4].mxu0 %vm1252_vm2, %v2941_v37  ;;  %v3513_v48 = vsel %vm1252_vm2, %v3508_v46, 0 }
 0xff0   : >> { %4803 = vmatpush3.bf16.xpose.msra.mxu0 %v3058_v0  ;;  %4804 = vmatprep.mubr.msk.bf16.mxu0 %vm5371_vm6, %v5370_v50 }
 0xff1   : >> { %4814 = vmatprep.subr.bf16.mxu0 %v5370_v50 }
 0xff2   : >> { %v3506_v49 = vpop.permute.xlu1 %3505 }
 0xff6   : >> { %v2893_v0 = vpop.permute.xlu1 %2892 }
 0xff7   : >> { %4805 = vmatmul.mubr.msk.bf16.vlgmr.msra.gmra.mrb[8].mxu0 %vm1252_vm2, %v3051_v1 }
 0xff8   : >> { %4815 = vmatpush3.bf16.xpose.msra.mxu0 %v3183_v39  ;;  %4816 = vmatprep.mubr.msk.bf16.mxu0 %vm5371_vm6, %v5370_v50 }
 0xff9   : >> { %4826 = vmatprep.subr.bf16.mxu0 %v5370_v50 }
 0xfff   : >> { %4817 = vmatmul.mubr.msk.bf16.vlgmr.msra.gmra.mrb[12].mxu0 %vm1252_vm2, %v3177_v30 }
0x1000   : >> { %4827 = vmatpush3.bf16.xpose.msra.mxu0 %v3293_v42  ;;  %4828 = vmatprep.mubr.msk.bf16.mxu0 %vm5371_vm6, %v5370_v50 }
0x1001   : >> { %4838 = vmatprep.subr.bf16.mxu0 %v5370_v50 }
0x1007   : >> { %4829 = vmatmul.mubr.msk.bf16.vlgmr.msra.gmra.mrb[16].mxu0 %vm1252_vm2, %v3286_v44 }
0x1008   : >> { %4839 = vmatpush3.bf16.xpose.msra.mxu0 %v3403_v45  ;;  %4840 = vmatprep.mubr.msk.bf16.mxu0 %vm5371_vm6, %v5370_v50 }
0x1009   : >> { %4850 = vmatprep.subr.bf16.mxu0 %v5370_v50 }
0x100f   : >> { %4841 = vmatmul.mubr.msk.bf16.vlgmr.msra.gmra.mrb[20].mxu0 %vm1252_vm2, %v3396_v47 }
0x1010   : >> { %4851 = vmatpush3.bf16.xpose.msra.mxu0 %v3513_v48  ;;  %4852 = vmatprep.mubr.msk.bf16.mxu0 %vm5371_vm6, %v5370_v50 }
0x1011   : >> { %4862 = vmatprep.subr.bf16.mxu0 %v5370_v50 }
0x1017   : >> { %4853 = vmatmul.mubr.msk.bf16.vlgmr.msra.gmra.mrb[24].mxu0 %vm1252_vm2, %v3506_v49 }
0x1018   : >> { %4866 = vmatprep.mubr.msk.bf16.mxu0 %vm5371_vm6, %v5370_v50 }
0x1048   : >> { %v2761_v51 = vpop.f32.mrb[8].mxu1 }
0x1049   : >> { %v4770_v52 = vpop.f32.mrb[9].mxu1  ;;  %v2767_v53 = vsel %vm1252_vm2, %v2761_v51, -inf }
0x104a   : >> { %2768 = vmax.xlane.f32.xlu0 %v2767_v53  ;;  %v2764_v54 = vpop.f32.mrb[10].mxu1 }
0x104b   : >> { %v4771_v55 = vpop.f32.mrb[11].mxu1 }
0x1060   : >> { %2780 = vrot.lane.b32.xlu0 %v6134_v23, %s5376_s5 }
0x10ba   : >> { %v2874_v56 = vpop.f32.mrb[0].mxu0 }
0x10bb   : >> { %v4782_v57 = vpop.f32.mrb[1].mxu0  ;;  %v2880_v58 = vsel %vm1252_vm2, %v2874_v56, -inf }
0x10bc   : >> { %2881 = vmax.xlane.f32.xlu1 %v2880_v58  ;;  %v2877_v59 = vpop.f32.mrb[2].mxu0 }
0x10bd   : >> { %v4783_v60 = vpop.f32.mrb[3].mxu0 }
0x10c2   : >> { %v2984_v61 = vpop.f32.mrb[4].mxu0 }
0x10c3   : >> { %v4794_v62 = vpop.f32.mrb[5].mxu0  ;;  %v2990_v63 = vsel %vm1252_vm2, %v2984_v61, -inf }
0x10c4   : >> { %v2987_v40 = vpop.f32.mrb[6].mxu0  ;;  %2991 = vmax.xlane.f32.xlu0 %v2990_v63 }
0x10c5   : >> { %v4795_v4 = vpop.f32.mrb[7].mxu0 }
0x10ca   : >> { %v6194_v6 = vpop.f32.mrb[8].mxu0 }
0x10cb   : >> { %v4806_v24 = vpop.f32.mrb[9].mxu0  ;;  %v3100_v5 = vsel %vm1252_vm2, %v6194_v6, -inf }
0x10cc   : >> { %v3097_v8 = vpop.f32.mrb[10].mxu0  ;;  %3101 = vmax.xlane.f32.xlu0 %v3100_v5 }
0x10cd   : >> { %v4807_v10 = vpop.f32.mrb[11].mxu0 }
0x10d2   : >> { %v6198_v7 = vpop.f32.mrb[12].mxu0 }
0x10d3   : >> { %v4818_v11 = vpop.f32.mrb[13].mxu0  ;;  %v3225_v9 = vsel %vm1252_vm2, %v6198_v7, -inf }
0x10d4   : >> { %v3222_v12 = vpop.f32.mrb[14].mxu0  ;;  %3226 = vmax.xlane.f32.xlu0 %v3225_v9 }
0x10d5   : >> { %v4819_v13 = vpop.f32.mrb[15].mxu0 }
0x10d6   : >> { %v2898_v13 = vsel %vm1317_vm3, %v2893_v0, 0 }
0x10d7   : >> { %v2769_v14 = vpop.xlane.xlu0 %2768 }
0x10d8   : >> { %v2770_v28 = vsub.f32 %v2761_v51, %v2769_v14 }
0x10da   : >> { %v3329_v2 = vpop.f32.mrb[16].mxu0  ;;  %v2771_v34 = vmul.f32 1.442695, %v2770_v28 }
0x10db   : >> { %v2781_v15 = vpop.permute.xlu0 %2780  ;;  %v4830_v16 = vpop.f32.mrb[17].mxu0  ;;  %v3335_v17 = vsel %vm1252_vm2, %v3329_v2, -inf }
0x10dc   : >> { %v2787_v25 = vsel %vm1317_vm3, %v2781_v15, 0  ;;  %3336 = vmax.xlane.f32.xlu1 %v3335_v17  ;;  %v3332_v27 = vpop.f32.mrb[18].mxu0  ;;  %5135 = vpow2.f32 %v2771_v34 }
0x10dd   : >> { %4773 = vmatpush3.bf16.msra.mxu1 %v2787_v25  ;;  %v4831_v3 = vpop.f32.mrb[19].mxu0 }
0x10de   : >> { %4784 = vmatprep.subr.bf16.mxu1 %v5370_v50 }
0x10e2   : >> { %v3439_v18 = vpop.f32.mrb[20].mxu0 }
0x10e3   : >> { %v4842_v19 = vpop.f32.mrb[21].mxu0  ;;  %v3445_v20 = vsel %vm1252_vm2, %v3439_v18, -inf }
0x10e4   : >> { %v3442_v21 = vpop.f32.mrb[22].mxu0  ;;  %3446 = vmax.xlane.f32.xlu0 %v3445_v20 }
0x10e5   : >> { %v4843_v22 = vpop.f32.mrb[23].mxu0 }
0x10e6   : >> { %v5136_v36 = vpop.eup %5135 }
0x10e7   : >> { %v2773_v37 = vsel %vm1252_vm2, %v5136_v36, 0.0 }
0x10ea   : >> { %v6206_v26 = vpop.f32.mrb[24].mxu0 }
0x10eb   : >> { %v4854_v30 = vpop.f32.mrb[25].mxu0  ;;  %v3555_v31 = vsel %vm1252_vm2, %v6206_v26, -inf }
0x10ec   : >> { %3556 = vmax.xlane.f32.xlu1 %v3555_v31  ;;  %v3552_v32 = vpop.f32.mrb[26].mxu0 }
0x10ed   : >> { %v4855_v33 = vpop.f32.mrb[27].mxu0 }
0x10fa   : >> { %3002 = vrot.lane.b32.xlu0 %v6134_v23, %s5377_s6 }
0x1119   : >> { %2774 = vadd.xlane.f32.xlu0 %v2773_v37 }
0x1149   : >> { %v2882_v1 = vpop.xlane.xlu1 %2881 }
0x114a   : >> { %v2883_v39 = vsub.f32 %v2874_v56, %v2882_v1 }
0x114c   : >> { %v2884_v41 = vmul.f32 1.442695, %v2883_v39 }
0x114e   : >> { %5137 = vpow2.f32 %v2884_v41 }
0x1151   : >> { %v2992_v42 = vpop.xlane.xlu0 %2991 }
0x1152   : >> { %v2993_v43 = vsub.f32 %v2984_v61, %v2992_v42 }
0x1154   : >> { %v2994_v44 = vmul.f32 1.442695, %v2993_v43 }
0x1156   : >> { %5139 = vpow2.f32 %v2994_v44 }
0x1158   : >> { %v6213_v45 = vpop.eup %5137 }
0x1159   : >> { %v2886_v46 = vsel %vm1252_vm2, %v6213_v45, 0.0  ;;  %v3102_v49 = vpop.xlane.xlu0 %3101 }
0x115a   : >> { %2887 = vadd.xlane.f32.xlu1 %v2886_v46  ;;  %v3103_v51 = vsub.f32 %v6194_v6, %v3102_v49 }
0x115c   : >> { %v3104_v53 = vmul.f32 1.442695, %v3103_v51 }
0x115e   : >> { %5141 = vpow2.f32 %v3104_v53 }
0x1160   : >> { %v6217_v47 = vpop.eup %5139 }
0x1161   : >> { %v2996_v48 = vsel %vm1252_vm2, %v6217_v47, 0.0  ;;  %v3227_v52 = vpop.xlane.xlu0 %3226 }
0x1162   : >> { %2997 = vadd.xlane.f32.xlu0 %v2996_v48  ;;  %v3228_v54 = vsub.f32 %v6198_v7, %v3227_v52 }
0x1164   : >> { %v3229_v58 = vmul.f32 1.442695, %v3228_v54 }
0x1166   : >> { %5143 = vpow2.f32 %v3229_v58 }
0x1168   : >> { %v5142_v62 = vpop.eup %5141 }
0x1169   : >> { %v3337_v55 = vpop.xlane.xlu1 %3336 }
0x116a   : >> { %v3338_v57 = vsub.f32 %v3329_v2, %v3337_v55 }
0x116b   : >> { %3237 = vrot.lane.b32.xlu1 %v6143_v29, %s5376_s5 }
0x116c   : >> { %v3339_v60 = vmul.f32 1.442695, %v3338_v57 }
0x116e   : >> { %5145 = vpow2.f32 %v3339_v60 }
0x1170   : >> { %v6228_v63 = vpop.eup %5143 }
0x1171   : >> { %v3447_v56 = vpop.xlane.xlu0 %3446  ;;  %v3231_v4 = vsel %vm1252_vm2, %v6228_v63, 0.0 }
0x1172   : >> { %v3448_v59 = vsub.f32 %v3439_v18, %v3447_v56 }
0x1174   : >> { %v3449_v61 = vmul.f32 1.442695, %v3448_v59 }
0x1175   : >> { %v3003_v8 = vpop.permute.xlu0 %3002 }
0x1176   : >> { %5147 = vpow2.f32 %v3449_v61  ;;  %v3008_v19 = vsel %vm1317_vm3, %v3003_v8, 0 }
0x1178   : >> { %3112 = vrot.lane.b32.xlu0 %v6134_v23, %s5378_s10  ;;  %v3106_v23 = vsel %vm1252_vm2, %v5142_v62, 0.0  ;;  %v6230_v40 = vpop.eup %5145 }
0x1179   : >> { %v3341_v24 = vsel %vm1252_vm2, %v6230_v40, 0.0  ;;  %v3557_v9 = vpop.xlane.xlu1 %3556 }
0x117a   : >> { %v3558_v14 = vsub.f32 %v6206_v26, %v3557_v9 }
0x117c   : >> { %v3559_v2 = vmul.f32 1.442695, %v3558_v14 }
0x1180   : >> { %v6234_v6 = vpop.eup %5147 }
0x1181   : >> { %v3451_v5 = vsel %vm1252_vm2, %v6234_v6, 0.0 }
0x118f   : >> { %3107 = vadd.xlane.f32.xlu1 %v3106_v23 }
0x1193   : >> { %3232 = vadd.xlane.f32.xlu1 %v3231_v4 }
0x1197   : >> { %3342 = vadd.xlane.f32.xlu1 %v3341_v24  ;;  %3452 = vadd.xlane.f32.xlu0 %v3451_v5 }
0x11a6   : >> { %v2775_v10 = vpop.xlane.xlu0 %2774 }
0x11a7   : >> { %5149 = vrcp.f32 %v2775_v10 }
0x11a8   : >> { %3347 = vrot.lane.b32.xlu1 %v6143_v29, %s5375_s22  ;;  %5151 = vpow2.f32 %v3559_v2  ;;  %s3933_s22 = scalar_lea.vmem %s5764_s20, %s5351_s8  ;;  %s2528_s8 = sadd.s32 1, %s5351_s8  }
0x11a9   : >> { %p2525_p3 = scmp.ge.s32.totalorder %s2528_s8, 4  }
0x11aa   : > { %s6476_s14 = sld [smem:[#allocation13_spill]] (%p2525_p3)  ;;  %vm3997_vm7 = vcmask (%p2525_p3), 257024  }
0x11ad   : >> { %3457 = vrot.lane.b32.xlu0 %v6143_v29, %s5377_s6 }
0x11b1   : >> { %v5150_v7 = vpop.eup %5149 }
0x11b2   : >> { %v2777_v11 = vmul.f32 %v5150_v7, %v5136_v36  ;;  %v6250_v15 = vpop.eup %5151 }
0x11b3   : >> { %v3561_v16 = vsel %vm1252_vm2, %v6250_v15, 0.0 }
0x11b4   : >> { %v2778_v12 = vpack.c.bf16 %v2777_v11, %v2777_v11 }
0x11b6   : >> { %4775 = vmatmul.mubr.msk.bf16.vlgmr.msra.gmra.mrb[12].mxu1 %vm1252_vm2, %v2778_v12 }
0x11b7   : >> { %4785 = vmatpush3.bf16.msra.mxu1 %v2898_v13  ;;  %4786 = vmatprep.mubr.msk.bf16.mxu1 %vm5371_vm6, %v5370_v50 }
0x11b8   : >> { %4796 = vmatprep.subr.bf16.mxu1 %v5370_v50 }
0x11cc   : >> { %3562 = vadd.xlane.f32.xlu1 %v3561_v16 }
0x11dd   : >> { %3567 = vrot.lane.b32.xlu1 %v6143_v29, %s5378_s10 }
0x11e7   : >> { %v2888_v17 = vpop.xlane.xlu1 %2887 }
0x11e8   : >> { %5153 = vrcp.f32 %v2888_v17 }
0x11eb   : >> { %v3238_v30 = vpop.permute.xlu1 %3237 }
0x11ec   : >> { %v3243_v0 = vsel %vm1317_vm3, %v3238_v30, 0 }
0x11ef   : >> { %v2998_v25 = vpop.xlane.xlu0 %2997 }
0x11f0   : >> { %5155 = vrcp.f32 %v2998_v25  ;;  %v5119_v25 = vld [vmem:[%s3631_s27] sm:$0xff]  }
0x11f1   : >> { %4863 = vmatpush3.bf16.msra.mxu0 %v5119_v25 }
0x11f2   : >> { %v5154_v27 = vpop.eup %5153  ;;  %4864 = vmatprep.subr.bf16.mxu0 %v5370_v50 }
0x11f3   : >> { %v2890_v3 = vmul.f32 %v5154_v27, %v6213_v45  ;;  %v3113_v21 = vpop.permute.xlu0 %3112 }
0x11f4   : >> { %v3118_v26 = vsel %vm1317_vm3, %v3113_v21, 0 }
0x11f5   : >> { %v2891_v18 = vpack.c.bf16 %v2890_v3, %v2890_v3 }
0x11f7   : >> { %4787 = vmatmul.mubr.msk.bf16.vlgmr.msra.gmra.mrb[16].mxu1 %vm1252_vm2, %v2891_v18 }
0x11f8   : >> { %4797 = vmatpush3.bf16.msra.mxu1 %v3008_v19  ;;  %4798 = vmatprep.mubr.msk.bf16.mxu1 %vm5371_vm6, %v5370_v50 }
0x11f9   : >> { %4808 = vmatprep.subr.bf16.mxu1 %v5370_v50 }
0x11fa   : >> { %v5156_v20 = vpop.eup %5155 }
0x11fb   : >> { %v3000_v29 = vmul.f32 %v5156_v20, %v6217_v47 }
0x11fd   : >> { %v3001_v22 = vpack.c.bf16 %v3000_v29, %v3000_v29 }
0x11ff   : >> { %4799 = vmatmul.mubr.msk.bf16.vlgmr.msra.gmra.mrb[20].mxu1 %vm1252_vm2, %v3001_v22  ;;  %v5120_v22 = vld [vmem:[%s3631_s27 + $0x8] sm:$0xff]  }
0x1200   : >> { %4809 = vmatpush3.bf16.msra.mxu1 %v3118_v26  ;;  %4810 = vmatprep.mubr.msk.bf16.mxu1 %vm5371_vm6, %v5370_v50 }
0x1201   : >> { %4820 = vmatprep.subr.bf16.mxu1 %v5370_v50  ;;  %4865 = vmatpush3.bf16.msra.mxu0 %v5120_v22  ;;  %v4448_v22 = vld [vmem:[%s3739_s9] ss:$0 sm:$0xff] }
0x1202   : >> { %4878 = vmatprep.subr.bf16.mxu0 %v5370_v50 }
0x121c   : >> { %v3108_v31 = vpop.xlane.xlu1 %3107 }
0x121d   : >> { %5157 = vrcp.f32 %v3108_v31 }
0x1220   : >> { %v3233_v32 = vpop.xlane.xlu1 %3232 }
0x1221   : >> { %5159 = vrcp.f32 %v3233_v32 }
0x1224   : >> { %v3343_v33 = vpop.xlane.xlu1 %3342  ;;  %v3453_v1 = vpop.xlane.xlu0 %3452 }
0x1225   : >> { %5161 = vrcp.f32 %v3343_v33 }
0x1226   : >> { %5163 = vrcp.f32 %v3453_v1 }
0x1227   : >> { %v5158_v28 = vpop.eup %5157 }
0x1228   : >> { %v3110_v34 = vmul.f32 %v5158_v28, %v5142_v62  ;;  %v3348_v41 = vpop.permute.xlu1 %3347  ;;  %v3458_v46 = vpop.permute.xlu0 %3457 }
0x1229   : >> { %v3353_v44 = vsel %vm1317_vm3, %v3348_v41, 0  ;;  %v3463_v49 = vsel %vm1317_vm3, %v3458_v46, 0 }
0x122a   : >> { %v3111_v36 = vpack.c.bf16 %v3110_v34, %v3110_v34 }
0x122b   : >> { %v5160_v37 = vpop.eup %5159 }
0x122c   : >> { %4811 = vmatmul.mubr.msk.bf16.vlgmr.msra.gmra.mrb[24].mxu1 %vm1252_vm2, %v3111_v36  ;;  %v3235_v39 = vmul.f32 %v5160_v37, %v6228_v63 }
0x122d   : >> { %4821 = vmatpush3.bf16.msra.mxu1 %v3243_v0  ;;  %4822 = vmatprep.mubr.msk.bf16.mxu1 %vm5371_vm6, %v5370_v50 }
0x122e   : >> { %4832 = vmatprep.subr.bf16.mxu1 %v5370_v50  ;;  %v3236_v42 = vpack.c.bf16 %v3235_v39, %v3235_v39 }
0x122f   : >> { %v5162_v43 = vpop.eup %5161 }
0x1230   : >> { %v3345_v45 = vmul.f32 %v5162_v43, %v6230_v40  ;;  %v5164_v48 = vpop.eup %5163 }
0x1231   : >> { %v3455_v51 = vmul.f32 %v5164_v48, %v6234_v6 }
0x1232   : >> { %v3346_v47 = vpack.c.bf16 %v3345_v45, %v3345_v45 }
0x1233   : >> { %v3456_v52 = vpack.c.bf16 %v3455_v51, %v3455_v51  ;;  %v4443_v51 = vld [vmem:[%s3637_s15] ss:$0 sm:$0xff] }
0x1234   : >> { %4823 = vmatmul.mubr.msk.bf16.vlgmr.msra.gmra.mrb[28].mxu1 %vm1252_vm2, %v3236_v42 }
0x1235   : >> { %4833 = vmatpush3.bf16.msra.mxu1 %v3353_v44  ;;  %4834 = vmatprep.mubr.msk.bf16.mxu1 %vm5371_vm6, %v5370_v50 }
0x1236   : >> { %4844 = vmatprep.subr.bf16.mxu1 %v5370_v50 }
0x123c   : >> { %4835 = vmatmul.mubr.msk.bf16.vlgmr.msra.gmra.mrb[32].mxu1 %vm1252_vm2, %v3346_v47 }
0x123d   : >> { %4845 = vmatpush3.bf16.msra.mxu1 %v3463_v49  ;;  %4846 = vmatprep.mubr.msk.bf16.mxu1 %vm5371_vm6, %v5370_v50 }
0x123e   : >> { %4856 = vmatprep.subr.bf16.mxu1 %v5370_v50 }
0x1244   : >> { %4847 = vmatmul.mubr.msk.bf16.vlgmr.msra.gmra.mrb[36].mxu1 %vm1252_vm2, %v3456_v52 }
0x1245   : >> { %4858 = vmatprep.mubr.msk.bf16.mxu1 %vm5371_vm6, %v5370_v50 }
0x1259   : >> { %v3563_v53 = vpop.xlane.xlu1 %3562 }
0x125a   : >> { %5165 = vrcp.f32 %v3563_v53 }
0x125d   : >> { %v3568_v54 = vpop.permute.xlu1 %3567 }
0x125e   : >> { %v3573_v55 = vsel %vm1317_vm3, %v3568_v54, 0 }
0x125f   : >> { %4857 = vmatpush3.bf16.msra.mxu1 %v3573_v55 }
0x1260   : >> { %4870 = vmatprep.subr.bf16.mxu1 %v5370_v50 }
0x1264   : >> { %v5166_v56 = vpop.eup %5165 }
0x1265   : >> { %v3565_v57 = vmul.f32 %v5166_v56, %v6250_v15 }
0x1267   : >> { %v3566_v58 = vpack.c.bf16 %v3565_v57, %v3565_v57 }
0x1269   : >> { %4859 = vmatmul.mubr.msk.bf16.vlgmr.msra.gmra.mrb[40].mxu1 %vm1252_vm2, %v3566_v58 }
0x126a   : >> { %4874 = vmatprep.mubr.msk.bf16.mxu1 %vm5371_vm6, %v5370_v50 }
0x1289   : >> { %v2823_v59 = vpop.f32.mrb[12].mxu1 }
0x128a   : >> { %v4776_v60 = vpop.f32.mrb[13].mxu1 }
0x128b   : >> { %v2826_v61 = vpop.f32.mrb[14].mxu1 }
0x128c   : >> { %v4777_v62 = vpop.f32.mrb[15].mxu1 }
0x12ca   : >> { %v2934_v23 = vpop.f32.mrb[16].mxu1 }
0x12cb   : >> { %v4788_v63 = vpop.f32.mrb[17].mxu1 }
0x12cc   : >> { %v2937_v40 = vpop.f32.mrb[18].mxu1 }
0x12cd   : >> { %v4789_v4 = vpop.f32.mrb[19].mxu1 }
0x12d2   : >> { %v3044_v6 = vpop.f32.mrb[20].mxu1 }
0x12d3   : >> { %v4800_v24 = vpop.f32.mrb[21].mxu1 }
0x12d4   : >> { %v3047_v5 = vpop.f32.mrb[22].mxu1 }
0x12d5   : >> { %v4801_v8 = vpop.f32.mrb[23].mxu1 }
0x12d6   : >> { %v5121_v8 = vld [vmem:[%s3750_s29] sm:$0xff]  }
0x12d7   : >> { %4871 = vmatpush3.bf16.msra.mxu1 %v5121_v8 }
0x12d8   : >> { %4872 = vmatprep.subr.bf16.mxu1 %v5370_v50 }
0x12ff   : >> { %v3154_v10 = vpop.f32.mrb[24].mxu1 }
0x1300   : >> { %v4812_v7 = vpop.f32.mrb[25].mxu1 }
0x1301   : >> { %v3157_v11 = vpop.f32.mrb[26].mxu1  ;;  %v5123_v7 = vld [vmem:[%s6112_s30] sm:$0xff]  }
0x1302   : >> { %v4813_v9 = vpop.f32.mrb[27].mxu1  ;;  %v5124_v11 = vld [vmem:[%s6112_s30 + $0x8] sm:$0xff]  }
0x1303   : >> { %v5125_v9 = vld [vmem:[%s6112_s30 + $0x10] sm:$0xff]  }
0x1307   : >> { %v3279_v12 = vpop.f32.mrb[28].mxu1 }
0x1308   : >> { %v4824_v13 = vpop.f32.mrb[29].mxu1 }
0x1309   : >> { %v3282_v14 = vpop.f32.mrb[30].mxu1  ;;  %v5127_v13 = vld [vmem:[%s6112_s30 + $0x20] sm:$0xff]  }
0x130a   : >> { %v4825_v2 = vpop.f32.mrb[31].mxu1  ;;  %v5128_v14 = vld [vmem:[%s6112_s30 + $0x28] sm:$0xff]  }
0x130f   : >> { %v3389_v15 = vpop.f32.mrb[32].mxu1 }
0x1310   : >> { %v5100_v16 = vpack.i.bf16 %v3389_v15, %v2934_v23  ;;  %v4836_v17 = vpop.f32.mrb[33].mxu1 }
0x1311   : >> { %v3392_v27 = vpop.f32.mrb[34].mxu1 }
0x1312   : >> { %5101 = vrot.lane.b32.xlu0 %v5100_v16, %s5379_s18  ;;  %v4837_v3 = vpop.f32.mrb[35].mxu1 }
0x1317   : >> { %v3499_v18 = vpop.f32.mrb[36].mxu1 }
0x1318   : >> { %v5105_v19 = vpack.i.bf16 %v3499_v18, %v3044_v6  ;;  %v4848_v20 = vpop.f32.mrb[37].mxu1 }
0x1319   : >> { %v3502_v29 = vpop.f32.mrb[38].mxu1 }
0x131a   : >> { %5106 = vrot.lane.b32.xlu1 %v5105_v19, %s5380_s12  ;;  %v4849_v21 = vpop.f32.mrb[39].mxu1  ;;  %v4447_v19 = vld [vmem:[%s3729_s2] ss:$0 sm:$0xff] }
0x133c   : >> { %v3609_v26 = vpop.f32.mrb[40].mxu1 }
0x133d   : >> { %v5110_v30 = vpack.i.bf16 %v3609_v26, %v3154_v10  ;;  %v4860_v31 = vpop.f32.mrb[41].mxu1  ;;  %v5122_v10 = vld [vmem:[%s3750_s29 + $0x8] sm:$0xff]  }
0x133e   : >> { %v3612_v32 = vpop.f32.mrb[42].mxu1  ;;  %4873 = vmatpush3.bf16.msra.mxu1 %v5122_v10  ;;  %v4466_v10 = vld [vmem:[%s5769_s13 + $0x1] ss:$0 sm:$0xff] (%p2525_p3) }
0x133f   : >> { %5111 = vrot.lane.b32.xlu0 %v5110_v30, %s5381_s17  ;;  %v4861_v33 = vpop.f32.mrb[43].mxu1 }
0x1340   : >> { %v5129_v33 = vld [vmem:[%s6112_s30 + $0x30] sm:$0xff]  }
0x1384   : >> { %v5102_v28 = vpop.permute.xlu0 %5101 }
0x1385   : >> { %v5104_v36 = vunpack.i.h.bf16 %v5102_v28  ;;  %v5103_v37 = vunpack.i.l.bf16 %v5102_v28  ;;  %v5130_v28 = vld [vmem:[%s6112_s30 + $0x38] sm:$0xff]  }
0x1387   : >> { %v3627_v41 = vsel %vm1252_vm2, %v3279_v12, %v5104_v36  ;;  %v3172_v42 = vsel %vm1252_vm2, %v2823_v59, %v5103_v37  ;;  %v5126_v12 = vld [vmem:[%s6112_s30 + $0x18] sm:$0xff]  }
0x138c   : >> { %v5107_v34 = vpop.permute.xlu1 %5106 }
0x138d   : >> { %v5109_v0 = vunpack.i.h.bf16 %v5107_v34  ;;  %v5108_v1 = vunpack.i.l.bf16 %v5107_v34  ;;  %v4450_v34 = vld [vmem:[%s3756_s4] ss:$0 sm:$0xff] }
0x138f   : >> { %v3628_v45 = vsel %vm1705_vm4, %v3627_v41, %v5109_v0  ;;  %v3174_v46 = vsel %vm1705_vm4, %v3172_v42, %v5108_v1 }
0x13b1   : >> { %v5112_v39 = vpop.permute.xlu0 %5111 }
0x13b2   : >> { %v5114_v43 = vunpack.i.h.bf16 %v5112_v39  ;;  %v5113_v44 = vunpack.i.l.bf16 %v5112_v39 }
0x13b4   : >> { %v3629_v47 = vsel %vm1707_vm5, %v3628_v45, %v5114_v43  ;;  %v3176_v48 = vsel %vm1707_vm5, %v3174_v46, %v5113_v44  ;;  %v4464_v46 = vld [vmem:[%s3933_s22] ss:$0 sm:$0xff] }
0x13b5   : >> { %v3636_v49 = vpack.c.bf16 %v3629_v47, %v3176_v48 }
0x13b7   : >> { %4867 = vmatmul.mubr.msk.bf16.vlgmr.msra.gmra.mrb[28].mxu0 %vm1019_vm0, %v3636_v49 }
0x13b8   : >> { %4894 = vmatprep.mubr.msk.bf16.mxu0 %vm5371_vm6, %v5370_v50  ;;  %4879 = vmatpush3.bf16.msra.mxu0 %v5123_v7 }
0x13b9   : >> { %4880 = vmatprep.subr.bf16.mxu0 %v5370_v50 }
0x13bc   : >> { %4881 = vmatpush3.bf16.msra.mxu0 %v5124_v11  ;;  %v4468_v11 = vld [vmem:[%s5774_s3 + $0x1] ss:$0 sm:$0xff] (%p2525_p3) }
0x13bd   : >> { %4882 = vmatprep.subr.bf16.mxu0 %v5370_v50 }
0x13c0   : >> { %4883 = vmatpush3.bf16.msra.mxu0 %v5125_v9 }
0x13c1   : >> { %4884 = vmatprep.subr.bf16.mxu0 %v5370_v50 }
0x13c4   : >> { %4885 = vmatpush3.bf16.msra.mxu0 %v5126_v12 }
0x13c5   : >> { %4886 = vmatprep.subr.bf16.mxu0 %v5370_v50 }
0x13c8   : >> { %4887 = vmatpush3.bf16.msra.mxu0 %v5127_v13 }
0x13c9   : >> { %4888 = vmatprep.subr.bf16.mxu0 %v5370_v50 }
0x13cc   : >> { %4889 = vmatpush3.bf16.msra.mxu0 %v5128_v14 }
0x13cd   : >> { %4890 = vmatprep.subr.bf16.mxu0 %v5370_v50 }
0x13d0   : >> { %4891 = vmatpush3.bf16.msra.mxu0 %v5129_v33 }
0x13d1   : >> { %4892 = vmatprep.subr.bf16.mxu0 %v5370_v50 }
0x13d4   : >> { %4893 = vmatpush3.bf16.msra.mxu0 %v5130_v28 }
0x148a   : >> { %v3694_v52 = vpop.f32.mrb[28].mxu0 }
0x148b   : >> { %v3695_v53 = vadd.f32 %v4443_v51, %v3694_v52  ;;  %v4868_v54 = vpop.f32.mrb[29].mxu0 }
0x148c   : >> { %v3697_v55 = vpop.f32.mrb[30].mxu0 }
0x148d   : >> { %v6311_v56 = vadd.f32 %v5347_v35, %v3695_v53  ;;  %v3698_v57 = vadd.f32 %v4443_v51, %v3697_v55  ;;  %v4869_v58 = vpop.f32.mrb[31].mxu0 }
0x148f   : >> { %v6314_v59 = vadd.f32 %v5343_v38, %v3698_v57  ;;  %v3703_v60 = vsel %vm1019_vm0, %v6311_v56, 0.0 }
0x1490   : >> { %3704 = vadd.xlane.f32.xlu1 %v3703_v60 }
0x1491   : >> { %v3706_v61 = vsel %vm1019_vm0, %v6314_v59, 0.0 }
0x1492   : >> { %3707 = vadd.xlane.f32.xlu0 %v3706_v61 }
0x151d   : >> { %v3705_v62 = vpop.xlane.xlu1 %3704 }
0x151e   : >> { %v3709_v23 = vmul.f32 0.03125, %v3705_v62 }
0x151f   : >> { %v3708_v63 = vpop.xlane.xlu0 %3707 }
0x1520   : >> { %v3711_v35 = vsub.f32 %v6311_v56, %v3709_v23  ;;  %v3710_v40 = vmul.f32 0.03125, %v3708_v63 }
0x1522   : >> { %v3712_v38 = vsub.f32 %v6314_v59, %v3710_v40  ;;  %v3713_v4 = vmul.f32 %v3711_v35, %v3711_v35 }
0x1524   : >> { %v3715_v6 = vsel %vm1019_vm0, %v3713_v4, 0.0  ;;  %v3714_v24 = vmul.f32 %v3712_v38, %v3712_v38 }
0x1525   : >> { %3716 = vadd.xlane.f32.xlu0 %v3715_v6 }
0x1526   : >> { %v3718_v5 = vsel %vm1019_vm0, %v3714_v24, 0.0 }
0x1529   : >> { %3719 = vadd.xlane.f32.xlu0 %v3718_v5 }
0x15b2   : >> { %v3717_v2 = vpop.xlane.xlu0 %3716 }
0x15b3   : >> { %v3721_v15 = vmul.f32 0.03125, %v3717_v2 }
0x15b5   : >> { %v3723_v16 = vadd.f32 1e-05, %v3721_v15 }
0x15b6   : >> { %v3720_v17 = vpop.xlane.xlu0 %3719 }
0x15b7   : >> { %5167 = vrsqrt.f32 %v3723_v16  ;;  %v3722_v25 = vmul.f32 0.03125, %v3720_v17 }
0x15b9   : >> { %v3724_v27 = vadd.f32 1e-05, %v3722_v25 }
0x15bb   : >> { %5169 = vrsqrt.f32 %v3724_v27 }
0x15c1   : >> { %v5168_v3 = vpop.eup %5167 }
0x15c2   : >> { %v3727_v18 = vmul.f32 %v5168_v3, %v3711_v35 }
0x15c4   : >> { %v3737_v21 = vmul.f32 %v4447_v19, %v3727_v18 }
0x15c5   : >> { %v5170_v20 = vpop.eup %5169 }
0x15c6   : >> { %v3728_v29 = vmul.f32 %v5170_v20, %v3712_v38  ;;  %v3747_v30 = vadd.f32 %v4448_v22, %v3737_v21 }
0x15c8   : >> { %v3738_v26 = vmul.f32 %v4447_v19, %v3728_v29 }
0x15ca   : >> { %v3748_v31 = vadd.f32 %v4448_v22, %v3738_v26 }
0x15cc   : >> { %v3755_v32 = vpack.c.bf16 %v3748_v31, %v3747_v30 }
0x15ce   : >> { %4875 = vmatmul.mubr.msk.bf16.vlgmr.msra.gmra.mrb[44].mxu1 %vm1019_vm0, %v3755_v32 }
0x16a1   : >> { %v3813_v36 = vpop.f32.mrb[44].mxu1 }
0x16a2   : >> { %v3814_v37 = vadd.f32 %v4450_v34, %v3813_v36  ;;  %v4876_v0 = vpop.f32.mrb[45].mxu1 }
0x16a3   : >> { %v3816_v1 = vpop.f32.mrb[46].mxu1 }
0x16a4   : >> { %v3817_v39 = vadd.f32 %v4450_v34, %v3816_v1  ;;  %v4877_v41 = vpop.f32.mrb[47].mxu1  ;;  %v3820_v42 = vmax.f32 %v3814_v37, 0.0 }
0x16a6   : >> { %v3821_v43 = vmax.f32 %v3817_v39, 0.0 }
0x16a8   : >> { %v3841_v44 = vpack.c.bf16 %v3821_v43, %v3820_v42 }
0x16aa   : >> { %4895 = vmatmul.mubr.bf16.vlgmr.msra.gmra.mrb[32].mxu0 %v3841_v44 }
0x177d   : >> { %v3924_v45 = vpop.f32.mrb[32].mxu0 }
0x177e   : >> { %v3931_v47 = vadd.f32 %v3924_v45, %v6311_v56  ;;  %v4896_v50 = vpop.f32.mrb[33].mxu0  ;;  %2527 = sbr.rel (!%p2525_p3) target bundleno = 3403 (0xd4b), region = 260 }
0x177f   : >> { %v3927_v48 = vpop.f32.mrb[34].mxu0 }
0x1780   : >> { %v3941_v49 = vadd.f32 %v4464_v46, %v3931_v47   ;;  %v3932_v51 = vadd.f32 %v3927_v48, %v6314_v59  ;;  %v4897_v52 = vpop.f32.mrb[35].mxu0 }
0x1782   : >> { %v3942_v53 = vadd.f32 %v4464_v46, %v3932_v51   ;;  %v6475_v35 = vmov %v3941_v49  ;;  %v3943_v54 = vsel (%p2525_p3), %vm1019_vm0, %v3941_v49, 0.0 }
0x1783   : > { %3944 = vadd.xlane.f32.xlu0 (%p2525_p3), %v3943_v54 }
0x1784   : >> { %v6474_v38 = vmov %v3942_v53  ;;  %v3946_v55 = vsel (%p2525_p3), %vm1019_vm0, %v3942_v53, 0.0 }
0x1787   : > { %3947 = vadd.xlane.f32.xlu0 %v3946_v55 }
0x1810   : > { %v3945_v56 = vpop.xlane.xlu0 %3944 }
0x1811   : > { %v3949_v57 = vmul.f32 0.03125, %v3945_v56 }
0x1813   : > { %v3951_v58 = vsub.f32 %v3941_v49, %v3949_v57 }
0x1814   : > { %v3948_v59 = vpop.xlane.xlu0 %3947 }
0x1815   : > { %v3950_v60 = vmul.f32 0.03125, %v3948_v59  ;;  %v3953_v61 = vmul.f32 %v3951_v58, %v3951_v58 }
0x1817   : > { %v3952_v62 = vsub.f32 %v3942_v53, %v3950_v60  ;;  %v3955_v23 = vsel %vm1019_vm0, %v3953_v61, 0.0 }
0x1818   : > { %3956 = vadd.xlane.f32.xlu1 %v3955_v23 }
0x1819   : > { %v3954_v63 = vmul.f32 %v3952_v62, %v3952_v62 }
0x181b   : > { %v3958_v35 = vsel %vm1019_vm0, %v3954_v63, 0.0 }
0x181c   : > { %3959 = vadd.xlane.f32.xlu1 %v3958_v35 }
0x18a5   : > { %v3957_v40 = vpop.xlane.xlu1 %3956 }
0x18a6   : > { %v3961_v38 = vmul.f32 0.03125, %v3957_v40 }
0x18a8   : > { %v3963_v4 = vadd.f32 1e-05, %v3961_v38 }
0x18a9   : > { %v3960_v6 = vpop.xlane.xlu1 %3959 }
0x18aa   : > { %5171 = vrsqrt.f32 %v3963_v4  ;;  %v3962_v24 = vmul.f32 0.03125, %v3960_v6 }
0x18ac   : > { %v3964_v5 = vadd.f32 1e-05, %v3962_v24 }
0x18ae   : > { %5173 = vrsqrt.f32 %v3964_v5 }
0x18b4   : > { %v5172_v8 = vpop.eup %5171 }
0x18b5   : > { %v3967_v7 = vmul.f32 %v5172_v8, %v3951_v58 }
0x18b7   : > { %v3977_v9 = vmul.f32 %v4466_v10, %v3967_v7 }
0x18b8   : > { %v5174_v12 = vpop.eup %5173 }
0x18b9   : > { %v3987_v13 = vadd.f32 %v4468_v11, %v3977_v9  ;;  %v3968_v14 = vmul.f32 %v5174_v12, %v3952_v62 }
0x18bb   : > { %v4494_v2 = vpack.c.bf16 %v3987_v13, %v3987_v13  ;;  %v3978_v15 = vmul.f32 %v4466_v10, %v3968_v14 }
0x18bd   : > { %3998 = vst.msk [vmem:[%s6476_s14] sm:$0xf] %vm3997_vm7, %v4494_v2  ;;  %v3988_v16 = vadd.f32 %v4468_v11, %v3978_v15 }
0x18bf   : > { %v4495_v17 = vpack.c.bf16 %v3988_v16, %v3988_v16 }
0x18c1   : > { %3999 = vst.msk [vmem:[%s6476_s14 + $0x4] sm:$0xf] %vm3997_vm7, %v4495_v17 }
0x18c2 PF: > { %s6477_s21 = sld [smem:[#allocation11_spill]]  ;;  %s6478_s0 = sld [smem:[#allocation9_spill]] }
0x18c3   : > { %s6479_s30 = sld [smem:[#allocation10_spill]]  ;;  %s6480_s20 = sld [smem:[#allocation12_spill]] }
0x18c8   : > { %p32_p5 = scmp.ge.s32.totalorder %s6477_s21, 4  }
0x18ca   :  { %34 = sbr.rel (!%p32_p5) target bundleno = 26 (0x1a), region = 271 }
0x18d1   :  { %4021 = vsyncpa [#allocation3], 1 }
0x18d2   :  { %4023 = vsyncpa [#allocation3 + $0x1], 1 }
0x18d3   :  { %4024 = vsyncpa [#allocation5], 1 }
0x18d4   :  { %4026 = vsyncpa [#allocation5 + $0x1], 1 }

</bundles_post_ra>
